<compile_context>
chip_gen: v7x
topology: tpu7x:2x2x1
jax: 0.10.0
libtpu: 0.0.40
codegen_flags: <defaults>
</compile_context>

<pallas_src>
import functools
import math

import numpy as np
import jax
import jax.numpy as jnp
from jax.experimental import pallas as pl
from jax.experimental.pallas import tpu as pltpu


def make_haar_weights(in_channels: int) -> np.ndarray:
    """Replicates HaarUpsampling.__init__ weight construction (deterministic)."""
    w = np.ones((4, 1, 2, 2), dtype=np.float32)
    w[1, 0, 0, 1] = -1
    w[1, 0, 1, 1] = -1
    w[2, 0, 1, 0] = -1
    w[2, 0, 1, 1] = -1
    w[3, 0, 1, 0] = -1
    w[3, 0, 0, 1] = -1
    w *= 0.5
    return np.concatenate([w] * in_channels, axis=0)  # (4*c, 1, 2, 2)


# ---------------------------------------------------------------------------
# Fused kernel: butterfly + 2x2 sub-pixel interleave, emitted directly in the
# final (row-packed, lane-dense) output memory layout.
# ---------------------------------------------------------------------------
def _haar_up_kernel(x_ref, o_ref, *, r: int, w: int):
    # x_ref: (tb, 4, H/r, r*W) VMEM      o_ref: (tb, H/r, r*4W) VMEM
    tb, _, hr, rw = x_ref.shape
    # Load the four Haar sub-band planes directly (no full-block temp); compute in f32.
    x0 = x_ref[:, 0].astype(jnp.float32)
    x1 = x_ref[:, 1].astype(jnp.float32)
    x2 = x_ref[:, 2].astype(jnp.float32)
    x3 = x_ref[:, 3].astype(jnp.float32)
    # Hadamard butterfly with the fixed +-0.5 Haar coefficients.
    a = x0 + x1
    b = x0 - x1
    c = x2 + x3
    d = x2 - x3
    o00 = 0.5 * (a + c)      # (di, dj) = (0, 0)
    o01 = 0.5 * (b + d)      # (0, 1)
    o10 = 0.5 * (a - c)      # (1, 0)
    o11 = 0.5 * (b - d)      # (1, 1)
    # dj lane-interleave on the packed rows: lane 2m+dj <- o_{di,dj}[..., m].
    top = jnp.stack([o00, o01], axis=-1).reshape(tb, hr, 2 * rw)   # output rows 2i
    bot = jnp.stack([o10, o11], axis=-1).reshape(tb, hr, 2 * rw)   # output rows 2i+1
    # di row-interleave at sub-row (2W) granularity: for each packed spatial row q,
    # emit [top_q | bot_q].  Pure static lane slicing + concat (no sublane collapse).
    w2 = 2 * w
    pieces = []
    for q in range(r):
        pieces.append(top[..., q * w2:(q + 1) * w2])
        pieces.append(bot[..., q * w2:(q + 1) * w2])
    o_ref[...] = jnp.concatenate(pieces, axis=-1).astype(o_ref.dtype)


# ---------------------------------------------------------------------------
# Tiling helpers
# ---------------------------------------------------------------------------
def _round_up(x: int, m: int) -> int:
    return ((x + m - 1) // m) * m


def _pick_row_pack(H: int, W: int) -> int:
    """Smallest row packing r that makes the output lane width r*4W a multiple of 128."""
    lane = 4 * W
    if lane % 128 == 0:
        return 1
    r = 128 // math.gcd(128, lane)
    return r if H % r == 0 else 1


def _vmem_limit_and_budget():
    """Per-generation scoped-VMEM limit and working-set budget for block sizing."""
    phys = 64 * 1024 * 1024                           # conservative fallback (v7x per-TC)
    try:
        v = getattr(pltpu.get_tpu_info(), "vmem_capacity_bytes", None)
        if v:
            phys = int(v)
    except Exception:
        pass
    limit = min(64 * 1024 * 1024, (phys * 3) // 4)    # 64 MiB on v5e/v6e, 48 MiB on v7x
    budget = min(20 * 1024 * 1024, phys // 4)         # double-buffered blocks + temps
    return limit, budget


def _pick_block_batch(B: int, hr: int, rw: int, itemsize: int, budget: int) -> int:
    """Largest divisor of B whose double-buffered in/out blocks plus in-kernel f32
    temporaries fit the budget; capped at B//2 so the parallel axis has >=2 steps."""
    in_slice = 4 * _round_up(hr, 8) * _round_up(rw, 128) * itemsize        # padded input
    out_slice = _round_up(hr, 8) * _round_up(4 * rw, 128) * itemsize       # dense output
    tmp_slice = 16 * hr * rw * 4                                           # f32 temps
    per_slice = 2 * (in_slice + out_slice) + tmp_slice
    cap = max(1, budget // per_slice)
    if B >= 2:
        cap = min(cap, max(1, B // 2))                 # >=2 grid steps (v7x megacore)
    tb = 1
    for d in range(1, B + 1):
        if B % d == 0 and d <= cap:
            tb = d
    return tb


# ---------------------------------------------------------------------------
# Forward wrapper
# ---------------------------------------------------------------------------
def _haar_upsampling_forward(x: jax.Array) -> jax.Array:
    """HaarUpsampling.forward(x, rev=False): (N, 4*c, H, W) -> (N, c, 2H, 2W)."""
    N, C, H, W = x.shape
    assert C % 4 == 0, "channel dim must be a multiple of 4"
    c = C // 4
    B = N * c
    r = _pick_row_pack(H, W)
    hr, rw = H // r, r * W
    out_w = 4 * rw
    vmem_limit, budget = _vmem_limit_and_budget()
    tb = _pick_block_batch(B, hr, rw, x.dtype.itemsize, budget)

    xg = x.reshape(B, 4, hr, rw)                       # free contiguous view
    y = pl.pallas_call(
        functools.partial(_haar_up_kernel, r=r, w=W),
        out_shape=jax.ShapeDtypeStruct((B, hr, out_w), x.dtype),
        grid=(B // tb,),
        in_specs=[pl.BlockSpec((tb, 4, hr, rw), lambda i: (i, 0, 0, 0))],
        out_specs=pl.BlockSpec((tb, hr, out_w), lambda i: (i, 0, 0)),
        compiler_params=pltpu.CompilerParams(
            dimension_semantics=("parallel",),
            vmem_limit_bytes=vmem_limit,
        ),
    )(xg)
    # (B, H/r, r*4W) is a contiguous view of (N, c, 2H, 2W): this reshape is free.
    return y.reshape(N, c, 2 * H, 2 * W)


haar_upsampling_forward = jax.jit(_haar_upsampling_forward)


if __name__ == "__main__":
    N, C, H, W = 2, 8, 16, 16            # C = 4 * in_channels -> in_channels = 2
    in_channels = C // 4

    key = jax.random.PRNGKey(0)
    x = jax.random.normal(key, (N, C, H, W), dtype=jnp.float32)

    out = jax.block_until_ready(haar_upsampling_forward(x))

    # Reference: closed form of F.conv_transpose2d(x, haar_w, stride=2, groups=in_channels)
    w = make_haar_weights(in_channels)                        # (4*c, 1, 2, 2)
    xn = np.asarray(x)
    xg = xn.reshape(N, in_channels, 4, H, W)
    wk = w.reshape(in_channels, 4, 2, 2)
    ref = np.einsum("ngkhw,gkab->nghawb", xg, wk).reshape(N, in_channels, 2 * H, 2 * W)

    np.testing.assert_allclose(np.asarray(out), ref, rtol=1e-5, atol=1e-5)
    print("KERNEL_OK")
</pallas_src>

<mosaic_0001>
module attributes {stable_mosaic.version = 11 : i64} {
  func.func @_haar_up_kernel(%arg0: i32, %arg1: memref<2x4x8x32xf32, #tpu.memory_space<vmem>>, %arg2: memref<2x8x128xf32, #tpu.memory_space<vmem>>) attributes {dimension_semantics = [#tpu.dimension_semantics<parallel>], iteration_bounds = array<i64: 2>, scalar_prefetch = 0 : i64, scratch_operands = 0 : i64, tpu.core_type = #tpu.core_type<tc>, window_params = [{transform_indices = @transform_0, window_bounds = array<i64: 2, 4, 8, 32>}, {transform_indices = @transform_1, window_bounds = array<i64: 2, 8, 128>}]} {
    %c0 = arith.constant 0 : index
    %c0_0 = arith.constant 0 : index
    %c0_1 = arith.constant 0 : index
    %c0_2 = arith.constant 0 : index
    %0 = vector.load %arg1[%c0, %c0_0, %c0_1, %c0_2] : memref<2x4x8x32xf32, #tpu.memory_space<vmem>>, vector<2x1x8x32xf32>
    %1 = vector.shape_cast %0 : vector<2x1x8x32xf32> to vector<2x8x32xf32>
    %c0_3 = arith.constant 0 : index
    %c1 = arith.constant 1 : index
    %c0_4 = arith.constant 0 : index
    %c0_5 = arith.constant 0 : index
    %2 = vector.load %arg1[%c0_3, %c1, %c0_4, %c0_5] : memref<2x4x8x32xf32, #tpu.memory_space<vmem>>, vector<2x1x8x32xf32>
    %3 = vector.shape_cast %2 : vector<2x1x8x32xf32> to vector<2x8x32xf32>
    %c0_6 = arith.constant 0 : index
    %c2 = arith.constant 2 : index
    %c0_7 = arith.constant 0 : index
    %c0_8 = arith.constant 0 : index
    %4 = vector.load %arg1[%c0_6, %c2, %c0_7, %c0_8] : memref<2x4x8x32xf32, #tpu.memory_space<vmem>>, vector<2x1x8x32xf32>
    %5 = vector.shape_cast %4 : vector<2x1x8x32xf32> to vector<2x8x32xf32>
    %c0_9 = arith.constant 0 : index
    %c3 = arith.constant 3 : index
    %c0_10 = arith.constant 0 : index
    %c0_11 = arith.constant 0 : index
    %6 = vector.load %arg1[%c0_9, %c3, %c0_10, %c0_11] : memref<2x4x8x32xf32, #tpu.memory_space<vmem>>, vector<2x1x8x32xf32>
    %7 = vector.shape_cast %6 : vector<2x1x8x32xf32> to vector<2x8x32xf32>
    %8 = arith.addf %1, %3 : vector<2x8x32xf32>
    %9 = arith.subf %1, %3 : vector<2x8x32xf32>
    %10 = arith.addf %5, %7 : vector<2x8x32xf32>
    %11 = arith.subf %5, %7 : vector<2x8x32xf32>
    %12 = arith.addf %8, %10 : vector<2x8x32xf32>
    %cst = arith.constant 5.000000e-01 : f32
    %13 = vector.broadcast %cst : f32 to vector<2x8x32xf32>
    %14 = arith.mulf %13, %12 : vector<2x8x32xf32>
    %15 = arith.addf %9, %11 : vector<2x8x32xf32>
    %cst_12 = arith.constant 5.000000e-01 : f32
    %16 = vector.broadcast %cst_12 : f32 to vector<2x8x32xf32>
    %17 = arith.mulf %16, %15 : vector<2x8x32xf32>
    %18 = arith.subf %8, %10 : vector<2x8x32xf32>
    %cst_13 = arith.constant 5.000000e-01 : f32
    %19 = vector.broadcast %cst_13 : f32 to vector<2x8x32xf32>
    %20 = arith.mulf %19, %18 : vector<2x8x32xf32>
    %21 = arith.subf %9, %11 : vector<2x8x32xf32>
    %cst_14 = arith.constant 5.000000e-01 : f32
    %22 = vector.broadcast %cst_14 : f32 to vector<2x8x32xf32>
    %23 = arith.mulf %22, %21 : vector<2x8x32xf32>
    %24 = vector.shape_cast %14 : vector<2x8x32xf32> to vector<2x8x32x1xf32>
    %25 = vector.shape_cast %17 : vector<2x8x32xf32> to vector<2x8x32x1xf32>
    %26 = tpu.concatenate %24, %25 in 3 : vector<2x8x32x1xf32>, vector<2x8x32x1xf32> -> vector<2x8x32x2xf32>
    %27 = vector.shape_cast %26 : vector<2x8x32x2xf32> to vector<2x8x64xf32>
    %28 = vector.shape_cast %20 : vector<2x8x32xf32> to vector<2x8x32x1xf32>
    %29 = vector.shape_cast %23 : vector<2x8x32xf32> to vector<2x8x32x1xf32>
    %30 = tpu.concatenate %28, %29 in 3 : vector<2x8x32x1xf32>, vector<2x8x32x1xf32> -> vector<2x8x32x2xf32>
    %31 = vector.shape_cast %30 : vector<2x8x32x2xf32> to vector<2x8x64xf32>
    %32 = vector.extract_strided_slice %27 {offsets = [0, 0, 0], sizes = [2, 8, 32], strides = [1, 1, 1]} : vector<2x8x64xf32> to vector<2x8x32xf32>
    %33 = vector.extract_strided_slice %31 {offsets = [0, 0, 0], sizes = [2, 8, 32], strides = [1, 1, 1]} : vector<2x8x64xf32> to vector<2x8x32xf32>
    %34 = vector.extract_strided_slice %27 {offsets = [0, 0, 32], sizes = [2, 8, 32], strides = [1, 1, 1]} : vector<2x8x64xf32> to vector<2x8x32xf32>
    %35 = vector.extract_strided_slice %31 {offsets = [0, 0, 32], sizes = [2, 8, 32], strides = [1, 1, 1]} : vector<2x8x64xf32> to vector<2x8x32xf32>
    %36 = tpu.concatenate %32, %33, %34, %35 in 2 : vector<2x8x32xf32>, vector<2x8x32xf32>, vector<2x8x32xf32>, vector<2x8x32xf32> -> vector<2x8x128xf32>
    %c0_15 = arith.constant 0 : index
    %c0_16 = arith.constant 0 : index
    %c0_17 = arith.constant 0 : index
    %37 = vector.load %arg2[%c0_15, %c0_16, %c0_17] : memref<2x8x128xf32, #tpu.memory_space<vmem>>, vector<2x8x128xf32>
    tpu.vector_store %arg2[%c0_15, %c0_16, %c0_17], %36 {strides = array<i32>} : memref<2x8x128xf32, #tpu.memory_space<vmem>>, vector<2x8x128xf32>,
    return
  }
  func.func @transform_0(%arg0: i32) -> (i32, i32, i32, i32) {
    %c0_i32 = arith.constant 0 : i32
    %c0_i32_0 = arith.constant 0 : i32
    %c0_i32_1 = arith.constant 0 : i32
    %c0_i32_2 = arith.constant 0 : i32
    return %arg0, %c0_i32, %c0_i32_0, %c0_i32_1 : i32, i32, i32, i32
  }
  func.func @transform_1(%arg0: i32) -> (i32, i32, i32) {
    %c0_i32 = arith.constant 0 : i32
    %c0_i32_0 = arith.constant 0 : i32
    %c0_i32_1 = arith.constant 0 : i32
    return %arg0, %c0_i32, %c0_i32_0 : i32, i32, i32
  }
}

</mosaic_0001>

<bundles_post_ra>
// kernel: _haar_upsampling_forward.1
= control target key start
LH: loop header
LB: loop body
LE: loop exit
PB: predicated region body
PF: predicated region fallthrough
CT: control target
= control target key end

     0   :  { %s4531_s6 = smov 0   ;;  %s6919_s0 = inlined_call_operand.vmem [shape: f32[4,4,8,32], index: 0, kind: input, shape index: {}]   ;;  %s6920_s1 = inlined_call_operand.vmem [shape: f32[4,8,128], index: 1, kind: output, shape index: {}]  }
   0x1 LB: > { %s4418_s7 = sadd.s32 4294967295, %s4485_s6   ;;  %p4422_p0 = scmp.ge.s32.totalorder %s4485_s6, 1  ;;  %s4485_s6 = sphi %s4531_s6, %s11_s6  }
   0x2   : > { %p89_p1 = scmp.lt.s32.totalorder %s4485_s6, 3 }
   0x4   : > { %p90_p2 = pnand %p4422_p0, %p89_p1 }
   0x6   : > { %93 = sbr.rel (%p90_p2) target bundleno = 1202 (0x4b2), region = 24 }
   0xd   : > { %s4423_s8 = sshll.u32 %s4418_s7, 1  ;;  %v158_v0 = vlaneseq  ;;  %vm766_vm0 = vcmask 7168   ;;  %s4489_s13 = smov 2   ;;  %vm2167_vm1 = vcmask 15360   ;;  %vm2170_vm2 = vcmask 31744  }
   0xe   : > { %p111_p3 = scmp.lt.s32.totalorder %s4423_s8, 3  ;;  %s4490_s14 = smov 4   ;;  %vm6966_vm3 = vcmask 48128   ;;  %vm6964_vm4 = vcmask 64512   ;;  %vm6962_vm5 = vcmask 80896   ;;  %vm6960_vm6 = vcmask 97280  }
   0xf   : > { %v4550_v4 = vshrl.u32 %v158_v0, 7  ;;  %s4491_s15 = smov 6   ;;  %s4492_s16 = smov 8   ;;  %vm6958_vm7 = vcmask 113664   ;;  %vm6957_vm8 = vcmask 130048   ;;  %vm6959_vm9 = vcmask 146432  }
  0x10   : > { %s7343_s8 = smov (!%p111_p3, %s4423_s8), 3  ;;  %s4493_s17 = smov 10   ;;  %vm6961_vm10 = vcmask 162816   ;;  %vm6963_vm11 = vcmask 179200   ;;  %vm6965_vm12 = vcmask 195584   ;;  %vm2203_vm13 = vcmask 211968  }
  0x11   : > { %s4436_s9 = sshll.u32 %s7343_s8, 5  ;;  %v4564_v11 = vsub.s32 0, %v4550_v4  ;;  %v4568_v14 = vsub.s32 1, %v4550_v4  ;;  %v4572_v16 = vsub.s32 2, %v4550_v4  ;;  %v4576_v18 = vsub.s32 3, %v4550_v4  ;;  %s4494_s18 = smov 12  }
  0x12   : > { %s4545_s12 = scalar_lea.vmem %s6919_s0, %s4436_s9  ;;  %v4580_v20 = vsub.s32 4, %v4550_v4  ;;  %v4584_v22 = vsub.s32 5, %v4550_v4  ;;  %v4588_v24 = vsub.s32 6, %v4550_v4  ;;  %v4596_v30 = vsub.s32 7, %v4550_v4  ;;  %s4495_s19 = smov 14  }
  0x13   : > { %v123_v1 = vld [vmem:[%s4545_s12] sm:$0xff]  ;;  %v4428_v2 = vld [vmem:[%s4545_s12 + $0x8] sm:$0xff]  ;;  %v4430_v3 = vld [vmem:[%s4545_s12 + $0x10] sm:$0xff]  ;;  %6978 = vst [vmem:[#allocation6_spill] sm:$0xff] %v4564_v11  ;;  %s4496_s20 = smov 16   ;;  %s4497_s21 = smov 18  }
  0x14   : > { %v4432_v5 = vld [vmem:[%s4545_s12 + $0x18] sm:$0xff]  ;;  %v4553_v6 = vadd.f32 %v4428_v2, %v123_v1  ;;  %v4557_v8 = vsub.f32 %v123_v1, %v4428_v2  ;;  %6979 = vst [vmem:[#allocation7_spill] sm:$0xff] %v4568_v14  ;;  %6980 = vst [vmem:[#allocation8_spill] sm:$0xff] %v4572_v16  ;;  %v124_v26 = vld [vmem:[%s4545_s12 + $0x20] sm:$0xff]  ;;  %s6949_s22 = smov 20   ;;  %s6947_s23 = smov 22  }
  0x15   : > { %v4555_v7 = vadd.f32 %v4432_v5, %v4430_v3  ;;  %v4559_v9 = vsub.f32 %v4430_v3, %v4432_v5  ;;  %6981 = vst [vmem:[#allocation9_spill] sm:$0xff] %v4576_v18  ;;  %6982 = vst [vmem:[#allocation10_spill] sm:$0xff] %v4580_v20  ;;  %v4429_v27 = vld [vmem:[%s4545_s12 + $0x28] sm:$0xff]  ;;  %v4431_v28 = vld [vmem:[%s4545_s12 + $0x30] sm:$0xff]  ;;  %s6951_s24 = smov 24   ;;  %s6953_s25 = smov 26  }
  0x16   : > { %6974 = vst [vmem:[#allocation2_spill] sm:$0xff] %v4553_v6  ;;  %6976 = vst [vmem:[#allocation4_spill] sm:$0xff] %v4557_v8  ;;  %v4433_v29 = vld [vmem:[%s4545_s12 + $0x38] sm:$0xff]  ;;  %v4598_v31 = vadd.f32 %v4429_v27, %v124_v26  ;;  %v4605_v36 = vsub.f32 %v124_v26, %v4429_v27  ;;  %s4502_s26 = smov 28   ;;  %s4503_s27 = smov 30   ;;  %vm6967_vm14 = vcmask 228352  }
  0x17   : > { %6975 = vst [vmem:[#allocation3_spill] sm:$0xff] %v4555_v7  ;;  %6977 = vst [vmem:[#allocation5_spill] sm:$0xff] %v4559_v9  ;;  %v142_v10 = vadd.f32 %v4555_v7, %v4553_v6  ;;  %v4600_v32 = vadd.f32 %v4433_v29, %v4431_v28  ;;  %v4607_v37 = vsub.f32 %v4431_v28, %v4433_v29  ;;  %s4504_s28 = smov 32   ;;  %s4505_s29 = smov 34   ;;  %vm6968_vm15 = vcmask 244736  }
  0x18   : > { %6983 = vst [vmem:[#allocation11_spill] sm:$0xff] %v4584_v22  ;;  %6984 = vst [vmem:[#allocation12_spill] sm:$0xff] %v4588_v24  ;;  %v146_v48 = vadd.f32 %v4559_v9, %v4557_v8  ;;  %s4506_s30 = smov 36   ;;  %s4507_s2 = smov 38  }
  0x19   : > { %v144_v12 = vmul.f32 0.5, %v142_v10  ;;  %6985 = vst [vmem:[#allocation13_spill] sm:$0xff] %v4596_v30  ;;  %6986 = vst [vmem:[#allocation14_spill] sm:$0xff] %v4598_v31  ;;  %v143_v34 = vadd.f32 %v4600_v32, %v4598_v31  ;;  %s4508_s3 = smov 40   ;;  %s4509_s4 = smov 42  }
  0x1a   : > { %6987 = vst [vmem:[#allocation15_spill] sm:$0xff] %v4600_v32  ;;  %6988 = vst [vmem:[#allocation16_spill] sm:$0xff] %v4605_v36  ;;  %v4627_v51 = vmul.f32 0.5, %v146_v48  ;;  %s4510_s5 = smov 44   ;;  %s4511_s7 = smov 46  }
  0x1b   : > { %v161_v13 = vrot.slane %v144_v12, %v4564_v11  ;;  %v180_v15 = vrot.slane %v144_v12, %v4568_v14  ;;  %v199_v17 = vrot.slane %v144_v12, %v4572_v16  ;;  %v218_v19 = vrot.slane %v144_v12, %v4576_v18  ;;  %6989 = vst [vmem:[#allocation17_spill] sm:$0xff] %v4607_v37  ;;  %s4512_s9 = smov 48   ;;  %s4513_s10 = smov 50  }
  0x1c   : > { %v237_v21 = vrot.slane %v144_v12, %v4580_v20  ;;  %v256_v23 = vrot.slane %v144_v12, %v4584_v22  ;;  %v275_v25 = vrot.slane %v144_v12, %v4588_v24  ;;  %v294_v33 = vrot.slane %v144_v12, %v4596_v30  ;;  %s4514_s11 = smov 52   ;;  %s4515_s12 = smov 54  }
  0x1d   : > { %171 = vbcast.lane.b32.xlu1 %v161_v13, 272  ;;  %163 = vbcast.lane.b32.xlu0 %v161_v13, 256  ;;  %v145_v35 = vmul.f32 0.5, %v143_v34  ;;  %v465_v54 = vrot.slane %v4627_v51, %v4564_v11  ;;  %v484_v59 = vrot.slane %v4627_v51, %v4568_v14  ;;  %v503_v0 = vrot.slane %v4627_v51, %v4572_v16 }
  0x1e   : > { %v522_v10 = vrot.slane %v4627_v51, %v4576_v18  ;;  %v560_v27 = vrot.slane %v4627_v51, %v4584_v22 }
  0x1f   : > { %v313_v38 = vrot.slane %v145_v35, %v4564_v11  ;;  %v332_v39 = vrot.slane %v145_v35, %v4568_v14  ;;  %v351_v40 = vrot.slane %v145_v35, %v4572_v16  ;;  %v370_v41 = vrot.slane %v145_v35, %v4576_v18 }
  0x20   : > { %v389_v42 = vrot.slane %v145_v35, %v4580_v20  ;;  %v408_v43 = vrot.slane %v145_v35, %v4584_v22  ;;  %v427_v44 = vrot.slane %v145_v35, %v4588_v24  ;;  %v446_v47 = vrot.slane %v145_v35, %v4596_v30 }
  0x21   : > { %175 = vbcast.lane.b32.xlu1 %v161_v13, 280  ;;  %167 = vbcast.lane.b32.xlu0 %v161_v13, 264  ;;  %v579_v35 = vrot.slane %v4627_v51, %v4588_v24 }
  0x25   : > { %186 = vbcast.lane.b32.xlu1 %v180_v15, 264  ;;  %182 = vbcast.lane.b32.xlu0 %v180_v15, 256 }
  0x29   : > { %194 = vbcast.lane.b32.xlu1 %v180_v15, 280  ;;  %190 = vbcast.lane.b32.xlu0 %v180_v15, 272 }
  0x2d   : > { %205 = vbcast.lane.b32.xlu1 %v199_v17, 264  ;;  %201 = vbcast.lane.b32.xlu0 %v199_v17, 256 }
  0x31   : > { %213 = vbcast.lane.b32.xlu1 %v199_v17, 280  ;;  %209 = vbcast.lane.b32.xlu0 %v199_v17, 272 }
  0x35   : > { %224 = vbcast.lane.b32.xlu1 %v218_v19, 264  ;;  %220 = vbcast.lane.b32.xlu0 %v218_v19, 256 }
  0x39   : > { %232 = vbcast.lane.b32.xlu1 %v218_v19, 280  ;;  %228 = vbcast.lane.b32.xlu0 %v218_v19, 272  ;;  %v541_v19 = vrot.slane %v4627_v51, %v4580_v20 }
  0x3d   : > { %243 = vbcast.lane.b32.xlu1 %v237_v21, 264  ;;  %239 = vbcast.lane.b32.xlu0 %v237_v21, 256 }
  0x41   : > { %251 = vbcast.lane.b32.xlu1 %v237_v21, 280  ;;  %247 = vbcast.lane.b32.xlu0 %v237_v21, 272 }
  0x45   : > { %262 = vbcast.lane.b32.xlu1 %v256_v23, 264  ;;  %258 = vbcast.lane.b32.xlu0 %v256_v23, 256 }
  0x49   : > { %270 = vbcast.lane.b32.xlu1 %v256_v23, 280  ;;  %266 = vbcast.lane.b32.xlu0 %v256_v23, 272 }
  0x4d   : > { %281 = vbcast.lane.b32.xlu1 %v275_v25, 264  ;;  %277 = vbcast.lane.b32.xlu0 %v275_v25, 256 }
  0x51   : > { %289 = vbcast.lane.b32.xlu1 %v275_v25, 280  ;;  %285 = vbcast.lane.b32.xlu0 %v275_v25, 272 }
  0x55   : > { %300 = vbcast.lane.b32.xlu1 %v294_v33, 264  ;;  %296 = vbcast.lane.b32.xlu0 %v294_v33, 256 }
  0x59   : > { %308 = vbcast.lane.b32.xlu1 %v294_v33, 280  ;;  %304 = vbcast.lane.b32.xlu0 %v294_v33, 272 }
  0x5d   : > { %319 = vbcast.lane.b32.xlu1 %v313_v38, 264  ;;  %315 = vbcast.lane.b32.xlu0 %v313_v38, 256 }
  0x61   : > { %327 = vbcast.lane.b32.xlu1 %v313_v38, 280  ;;  %323 = vbcast.lane.b32.xlu0 %v313_v38, 272 }
  0x65   : > { %338 = vbcast.lane.b32.xlu1 %v332_v39, 264  ;;  %334 = vbcast.lane.b32.xlu0 %v332_v39, 256 }
  0x69   : > { %346 = vbcast.lane.b32.xlu1 %v332_v39, 280  ;;  %342 = vbcast.lane.b32.xlu0 %v332_v39, 272 }
  0x6d   : > { %357 = vbcast.lane.b32.xlu1 %v351_v40, 264  ;;  %353 = vbcast.lane.b32.xlu0 %v351_v40, 256 }
  0x71   : > { %365 = vbcast.lane.b32.xlu1 %v351_v40, 280  ;;  %361 = vbcast.lane.b32.xlu0 %v351_v40, 272 }
  0x75   : > { %376 = vbcast.lane.b32.xlu1 %v370_v41, 264  ;;  %372 = vbcast.lane.b32.xlu0 %v370_v41, 256 }
  0x79   : > { %384 = vbcast.lane.b32.xlu1 %v370_v41, 280  ;;  %380 = vbcast.lane.b32.xlu0 %v370_v41, 272 }
  0x7d   : > { %395 = vbcast.lane.b32.xlu1 %v389_v42, 264  ;;  %391 = vbcast.lane.b32.xlu0 %v389_v42, 256 }
  0x81   : > { %403 = vbcast.lane.b32.xlu1 %v389_v42, 280  ;;  %399 = vbcast.lane.b32.xlu0 %v389_v42, 272  ;;  %v598_v42 = vrot.slane %v4627_v51, %v4596_v30 }
  0x85   : > { %414 = vbcast.lane.b32.xlu1 %v408_v43, 264  ;;  %410 = vbcast.lane.b32.xlu0 %v408_v43, 256 }
  0x89   : > { %422 = vbcast.lane.b32.xlu1 %v408_v43, 280  ;;  %418 = vbcast.lane.b32.xlu0 %v408_v43, 272  ;;  %v147_v43 = vadd.f32 %v4607_v37, %v4605_v36 }
  0x8b   : > { %v4711_v48 = vmul.f32 0.5, %v147_v43 }
  0x8d   : > { %433 = vbcast.lane.b32.xlu1 %v427_v44, 264  ;;  %429 = vbcast.lane.b32.xlu0 %v427_v44, 256  ;;  %v617_v51 = vrot.slane %v4711_v48, %v4564_v11  ;;  %v655_v8 = vrot.slane %v4711_v48, %v4572_v16  ;;  %v693_v16 = vrot.slane %v4711_v48, %v4580_v20 }
  0x8e   : > { %v712_v11 = vrot.slane %v4711_v48, %v4584_v22  ;;  %v731_v7 = vrot.slane %v4711_v48, %v4588_v24 }
  0x8f   : > { %v4616_v45 = vpop.permute.xlu1 %171  ;;  %v4618_v46 = vpop.permute.xlu0 %163 }
  0x91   : > { %441 = vbcast.lane.b32.xlu1 %v427_v44, 280  ;;  %437 = vbcast.lane.b32.xlu0 %v427_v44, 272 }
  0x93   : > { %v4623_v49 = vpop.permute.xlu1 %175  ;;  %v4625_v50 = vpop.permute.xlu0 %167 }
  0x94   : > { %6990 = vst [vmem:[#allocation18_spill] sm:$0xff] %v4623_v49 }
  0x95   : > { %452 = vbcast.lane.b32.xlu1 %v446_v47, 264  ;;  %448 = vbcast.lane.b32.xlu0 %v446_v47, 256 }
  0x97   : > { %v4629_v52 = vpop.permute.xlu1 %186  ;;  %v4631_v53 = vpop.permute.xlu0 %182 }
  0x99   : > { %460 = vbcast.lane.b32.xlu1 %v446_v47, 280  ;;  %456 = vbcast.lane.b32.xlu0 %v446_v47, 272 }
  0x9b   : > { %v4635_v55 = vpop.permute.xlu1 %194  ;;  %v4637_v56 = vpop.permute.xlu0 %190 }
  0x9c   : > { %6991 = vst [vmem:[#allocation19_spill] sm:$0xff] %v4635_v55 }
  0x9d   : > { %471 = vbcast.lane.b32.xlu1 %v465_v54, 264  ;;  %467 = vbcast.lane.b32.xlu0 %v465_v54, 256 }
  0x9f   : > { %v4639_v57 = vpop.permute.xlu1 %205  ;;  %v4641_v58 = vpop.permute.xlu0 %201 }
  0xa1   : > { %479 = vbcast.lane.b32.xlu1 %v465_v54, 280  ;;  %475 = vbcast.lane.b32.xlu0 %v465_v54, 272 }
  0xa3   : > { %v4645_v60 = vpop.permute.xlu1 %213  ;;  %v4647_v61 = vpop.permute.xlu0 %209 }
  0xa4   : > { %6992 = vst [vmem:[#allocation20_spill] sm:$0xff] %v4645_v60 }
  0xa5   : > { %490 = vbcast.lane.b32.xlu1 %v484_v59, 264  ;;  %486 = vbcast.lane.b32.xlu0 %v484_v59, 256 }
  0xa7   : > { %v4649_v62 = vpop.permute.xlu1 %224  ;;  %v4651_v63 = vpop.permute.xlu0 %220 }
  0xa9   : > { %498 = vbcast.lane.b32.xlu1 %v484_v59, 280  ;;  %494 = vbcast.lane.b32.xlu0 %v484_v59, 272 }
  0xab   : > { %v4655_v1 = vpop.permute.xlu1 %232  ;;  %v4657_v2 = vpop.permute.xlu0 %228 }
  0xac   : > { %6993 = vst [vmem:[#allocation21_spill] sm:$0xff] %v4655_v1 }
  0xad   : > { %509 = vbcast.lane.b32.xlu1 %v503_v0, 264  ;;  %505 = vbcast.lane.b32.xlu0 %v503_v0, 256 }
  0xaf   : > { %v4659_v3 = vpop.permute.xlu1 %243  ;;  %v4661_v5 = vpop.permute.xlu0 %239 }
  0xb1   : > { %517 = vbcast.lane.b32.xlu1 %v503_v0, 280  ;;  %513 = vbcast.lane.b32.xlu0 %v503_v0, 272 }
  0xb3   : > { %v4665_v12 = vpop.permute.xlu1 %251  ;;  %v4667_v13 = vpop.permute.xlu0 %247 }
  0xb4   : > { %6994 = vst [vmem:[#allocation22_spill] sm:$0xff] %v4665_v12 }
  0xb5   : > { %528 = vbcast.lane.b32.xlu1 %v522_v10, 264  ;;  %524 = vbcast.lane.b32.xlu0 %v522_v10, 256 }
  0xb7   : > { %v4669_v15 = vpop.permute.xlu1 %262  ;;  %v4671_v17 = vpop.permute.xlu0 %258 }
  0xb9   : > { %536 = vbcast.lane.b32.xlu1 %v522_v10, 280  ;;  %532 = vbcast.lane.b32.xlu0 %v522_v10, 272 }
  0xbb   : > { %v4675_v21 = vpop.permute.xlu1 %270  ;;  %v4677_v23 = vpop.permute.xlu0 %266 }
  0xbc   : > { %6995 = vst [vmem:[#allocation23_spill] sm:$0xff] %v4675_v21  ;;  %v4487_v21 = vmov 1983009808  }
  0xbd   : > { %547 = vbcast.lane.b32.xlu1 %v541_v19, 264  ;;  %543 = vbcast.lane.b32.xlu0 %v541_v19, 256  ;;  %v834_v12 = vunpack.c.l.s4 %v4487_v21 }
  0xbf   : > { %v4679_v25 = vpop.permute.xlu1 %281  ;;  %v4681_v26 = vpop.permute.xlu0 %277  ;;  %v835_v55 = vunpack.c.0.s8 %v834_v12 }
  0xc1   : > { %555 = vbcast.lane.b32.xlu1 %v541_v19, 280  ;;  %551 = vbcast.lane.b32.xlu0 %v541_v19, 272  ;;  %v4838_v12 = vsub.s32 %v835_v55, %v4550_v4 }
  0xc3   : > { %v4685_v28 = vpop.permute.xlu1 %289  ;;  %v4687_v29 = vpop.permute.xlu0 %285 }
  0xc4   : > { %6996 = vst [vmem:[#allocation24_spill] sm:$0xff] %v4685_v28 }
  0xc5   : > { %566 = vbcast.lane.b32.xlu1 %v560_v27, 264  ;;  %562 = vbcast.lane.b32.xlu0 %v560_v27, 256 }
  0xc7   : > { %v4689_v33 = vpop.permute.xlu1 %300  ;;  %v4691_v34 = vpop.permute.xlu0 %296 }
  0xc9   : > { %574 = vbcast.lane.b32.xlu1 %v560_v27, 280  ;;  %570 = vbcast.lane.b32.xlu0 %v560_v27, 272 }
  0xcb   : > { %v4695_v38 = vpop.permute.xlu1 %308  ;;  %v4697_v39 = vpop.permute.xlu0 %304 }
  0xcc   : > { %6997 = vst [vmem:[#allocation25_spill] sm:$0xff] %v4695_v38 }
  0xcd   : > { %585 = vbcast.lane.b32.xlu1 %v579_v35, 264  ;;  %581 = vbcast.lane.b32.xlu0 %v579_v35, 256 }
  0xcf   : > { %v4699_v40 = vpop.permute.xlu1 %319  ;;  %v4701_v41 = vpop.permute.xlu0 %315 }
  0xd0   : > { %6998 = vst [vmem:[#allocation26_spill] sm:$0xff] %v4699_v40 }
  0xd1   : > { %593 = vbcast.lane.b32.xlu1 %v579_v35, 280  ;;  %589 = vbcast.lane.b32.xlu0 %v579_v35, 272  ;;  %v636_v35 = vrot.slane %v4711_v48, %v4568_v14 }
  0xd3   : > { %v4707_v44 = vpop.permute.xlu1 %327  ;;  %v4709_v47 = vpop.permute.xlu0 %323 }
  0xd4   : > { %6999 = vst [vmem:[#allocation27_spill] sm:$0xff] %v4707_v44  ;;  %7000 = vst [vmem:[#allocation28_spill] sm:$0xff] %v4709_v47  ;;  %v674_v44 = vrot.slane %v4711_v48, %v4576_v18 }
  0xd5   : > { %604 = vbcast.lane.b32.xlu1 %v598_v42, 264  ;;  %600 = vbcast.lane.b32.xlu0 %v598_v42, 256 }
  0xd7   : > { %v4713_v54 = vpop.permute.xlu1 %338  ;;  %v4715_v59 = vpop.permute.xlu0 %334 }
  0xd8   : > { %7001 = vst [vmem:[#allocation29_spill] sm:$0xff] %v4713_v54 }
  0xd9   : > { %612 = vbcast.lane.b32.xlu1 %v598_v42, 280  ;;  %608 = vbcast.lane.b32.xlu0 %v598_v42, 272 }
  0xdb   : > { %v4719_v0 = vpop.permute.xlu1 %346  ;;  %v4721_v10 = vpop.permute.xlu0 %342 }
  0xdc   : > { %7002 = vst [vmem:[#allocation30_spill] sm:$0xff] %v4719_v0  ;;  %7003 = vst [vmem:[#allocation31_spill] sm:$0xff] %v4721_v10 }
  0xdd   : > { %623 = vbcast.lane.b32.xlu1 %v617_v51, 264  ;;  %619 = vbcast.lane.b32.xlu0 %v617_v51, 256 }
  0xdf   : > { %v4723_v19 = vpop.permute.xlu1 %357  ;;  %v4725_v27 = vpop.permute.xlu0 %353 }
  0xe0   : > { %7004 = vst [vmem:[#allocation32_spill] sm:$0xff] %v4723_v19 }
  0xe1   : > { %631 = vbcast.lane.b32.xlu1 %v617_v51, 280  ;;  %627 = vbcast.lane.b32.xlu0 %v617_v51, 272 }
  0xe3   : > { %v4729_v43 = vpop.permute.xlu1 %365  ;;  %v4731_v42 = vpop.permute.xlu0 %361 }
  0xe4   : > { %7005 = vst [vmem:[#allocation33_spill] sm:$0xff] %v4729_v43  ;;  %7006 = vst [vmem:[#allocation34_spill] sm:$0xff] %v4731_v42 }
  0xe5   : > { %642 = vbcast.lane.b32.xlu1 %v636_v35, 264  ;;  %638 = vbcast.lane.b32.xlu0 %v636_v35, 256 }
  0xe7   : > { %v4733_v36 = vpop.permute.xlu1 %376  ;;  %v4735_v37 = vpop.permute.xlu0 %372 }
  0xe8   : > { %7007 = vst [vmem:[#allocation35_spill] sm:$0xff] %v4733_v36 }
  0xe9   : > { %650 = vbcast.lane.b32.xlu1 %v636_v35, 280  ;;  %646 = vbcast.lane.b32.xlu0 %v636_v35, 272 }
  0xeb   : > { %v4739_v9 = vpop.permute.xlu1 %384  ;;  %v4741_v51 = vpop.permute.xlu0 %380 }
  0xec   : > { %7008 = vst [vmem:[#allocation36_spill] sm:$0xff] %v4739_v9  ;;  %7009 = vst [vmem:[#allocation37_spill] sm:$0xff] %v4741_v51 }
  0xed   : > { %661 = vbcast.lane.b32.xlu1 %v655_v8, 264  ;;  %657 = vbcast.lane.b32.xlu0 %v655_v8, 256 }
  0xef   : > { %v4743_v31 = vpop.permute.xlu1 %395  ;;  %v4745_v32 = vpop.permute.xlu0 %391 }
  0xf0   : > { %7010 = vst [vmem:[#allocation38_spill] sm:$0xff] %v4743_v31  ;;  %7011 = vst [vmem:[#allocation39_spill] sm:$0xff] %v4745_v32 }
  0xf1   : > { %669 = vbcast.lane.b32.xlu1 %v655_v8, 280  ;;  %665 = vbcast.lane.b32.xlu0 %v655_v8, 272 }
  0xf3   : > { %v4749_v43 = vpop.permute.xlu1 %403  ;;  %v4751_v35 = vpop.permute.xlu0 %399 }
  0xf4   : > { %7012 = vst [vmem:[#allocation40_spill] sm:$0xff] %v4749_v43  ;;  %7013 = vst [vmem:[#allocation41_spill] sm:$0xff] %v4751_v35  ;;  %v750_v35 = vrot.slane %v4711_v48, %v4596_v30 }
  0xf5   : > { %680 = vbcast.lane.b32.xlu1 %v674_v44, 264  ;;  %676 = vbcast.lane.b32.xlu0 %v674_v44, 256 }
  0xf7   : > { %v4753_v0 = vpop.permute.xlu1 %414  ;;  %v4755_v9 = vpop.permute.xlu0 %410 }
  0xf8   : > { %7014 = vst [vmem:[#allocation42_spill] sm:$0xff] %v4753_v0  ;;  %7015 = vst [vmem:[#allocation43_spill] sm:$0xff] %v4755_v9 }
  0xf9   : > { %688 = vbcast.lane.b32.xlu1 %v674_v44, 280  ;;  %684 = vbcast.lane.b32.xlu0 %v674_v44, 272 }
  0xfb   : > { %v4759_v14 = vpop.permute.xlu1 %422  ;;  %v4761_v8 = vpop.permute.xlu0 %418 }
  0xfc   : > { %7016 = vst [vmem:[#allocation44_spill] sm:$0xff] %v4759_v14  ;;  %7017 = vst [vmem:[#allocation45_spill] sm:$0xff] %v4761_v8 }
  0xfd   : > { %699 = vbcast.lane.b32.xlu1 %v693_v16, 264  ;;  %695 = vbcast.lane.b32.xlu0 %v693_v16, 256 }
  0xff   : > { %v4763_v18 = vpop.permute.xlu1 %433  ;;  %v4765_v43 = vpop.permute.xlu0 %429 }
 0x100   : > { %7018 = vst [vmem:[#allocation46_spill] sm:$0xff] %v4763_v18  ;;  %7019 = vst [vmem:[#allocation47_spill] sm:$0xff] %v4765_v43 }
 0x101   : > { %707 = vbcast.lane.b32.xlu1 %v693_v16, 280  ;;  %703 = vbcast.lane.b32.xlu0 %v693_v16, 272 }
 0x103   : > { %v4769_v6 = vpop.permute.xlu1 %441  ;;  %v4771_v44 = vpop.permute.xlu0 %437 }
 0x104   : > { %7020 = vst [vmem:[#allocation48_spill] sm:$0xff] %v4769_v6  ;;  %7021 = vst [vmem:[#allocation49_spill] sm:$0xff] %v4771_v44 }
 0x105   : > { %718 = vbcast.lane.b32.xlu1 %v712_v11, 264  ;;  %714 = vbcast.lane.b32.xlu0 %v712_v11, 256 }
 0x107   : > { %v4773_v20 = vpop.permute.xlu1 %452  ;;  %v4775_v14 = vpop.permute.xlu0 %448 }
 0x108   : > { %7022 = vst [vmem:[#allocation50_spill] sm:$0xff] %v4773_v20  ;;  %7023 = vst [vmem:[#allocation51_spill] sm:$0xff] %v4775_v14 }
 0x109   : > { %726 = vbcast.lane.b32.xlu1 %v712_v11, 280  ;;  %722 = vbcast.lane.b32.xlu0 %v712_v11, 272 }
 0x10b   : > { %v4779_v47 = vpop.permute.xlu1 %460  ;;  %v4781_v16 = vpop.permute.xlu0 %456 }
 0x10c   : > { %7024 = vst [vmem:[#allocation52_spill] sm:$0xff] %v4779_v47  ;;  %7025 = vst [vmem:[#allocation53_spill] sm:$0xff] %v4781_v16 }
 0x10d   : > { %737 = vbcast.lane.b32.xlu1 %v731_v7, 264  ;;  %733 = vbcast.lane.b32.xlu0 %v731_v7, 256 }
 0x10f   : > { %v4783_v22 = vpop.permute.xlu1 %471  ;;  %v468_v6 = vpop.permute.xlu0 %467 }
 0x111   : > { %745 = vbcast.lane.b32.xlu1 %v731_v7, 280  ;;  %741 = vbcast.lane.b32.xlu0 %v731_v7, 272 }
 0x113   : > { %v4787_v42 = vpop.permute.xlu1 %479  ;;  %v4789_v11 = vpop.permute.xlu0 %475 }
 0x114   : > { %7026 = vst [vmem:[#allocation54_spill] sm:$0xff] %v4787_v42 }
 0x115   : > { %756 = vbcast.lane.b32.xlu1 %v750_v35, 264  ;;  %752 = vbcast.lane.b32.xlu0 %v750_v35, 256 }
 0x117   : > { %v4791_v24 = vpop.permute.xlu1 %490  ;;  %v487_v47 = vpop.permute.xlu0 %486 }
 0x118   : > { %v771_v49 = vsel %vm766_vm0, %v4631_v53, %v487_v47 }
 0x119   : > { %764 = vbcast.lane.b32.xlu1 %v750_v35, 280  ;;  %760 = vbcast.lane.b32.xlu0 %v750_v35, 272 }
 0x11b   : > { %v4793_v10 = vpop.permute.xlu1 %498  ;;  %v4795_v44 = vpop.permute.xlu0 %494 }
 0x11c   : > { %7027 = vst [vmem:[#allocation55_spill] sm:$0xff] %v4793_v10 }
 0x11f   : > { %v4797_v8 = vpop.permute.xlu1 %509  ;;  %v506_v7 = vpop.permute.xlu0 %505 }
 0x123   : > { %v4799_v51 = vpop.permute.xlu1 %517  ;;  %v4801_v48 = vpop.permute.xlu0 %513 }
 0x124   : > { %7028 = vst [vmem:[#allocation56_spill] sm:$0xff] %v4799_v51 }
 0x127   : > { %v4803_v30 = vpop.permute.xlu1 %528  ;;  %v525_v16 = vpop.permute.xlu0 %524 }
 0x128   : > { %v779_v51 = vsel %vm766_vm0, %v4651_v63, %v525_v16 }
 0x129   : > { %v847_v21 = vcombine.low %v771_v49, %v779_v51  ;;  %v848_v32 = vcombine.high %v771_v49, %v779_v51 }
 0x12b   : > { %v4805_v40 = vpop.permute.xlu1 %536  ;;  %v4807_v31 = vpop.permute.xlu0 %532 }
 0x12c   : > { %7029 = vst [vmem:[#allocation57_spill] sm:$0xff] %v4805_v40  ;;  %v767_v40 = vsel %vm766_vm0, %v4618_v46, %v468_v6 }
 0x12f   : > { %v4809_v19 = vpop.permute.xlu1 %547  ;;  %v544_v35 = vpop.permute.xlu0 %543 }
 0x130   : > { %v783_v53 = vsel %vm766_vm0, %v4661_v5, %v544_v35 }
 0x133   : > { %v4811_v54 = vpop.permute.xlu1 %555  ;;  %v4813_v18 = vpop.permute.xlu0 %551 }
 0x134   : > { %7030 = vst [vmem:[#allocation58_spill] sm:$0xff] %v4811_v54  ;;  %v4488_v54 = vmov 1934713408  }
 0x135   : > { %v898_v10 = vunpack.c.l.s4 %v4488_v54 }
 0x137   : > { %v4815_v0 = vpop.permute.xlu1 %566  ;;  %v563_v36 = vpop.permute.xlu0 %562  ;;  %v899_v16 = vunpack.c.0.s8 %v898_v10 }
 0x139   : > { %v4854_v5 = vsub.s32 %v899_v16, %v4550_v4 }
 0x13b   : > { %v4817_v20 = vpop.permute.xlu1 %574  ;;  %v4819_v28 = vpop.permute.xlu0 %570 }
 0x13c   : > { %7031 = vst [vmem:[#allocation59_spill] sm:$0xff] %v4817_v20  ;;  %v775_v20 = vsel %vm766_vm0, %v4641_v58, %v506_v7  ;;  %v855_v7 = vrot.slane %v847_v21, %v4838_v12 }
 0x13d   : > { %v831_v54 = vcombine.low %v767_v40, %v775_v20  ;;  %v832_v4 = vcombine.high %v767_v40, %v775_v20 }
 0x13f   : > { %v4821_v38 = vpop.permute.xlu1 %585  ;;  %v582_v60 = vpop.permute.xlu0 %581  ;;  %v839_v55 = vrot.slane %v831_v54, %v4838_v12  ;;  %v846_v20 = vrot.slane %v832_v4, %v4838_v12  ;;  %v788_v4 = vsel %vm766_vm0, %v4669_v15, %v4815_v0 }
 0x140   : > { %v791_v63 = vsel %vm766_vm0, %v4681_v26, %v582_v60 }
 0x141   : > { %v863_v14 = vcombine.low %v783_v53, %v791_v63  ;;  %v895_v35 = vcombine.low %v839_v55, %v855_v7  ;;  %v896_v54 = vcombine.high %v839_v55, %v855_v7  ;;  %v862_v7 = vrot.slane %v848_v32, %v4838_v12 }
 0x143   : > { %v4829_v42 = vpop.permute.xlu1 %593  ;;  %v4831_v1 = vpop.permute.xlu0 %589  ;;  %v871_v21 = vrot.slane %v863_v14, %v4838_v12 }
 0x144   : > { %7032 = vst [vmem:[#allocation60_spill] sm:$0xff] %v4829_v42  ;;  %v787_v42 = vsel %vm766_vm0, %v4671_v17, %v563_v36 }
 0x147   : > { %v605_v58 = vpop.permute.xlu1 %604  ;;  %v601_v47 = vpop.permute.xlu0 %600 }
 0x148   : > { %v795_v6 = vsel %vm766_vm0, %v4691_v34, %v601_v47 }
 0x149   : > { %v879_v46 = vcombine.low %v787_v42, %v795_v6  ;;  %v880_v36 = vcombine.high %v787_v42, %v795_v6  ;;  %v910_v6 = vrot.slane %v896_v54, %v4854_v5  ;;  %v780_v54 = vsel %vm766_vm0, %v4649_v62, %v4803_v30 }
 0x14a   : > { %v784_v30 = vsel %vm766_vm0, %v4659_v3, %v4809_v19 }
 0x14b   : > { %v887_v60 = vrot.slane %v879_v46, %v4838_v12  ;;  %v4849_v26 = vpop.permute.xlu1 %612  ;;  %v4851_v10 = vpop.permute.xlu0 %608  ;;  %v4862_v46 = vrot.slane %v895_v35, %v4854_v5  ;;  %v894_v16 = vrot.slane %v880_v36, %v4838_v12 }
 0x14c   : > { %7033 = vst [vmem:[#allocation61_spill] sm:$0xff] %v4849_v26  ;;  %v864_v26 = vcombine.high %v783_v53, %v791_v63 }
 0x14d   : > { %v927_v17 = vcombine.low %v871_v21, %v887_v60  ;;  %v928_v9 = vcombine.high %v871_v21, %v887_v60  ;;  %7034 = vst [vmem:[#allocation62_spill] sm:$0xff] %v4862_v46  ;;  %v911_v60 = vcombine.low %v846_v20, %v862_v7 }
 0x14e   : > { %v878_v63 = vrot.slane %v864_v26, %v4838_v12  ;;  %v796_v26 = vsel %vm766_vm0, %v4689_v33, %v605_v58  ;;  %v792_v33 = vsel %vm766_vm0, %v4679_v25, %v4821_v38  ;;  %v912_v38 = vcombine.high %v846_v20, %v862_v7 }
 0x14f   : > { %v4857_v34 = vpop.permute.xlu1 %623  ;;  %v4859_v47 = vpop.permute.xlu0 %619  ;;  %v4865_v43 = vrot.slane %v927_v17, %v4854_v5  ;;  %v942_v14 = vrot.slane %v928_v9, %v4854_v5  ;;  %v919_v17 = vrot.slane %v911_v60, %v4854_v5  ;;  %v1015_v58 = vcombine.low %v788_v4, %v796_v26 }
 0x150   : > { %v943_v40 = vcombine.low %v878_v63, %v894_v16  ;;  %v999_v0 = vcombine.low %v784_v30, %v792_v33  ;;  %v926_v20 = vrot.slane %v912_v38, %v4854_v5  ;;  %v1016_v38 = vcombine.high %v788_v4, %v796_v26 }
 0x151   : > { %7035 = vst [vmem:[#allocation63_spill] sm:$0xff] %v4865_v43  ;;  %v960_v49 = vcombine.high %v4862_v46, %v4865_v43  ;;  %v961_v9 = vcombine.low %v910_v6, %v942_v14  ;;  %v962_v35 = vcombine.high %v910_v6, %v942_v14  ;;  %v944_v14 = vcombine.high %v878_v63, %v894_v16 }
 0x152   : > { %v951_v32 = vrot.slane %v943_v40, %v4854_v5  ;;  %v772_v6 = vsel %vm766_vm0, %v4629_v52, %v4791_v24  ;;  %v776_v40 = vsel %vm766_vm0, %v4639_v57, %v4797_v8  ;;  %v768_v52 = vsel %vm766_vm0, %v4625_v50, %v4783_v22 }
 0x153   : > { %v4871_v42 = vpop.permute.xlu1 %631  ;;  %v4873_v51 = vpop.permute.xlu0 %627  ;;  %1921 = vrot.lane.b32.xlu0 %v960_v49, %s4489_s13  ;;  %v983_v25 = vcombine.low %v772_v6, %v780_v54  ;;  %v967_v57 = vcombine.low %v768_v52, %v776_v40  ;;  %v1023_v3 = vrot.slane %v1015_v58, %v4838_v12  ;;  %v958_v19 = vrot.slane %v944_v14, %v4854_v5 }
 0x154   : > { %v963_v49 = vcombine.low %v919_v17, %v951_v32  ;;  %v964_v8 = vcombine.high %v919_v17, %v951_v32  ;;  %v1000_v46 = vcombine.high %v784_v30, %v792_v33 }
 0x155   : > { %v991_v63 = vrot.slane %v983_v25, %v4838_v12  ;;  %v975_v22 = vrot.slane %v967_v57, %v4838_v12  ;;  %v965_v60 = vcombine.low %v926_v20, %v958_v19  ;;  %v966_v14 = vcombine.high %v926_v20, %v958_v19 }
 0x156   : > { %v968_v19 = vcombine.high %v768_v52, %v776_v40  ;;  %v1030_v20 = vrot.slane %v1016_v38, %v4838_v12  ;;  %v4980_v38 = vsel %vm766_vm0, %v4637_v56, %v4795_v44 }
 0x157   : > { %v4880_v53 = vpop.permute.xlu1 %642  ;;  %v4882_v55 = vpop.permute.xlu0 %638  ;;  %1929 = vrot.lane.b32.xlu0 %v961_v9, %s4490_s14  ;;  %v1007_v9 = vrot.slane %v999_v0, %v4838_v12  ;;  %v1031_v32 = vcombine.low %v975_v22, %v991_v63  ;;  %v1032_v43 = vcombine.high %v975_v22, %v991_v63 }
 0x158   : > { %v982_v33 = vrot.slane %v968_v19, %v4838_v12  ;;  %v5031_v19 = vsel %vm766_vm0, %v4715_v59, %v4882_v55  ;;  %v5049_v55 = vsel %vm766_vm0, %v4701_v41, %v4859_v47  ;;  %v7038_v47 = vld [vmem:[#allocation43_spill] sm:$0xff] }
 0x159   : > { %v1063_v50 = vcombine.low %v1007_v9, %v1023_v3  ;;  %v1039_v25 = vrot.slane %v1031_v32, %v4854_v5  ;;  %v1064_v0 = vcombine.high %v1007_v9, %v1023_v3  ;;  %v1046_v4 = vrot.slane %v1032_v43, %v4854_v5 }
 0x15a   : > { %v1014_v3 = vrot.slane %v1000_v46, %v4838_v12  ;;  %v4964_v43 = vsel %vm766_vm0, %v4697_v39, %v4851_v10  ;;  %v4985_v39 = vsel %vm766_vm0, %v4677_v23, %v4819_v28  ;;  %v4990_v10 = vsel %vm766_vm0, %v4687_v29, %v4831_v1 }
 0x15b   : > { %v4888_v21 = vpop.permute.xlu1 %650  ;;  %v4890_v36 = vpop.permute.xlu0 %646  ;;  %1937 = vrot.lane.b32.xlu0 %v962_v35, %s4491_s15  ;;  %v1071_v58 = vrot.slane %v1063_v50, %v4854_v5  ;;  %v1078_v50 = vrot.slane %v1064_v0, %v4854_v5  ;;  %v1151_v56 = vcombine.low %v4985_v39, %v4964_v43  ;;  %v5004_v23 = vsel %vm766_vm0, %v4667_v13, %v4813_v18 }
 0x15c   : > { %v5009_v28 = vsel %vm766_vm0, %v4616_v45, %v4789_v11  ;;  %v1135_v29 = vcombine.low %v5004_v23, %v4990_v10 }
 0x15d   : > { %v1095_v57 = vcombine.low %v1039_v25, %v1071_v58  ;;  %v1096_v32 = vcombine.high %v1039_v25, %v1071_v58  ;;  %v1097_v40 = vcombine.low %v1046_v4, %v1078_v50  ;;  %v1098_v9 = vcombine.high %v1046_v4, %v1078_v50 }
 0x15e   : > { %v4974_v25 = vsel %vm766_vm0, %v4657_v2, %v4807_v31  ;;  %v4995_v31 = vsel %vm766_vm0, %v4647_v61, %v4801_v48  ;;  %v1080_v2 = vcombine.high %v1014_v3, %v1030_v20  ;;  %v1159_v11 = vrot.slane %v1151_v56, %v4838_v12 }
 0x15f   : > { %v4912_v62 = vpop.permute.xlu1 %661  ;;  %v4914_v15 = vpop.permute.xlu0 %657  ;;  %1945 = vrot.lane.b32.xlu0 %v963_v49, %s4492_s16  ;;  %v1119_v0 = vcombine.low %v4980_v38, %v4974_v25  ;;  %v1103_v48 = vcombine.low %v5009_v28, %v4995_v31  ;;  %v1143_v50 = vrot.slane %v1135_v29, %v4838_v12 }
 0x160   : > { %v1094_v45 = vrot.slane %v1080_v2, %v4854_v5  ;;  %v7039_v2 = vld [vmem:[#allocation51_spill] sm:$0xff] }
 0x161   : > { %v1111_v59 = vrot.slane %v1103_v48, %v4838_v12 }
 0x163   : > { %v4924_v16 = vpop.permute.xlu1 %669  ;;  %v4926_v7 = vpop.permute.xlu0 %665  ;;  %1953 = vrot.lane.b32.xlu0 %v964_v8, %s4493_s17 }
 0x167   : > { %v4933_v35 = vpop.permute.xlu0 %676  ;;  %1961 = vrot.lane.b32.xlu0 %v965_v60, %s4494_s18  ;;  %v4936_v17 = vpop.permute.xlu1 %680  ;;  %v984_v60 = vcombine.high %v772_v6, %v780_v54  ;;  %v1079_v6 = vcombine.low %v1014_v3, %v1030_v20 }
 0x168   : > { %v5019_v18 = vsel %vm766_vm0, %v4735_v37, %v4933_v35  ;;  %v5036_v37 = vsel %vm766_vm0, %v4725_v27, %v4914_v15  ;;  %v7036_v27 = vld [vmem:[#allocation47_spill] sm:$0xff] }
 0x169   : > { %v998_v26 = vrot.slane %v984_v60, %v4838_v12  ;;  %v1087_v63 = vrot.slane %v1079_v6, %v4854_v5  ;;  %v5026_v60 = vrot.slane %v1119_v0, %v4838_v12  ;;  %v1375_v4 = vcombine.low %v5049_v55, %v5036_v37  ;;  %v7037_v6 = vld [vmem:[#allocation39_spill] sm:$0xff] }
 0x16b   : > { %v4939_v49 = vpop.permute.xlu0 %684  ;;  %1969 = vrot.lane.b32.xlu0 %v966_v14, %s4495_s19  ;;  %v4943_v8 = vpop.permute.xlu1 %688  ;;  %v1047_v52 = vcombine.low %v982_v33, %v998_v26  ;;  %v1048_v61 = vcombine.high %v982_v33, %v998_v26  ;;  %v1199_v26 = vcombine.low %v1143_v50, %v1159_v11  ;;  %v1167_v33 = vcombine.low %v1111_v59, %v5026_v60 }
 0x16d   : > { %v1055_v58 = vrot.slane %v1047_v52, %v4854_v5  ;;  %v1062_v20 = vrot.slane %v1048_v61, %v4854_v5  ;;  %v1207_v0 = vrot.slane %v1199_v26, %v4854_v5  ;;  %v1175_v29 = vrot.slane %v1167_v33, %v4854_v5 }
 0x16e   : > { %v1200_v26 = vcombine.high %v1143_v50, %v1159_v11 }
 0x16f   : > { %v4945_v24 = vpop.permute.xlu0 %695  ;;  %1977 = vrot.lane.b32.xlu0 %v1095_v57, %s4496_s20  ;;  %v4956_v54 = vpop.permute.xlu1 %699  ;;  %v1099_v44 = vcombine.low %v1055_v58, %v1087_v63  ;;  %v1100_v57 = vcombine.high %v1055_v58, %v1087_v63  ;;  %v1101_v3 = vcombine.low %v1062_v20, %v1094_v45  ;;  %v1232_v11 = vcombine.high %v1175_v29, %v1207_v0 }
 0x173   : > { %v4950_v14 = vpop.permute.xlu0 %703  ;;  %1985 = vrot.lane.b32.xlu0 %v1096_v32, %s4497_s21  ;;  %v4966_v46 = vpop.permute.xlu1 %707  ;;  %v1391_v32 = vcombine.low %v5031_v19, %v5019_v18 }
 0x175   : > { %v1399_v41 = vrot.slane %v1391_v32, %v4838_v12 }
 0x177   : > { %v715_v30 = vpop.permute.xlu0 %714  ;;  %1993 = vrot.lane.b32.xlu0 %v1097_v40, %s6949_s22  ;;  %v5021_v13 = vpop.permute.xlu1 %718  ;;  %v815_v40 = vsel %vm766_vm0, %v7037_v6, %v4945_v24  ;;  %v1383_v24 = vrot.slane %v1375_v4, %v4838_v12  ;;  %v1136_v4 = vcombine.high %v5004_v23, %v4990_v10  ;;  %v1104_v6 = vcombine.high %v5009_v28, %v4995_v31 }
 0x178   : > { %v1214_v28 = vrot.slane %v1200_v26, %v4854_v5 }
 0x179   : > { %v1439_v48 = vcombine.low %v1383_v24, %v1399_v41  ;;  %v1440_v10 = vcombine.high %v1383_v24, %v1399_v41  ;;  %v5103_v50 = vrot.slane %v1136_v4, %v4838_v12  ;;  %v7042_v24 = vld [vmem:[#allocation57_spill] sm:$0xff] }
 0x17b   : > { %v4968_v22 = vpop.permute.xlu0 %722  ;;  %2001 = vrot.lane.b32.xlu0 %v1098_v9, %s6947_s23  ;;  %v5059_v52 = vpop.permute.xlu1 %726  ;;  %v819_v9 = vsel %vm766_vm0, %v7038_v47, %v715_v30  ;;  %v1454_v41 = vrot.slane %v1440_v10, %v4854_v5 }
 0x17f   : > { %v734_v1 = vpop.permute.xlu0 %733  ;;  %2009 = vrot.lane.b32.xlu0 %v1099_v44, %s6951_s24  ;;  %v5075_v32 = vpop.permute.xlu1 %737 }
 0x180   : > { %v823_v15 = vsel %vm766_vm0, %v7036_v27, %v734_v1  ;;  %v1102_v1 = vcombine.high %v1062_v20, %v1094_v45  ;;  %v1120_v27 = vcombine.high %v4980_v38, %v4974_v25  ;;  %v1231_v20 = vcombine.low %v1175_v29, %v1207_v0  ;;  %v7044_v29 = vld [vmem:[#allocation54_spill] sm:$0xff] }
 0x181   : > { %v1407_v58 = vcombine.low %v815_v40, %v823_v15  ;;  %v1392_v38 = vcombine.high %v5031_v19, %v5019_v18  ;;  %v1408_v23 = vcombine.high %v815_v40, %v823_v15  ;;  %v5114_v15 = vrot.slane %v1104_v6, %v4838_v12 }
 0x182   : > { %v5097_v31 = vrot.slane %v1120_v27, %v4838_v12 }
 0x183   : > { %v5038_v35 = vpop.permute.xlu0 %741  ;;  %2017 = vrot.lane.b32.xlu0 %v1100_v57, %s6953_s25  ;;  %v1415_v30 = vrot.slane %v1407_v58, %v4838_v12  ;;  %v1152_v57 = vcombine.high %v4985_v39, %v4964_v43  ;;  %v5085_v43 = vrot.slane %v1439_v48, %v4854_v5  ;;  %v5107_v47 = vpop.permute.xlu1 %745  ;;  %v7045_v48 = vld [vmem:[#allocation18_spill] sm:$0xff] }
 0x185   : > { %7040 = vst [vmem:[#allocation47_spill] sm:$0xff] %v5085_v43  ;;  %v5092_v25 = vrot.slane %v1152_v57, %v4838_v12 }
 0x187   : > { %v753_v63 = vpop.permute.xlu0 %752  ;;  %2025 = vrot.lane.b32.xlu0 %v1101_v3, %s4502_s26  ;;  %v757_v26 = vpop.permute.xlu1 %756 }
 0x188   : > { %v827_v56 = vsel %vm766_vm0, %v7039_v2, %v753_v63  ;;  %v1168_v63 = vcombine.high %v1111_v59, %v5026_v60  ;;  %v1376_v59 = vcombine.high %v5049_v55, %v5036_v37  ;;  %v1215_v37 = vcombine.low %v5103_v50, %v5092_v25 }
 0x189   : > { %v1423_v44 = vcombine.low %v819_v9, %v827_v56  ;;  %v1424_v3 = vcombine.high %v819_v9, %v827_v56  ;;  %v5122_v55 = vrot.slane %v1392_v38, %v4838_v12  ;;  %v1422_v9 = vrot.slane %v1408_v23, %v4838_v12  ;;  %v7051_v38 = vld [vmem:[#allocation25_spill] sm:$0xff] }
 0x18a   : > { %v1182_v40 = vrot.slane %v1168_v63, %v4854_v5  ;;  %v1183_v2 = vcombine.low %v5114_v15, %v5097_v31  ;;  %v5129_v56 = vrot.slane %v1376_v59, %v4838_v12  ;;  %v1223_v57 = vrot.slane %v1215_v37, %v4854_v5  ;;  %v7050_v63 = vld [vmem:[#allocation61_spill] sm:$0xff] }
 0x18b   : > { %v1431_v61 = vrot.slane %v1423_v44, %v4838_v12  ;;  %2033 = vrot.lane.b32.xlu0 %v1102_v1, %s4503_s27  ;;  %v5110_v18 = vrot.slane %v1424_v3, %v4838_v12  ;;  %v7043_v1 = vld [vmem:[#allocation21_spill] sm:$0xff]  ;;  %v7048_v3 = vld [vmem:[#allocation56_spill] sm:$0xff]  ;;  %v5160_v10 = vsel %vm766_vm0, %v7051_v38, %v7050_v63 }
 0x18c   : > { %v1233_v58 = vcombine.low %v1182_v40, %v1214_v28  ;;  %v1455_v27 = vcombine.low %v5129_v56, %v5122_v55  ;;  %v1234_v23 = vcombine.high %v1182_v40, %v1214_v28  ;;  %v7057_v28 = vld [vmem:[#allocation24_spill] sm:$0xff] }
 0x18d   : > { %v1471_v45 = vcombine.low %v1415_v30, %v1431_v61  ;;  %v1472_v33 = vcombine.high %v1415_v30, %v1431_v61  ;;  %v1487_v44 = vcombine.low %v1422_v9, %v5110_v18  ;;  %v5135_v61 = vsel %vm766_vm0, %v7043_v1, %v7042_v24  ;;  %v7054_v1 = vld [vmem:[#allocation59_spill] sm:$0xff] }
 0x18e   : > { %v5141_v30 = vsel %vm766_vm0, %v7045_v48, %v7044_v29  ;;  %v7055_v29 = vld [vmem:[#allocation23_spill] sm:$0xff] }
 0x18f   : > { %v5088_v39 = vrot.slane %v1471_v45, %v4854_v5  ;;  %2041 = vrot.lane.b32.xlu0 %v1231_v20, %s4504_s28  ;;  %v1486_v19 = vrot.slane %v1472_v33, %v4854_v5  ;;  %v7046_v45 = vld [vmem:[#allocation55_spill] sm:$0xff]  ;;  %v7049_v33 = vld [vmem:[#allocation20_spill] sm:$0xff]  ;;  %v1495_v59 = vrot.slane %v1487_v44, %v4854_v5  ;;  %v5174_v48 = vsel %vm766_vm0, %v7055_v29, %v7054_v1 }
 0x190   : > { %v7047_v20 = vld [vmem:[#allocation19_spill] sm:$0xff]  ;;  %v5155_v6 = vsel %vm766_vm0, %v7049_v33, %v7048_v3  ;;  %v1463_v44 = vrot.slane %v1455_v27, %v4854_v5  ;;  %v1488_v27 = vcombine.high %v1422_v9, %v5110_v18  ;;  %v7063_v1 = vld [vmem:[#allocation32_spill] sm:$0xff]  ;;  %v1456_v9 = vcombine.high %v5129_v56, %v5122_v55 }
 0x191   : > { %7041 = vst [vmem:[#allocation39_spill] sm:$0xff] %v5088_v39  ;;  %v1504_v60 = vcombine.high %v5085_v43, %v5088_v39  ;;  %v1505_v0 = vcombine.low %v1454_v41, %v1486_v19  ;;  %v5150_v4 = vsel %vm766_vm0, %v7047_v20, %v7046_v45  ;;  %v1506_v37 = vcombine.high %v1454_v41, %v1486_v19  ;;  %v7056_v45 = vld [vmem:[#allocation60_spill] sm:$0xff]  ;;  %v7058_v20 = vld [vmem:[#allocation50_spill] sm:$0xff]  ;;  %v7059_v33 = vld [vmem:[#allocation35_spill] sm:$0xff] }
 0x192   : > { %v5179_v40 = vsel %vm766_vm0, %v7057_v28, %v7056_v45  ;;  %v1287_v19 = vcombine.low %v5174_v48, %v5160_v10  ;;  %v1216_v41 = vcombine.high %v5103_v50, %v5092_v25  ;;  %v5195_v63 = vsel %vm766_vm0, %v7059_v33, %v4936_v17  ;;  %v7065_v28 = vld [vmem:[#allocation26_spill] sm:$0xff] }
 0x193   : > { %2049 = vrot.lane.b32.xlu0 %v1232_v11, %s4505_s29  ;;  %1923 = vrot.lane.b32.xlu1 %v1504_v60, %s4489_s13  ;;  %v1255_v11 = vcombine.low %v5150_v4, %v5135_v61  ;;  %v1191_v60 = vrot.slane %v1183_v2, %v4854_v5  ;;  %v5183_v2 = vsel %vm766_vm0, %v7058_v20, %v757_v26  ;;  %v7060_v26 = vld [vmem:[#allocation42_spill] sm:$0xff] }
 0x194   : > { %v5200_v38 = vsel %vm766_vm0, %v7060_v26, %v5021_v13  ;;  %v1184_v50 = vcombine.high %v5114_v15, %v5097_v31  ;;  %v5224_v29 = vsel %vm766_vm0, %v7063_v1, %v4912_v62  ;;  %v7064_v31 = vld [vmem:[#allocation38_spill] sm:$0xff]  ;;  %v1239_v18 = vcombine.low %v5141_v30, %v5155_v6 }
 0x195   : > { %v1235_v3 = vcombine.low %v1191_v60, %v1223_v57  ;;  %v1559_v17 = vcombine.low %v5200_v38, %v5183_v2  ;;  %v5229_v15 = vsel %vm766_vm0, %v7064_v31, %v4956_v54  ;;  %v1295_v54 = vrot.slane %v1287_v19, %v4838_v12 }
 0x196   : > { %v1230_v45 = vrot.slane %v1216_v41, %v4854_v5  ;;  %v5246_v20 = vsel %vm766_vm0, %v7065_v28, %v4857_v34  ;;  %v1502_v56 = vrot.slane %v1488_v27, %v4854_v5  ;;  %v1508_v26 = vcombine.high %v1463_v44, %v1495_v59 }
 0x197   : > { %2057 = vrot.lane.b32.xlu0 %v1233_v58, %s4506_s30  ;;  %1931 = vrot.lane.b32.xlu1 %v1505_v0, %s4490_s14  ;;  %v7052_v58 = vld [vmem:[#allocation58_spill] sm:$0xff]  ;;  %v1511_v33 = vcombine.low %v5246_v20, %v5224_v29  ;;  %v1567_v55 = vrot.slane %v1559_v17, %v4838_v12  ;;  %v1198_v19 = vrot.slane %v1184_v50, %v4854_v5 }
 0x198   : > { %v7053_v0 = vld [vmem:[#allocation22_spill] sm:$0xff]  ;;  %v1247_v17 = vrot.slane %v1239_v18, %v4838_v12 }
 0x199   : > { %v5169_v24 = vsel %vm766_vm0, %v7053_v0, %v7052_v58  ;;  %v7062_v0 = vld [vmem:[#allocation29_spill] sm:$0xff]  ;;  %v1238_v1 = vcombine.high %v1198_v19, %v1230_v45 }
 0x19a   : > { %v1271_v13 = vcombine.low %v5169_v24, %v5179_v40 }
 0x19b   : > { %2065 = vrot.lane.b32.xlu0 %v1234_v23, %s4507_s2  ;;  %1939 = vrot.lane.b32.xlu1 %v1506_v37, %s4491_s15  ;;  %v7061_v23 = vld [vmem:[#allocation46_spill] sm:$0xff]  ;;  %v1507_v37 = vcombine.low %v1463_v44, %v1495_v59  ;;  %v1237_v44 = vcombine.low %v1198_v19, %v1230_v45  ;;  %v1560_v45 = vcombine.high %v5200_v38, %v5183_v2 }
 0x19c   : > { %v5205_v58 = vsel %vm766_vm0, %v7061_v23, %v5075_v32  ;;  %v5219_v32 = vsel %vm766_vm0, %v7062_v0, %v4880_v53  ;;  %v1263_v23 = vrot.slane %v1255_v11, %v4838_v12  ;;  %v1279_v41 = vrot.slane %v1271_v13, %v4838_v12 }
 0x19d   : > { %v1527_v53 = vcombine.low %v5219_v32, %v5195_v63  ;;  %v1543_v62 = vcombine.low %v5229_v15, %v5205_v58  ;;  %v1519_v11 = vrot.slane %v1511_v33, %v4838_v12  ;;  %v1240_v2 = vcombine.high %v5141_v30, %v5155_v6 }
 0x19e   : > { %v1335_v59 = vcombine.low %v1279_v41, %v1295_v54  ;;  %v1336_v28 = vcombine.high %v1279_v41, %v1295_v54  ;;  %v1304_v19 = vcombine.high %v1247_v17, %v1263_v23  ;;  %v1544_v54 = vcombine.high %v5229_v15, %v5205_v58 }
 0x19f   : > { %2073 = vrot.lane.b32.xlu0 %v1235_v3, %s4508_s3  ;;  %1947 = vrot.lane.b32.xlu1 %v1507_v37, %s4492_s16  ;;  %v1236_v3 = vcombine.high %v1191_v60, %v1223_v57  ;;  %v1535_v34 = vrot.slane %v1527_v53, %v4838_v12  ;;  %v1470_v57 = vrot.slane %v1456_v9, %v4854_v5 }
 0x1a0   : > { %v1551_v60 = vrot.slane %v1543_v62, %v4838_v12  ;;  %v1303_v37 = vcombine.low %v1247_v17, %v1263_v23  ;;  %v1343_v0 = vrot.slane %v1335_v59, %v4854_v5  ;;  %v1288_v62 = vcombine.high %v5174_v48, %v5160_v10 }
 0x1a1   : > { %v1509_v27 = vcombine.low %v1470_v57, %v1502_v56  ;;  %v1575_v13 = vcombine.low %v1519_v11, %v1535_v34  ;;  %v1510_v53 = vcombine.high %v1470_v57, %v1502_v56  ;;  %v1256_v56 = vcombine.high %v5150_v4, %v5135_v61 }
 0x1a2   : > { %v1607_v50 = vcombine.low %v1551_v60, %v1567_v55  ;;  %v1311_v18 = vrot.slane %v1303_v37, %v4854_v5  ;;  %v1608_v33 = vcombine.high %v1551_v60, %v1567_v55  ;;  %v1272_v57 = vcombine.high %v5169_v24, %v5179_v40 }
 0x1a3   : > { %2081 = vrot.lane.b32.xlu0 %v1236_v3, %s4509_s4  ;;  %1955 = vrot.lane.b32.xlu1 %v1508_v26, %s4493_s17  ;;  %v1583_v9 = vrot.slane %v1575_v13, %v4854_v5  ;;  %v1528_v10 = vcombine.high %v5219_v32, %v5195_v63  ;;  %v1576_v48 = vcombine.high %v1519_v11, %v1535_v34  ;;  %v761_v11 = vpop.permute.xlu0 %760 }
 0x1a4   : > { %v1615_v31 = vrot.slane %v1607_v50, %v4854_v5  ;;  %v1367_v3 = vcombine.low %v1311_v18, %v1343_v0  ;;  %v1302_v61 = vrot.slane %v1288_v62, %v4838_v12  ;;  %v1350_v4 = vrot.slane %v1336_v28, %v4854_v5  ;;  %v7068_v28 = vld [vmem:[#allocation45_spill] sm:$0xff] }
 0x1a5   : > { %v1368_v24 = vcombine.high %v1311_v18, %v1343_v0  ;;  %v1512_v40 = vcombine.high %v5246_v20, %v5224_v29  ;;  %v1574_v38 = vrot.slane %v1560_v45, %v4838_v12  ;;  %v1622_v63 = vrot.slane %v1608_v33, %v4854_v5  ;;  %v7069_v45 = vld [vmem:[#allocation49_spill] sm:$0xff] }
 0x1a6   : > { %v1639_v26 = vcombine.low %v1583_v9, %v1615_v31  ;;  %v1640_v32 = vcombine.high %v1583_v9, %v1615_v31  ;;  %v1270_v58 = vrot.slane %v1256_v56, %v4838_v12  ;;  %v1318_v15 = vrot.slane %v1304_v19, %v4854_v5  ;;  %v7067_v9 = vld [vmem:[#allocation37_spill] sm:$0xff] }
 0x1a7   : > { %2089 = vrot.lane.b32.xlu0 %v1237_v44, %s4510_s5  ;;  %1963 = vrot.lane.b32.xlu1 %v1509_v27, %s4494_s18  ;;  %v1286_v55 = vrot.slane %v1272_v57, %v4838_v12  ;;  %v1542_v30 = vrot.slane %v1528_v10, %v4838_v12  ;;  %v1590_v6 = vrot.slane %v1576_v48, %v4854_v5  ;;  %v7070_v48 = vld [vmem:[#allocation31_spill] sm:$0xff] }
 0x1a8   : > { %v1558_v29 = vrot.slane %v1544_v54, %v4838_v12  ;;  %v1254_v20 = vrot.slane %v1240_v2, %v4838_v12  ;;  %v1369_v41 = vcombine.low %v1318_v15, %v1350_v4  ;;  %v1526_v34 = vrot.slane %v1512_v40, %v4838_v12  ;;  %v7071_v54 = vld [vmem:[#allocation34_spill] sm:$0xff]  ;;  %v7073_v40 = vld [vmem:[#allocation28_spill] sm:$0xff] }
 0x1a9   : > { %v1351_v23 = vcombine.low %v1286_v55, %v1302_v61  ;;  %v1641_v17 = vcombine.low %v1590_v6, %v1622_v63  ;;  %v1370_v27 = vcombine.high %v1318_v15, %v1350_v4  ;;  %v1642_v13 = vcombine.high %v1590_v6, %v1622_v63 }
 0x1aa   : > { %v1623_v60 = vcombine.low %v1558_v29, %v1574_v38  ;;  %v1319_v59 = vcombine.low %v1254_v20, %v1270_v58  ;;  %v1591_v44 = vcombine.low %v1526_v34, %v1542_v30  ;;  %v5317_v62 = vsel %vm766_vm0, %v7067_v9, %v4939_v49 }
 0x1ab   : > { %2097 = vrot.lane.b32.xlu0 %v1238_v1, %s4511_s7  ;;  %1971 = vrot.lane.b32.xlu1 %v1510_v53, %s4495_s19  ;;  %v1359_v50 = vrot.slane %v1351_v23, %v4854_v5  ;;  %v7066_v1 = vld [vmem:[#allocation53_spill] sm:$0xff]  ;;  %v1352_v53 = vcombine.high %v1286_v55, %v1302_v61  ;;  %v5325_v33 = vsel %vm766_vm0, %v7069_v45, %v5038_v35  ;;  %v7074_v55 = vld [vmem:[#allocation3_spill] sm:$0xff] }
 0x1ac   : > { %v1631_v37 = vrot.slane %v1623_v60, %v4854_v5  ;;  %v1327_v0 = vrot.slane %v1319_v59, %v4854_v5  ;;  %v5309_v31 = vsel %vm766_vm0, %v7066_v1, %v761_v11  ;;  %v1599_v18 = vrot.slane %v1591_v44, %v4854_v5 }
 0x1ad   : > { %v1624_v56 = vcombine.high %v1558_v29, %v1574_v38  ;;  %v1320_v10 = vcombine.high %v1254_v20, %v1270_v58  ;;  %v805_v49 = vsel %vm766_vm0, %v7070_v48, %v4890_v36  ;;  %v5334_v2 = vsel %vm766_vm0, %v7071_v54, %v4926_v7 }
 0x1ae   : > { %v1643_v57 = vcombine.low %v1599_v18, %v1631_v37  ;;  %v1592_v61 = vcombine.high %v1526_v34, %v1542_v30  ;;  %v1663_v4 = vcombine.low %v805_v49, %v5317_v62  ;;  %v1366_v36 = vrot.slane %v1352_v53, %v4854_v5  ;;  %v7075_v30 = vld [vmem:[#allocation2_spill] sm:$0xff] }
 0x1af   : > { %2105 = vrot.lane.b32.xlu0 %v1367_v3, %s4512_s9  ;;  %1979 = vrot.lane.b32.xlu1 %v1639_v26, %s4496_s20  ;;  %v821_v3 = vsel %vm766_vm0, %v7068_v28, %v4968_v22  ;;  %v1371_v26 = vcombine.low %v1327_v0, %v1359_v50  ;;  %v7072_v22 = vld [vmem:[#allocation41_spill] sm:$0xff]  ;;  %v801_v7 = vsel %vm766_vm0, %v7073_v40, %v4873_v51 }
 0x1b0   : > { %v1695_v19 = vcombine.low %v821_v3, %v5309_v31  ;;  %v817_v35 = vsel %vm766_vm0, %v7072_v22, %v4950_v14  ;;  %v1372_v38 = vcombine.high %v1327_v0, %v1359_v50  ;;  %v1647_v63 = vcombine.low %v801_v7, %v5334_v2 }
 0x1b1   : > { %v1638_v14 = vrot.slane %v1624_v56, %v4854_v5  ;;  %v1644_v58 = vcombine.high %v1599_v18, %v1631_v37  ;;  %v1334_v15 = vrot.slane %v1320_v10, %v4854_v5  ;;  %v150_v6 = vsub.f32 %v7075_v30, %v7074_v55  ;;  %v7087_v30 = vld [vmem:[#allocation44_spill] sm:$0xff] }
 0x1b2   : > { %v1606_v29 = vrot.slane %v1592_v61, %v4854_v5  ;;  %v1671_v51 = vrot.slane %v1663_v4, %v4838_v12  ;;  %v1655_v34 = vrot.slane %v1647_v63, %v4838_v12  ;;  %v1696_v18 = vcombine.high %v821_v3, %v5309_v31  ;;  %v7081_v3 = vld [vmem:[#allocation7_spill] sm:$0xff] }
 0x1b3   : > { %2113 = vrot.lane.b32.xlu0 %v1368_v24, %s4513_s10  ;;  %1987 = vrot.lane.b32.xlu1 %v1640_v32, %s4497_s21  ;;  %v1679_v24 = vcombine.low %v817_v35, %v5325_v33  ;;  %v1703_v32 = vrot.slane %v1695_v19, %v4838_v12  ;;  %v5362_v59 = vmul.f32 0.5, %v150_v6  ;;  %v1374_v50 = vcombine.high %v1334_v15, %v1366_v36 }
 0x1b4   : > { %v1711_v44 = vcombine.low %v1655_v34, %v1671_v51  ;;  %v1646_v37 = vcombine.high %v1606_v29, %v1638_v14  ;;  %v1664_v45 = vcombine.high %v805_v49, %v5317_v62  ;;  %v1680_v56 = vcombine.high %v817_v35, %v5325_v33 }
 0x1b5   : > { %v1687_v20 = vrot.slane %v1679_v24, %v4838_v12  ;;  %v1710_v10 = vrot.slane %v1696_v18, %v4838_v12  ;;  %v5390_v54 = vrot.slane %v5362_v59, %v7081_v3  ;;  %v765_v24 = vpop.permute.xlu1 %764  ;;  %v822_v6 = vsel %vm766_vm0, %v7087_v30, %v5059_v52  ;;  %v7093_v18 = vld [vmem:[#allocation27_spill] sm:$0xff] }
 0x1b6   : > { %v1719_v1 = vrot.slane %v1711_v44, %v4854_v5  ;;  %v1678_v62 = vrot.slane %v1664_v45, %v4838_v12  ;;  %v1694_v49 = vrot.slane %v1680_v56, %v4838_v12 }
 0x1b7   : > { %2121 = vrot.lane.b32.xlu0 %v1369_v41, %s4514_s11  ;;  %1995 = vrot.lane.b32.xlu1 %v1641_v17, %s6949_s22  ;;  %s4517_s22 = smov 58   ;;  %v1373_v41 = vcombine.low %v1334_v15, %v1366_v36  ;;  %v1743_v60 = vcombine.low %v1687_v20, %v1703_v32  ;;  %v1645_v17 = vcombine.low %v1606_v29, %v1638_v14  ;;  %v7085_v14 = vld [vmem:[#allocation8_spill] sm:$0xff] }
 0x1b8   : > { %v1744_v9 = vcombine.high %v1687_v20, %v1703_v32  ;;  %v1759_v35 = vcombine.low %v1694_v49, %v1710_v10  ;;  %v5409_v32 = vrot.slane %v5362_v59, %v7085_v14  ;;  %v7086_v15 = vld [vmem:[#allocation36_spill] sm:$0xff] }
 0x1b9   : > { %v814_v55 = vsel %vm766_vm0, %v7086_v15, %v4943_v8  ;;  %v7088_v29 = vld [vmem:[#allocation48_spill] sm:$0xff] }
 0x1ba   : > { %v1758_v48 = vrot.slane %v1744_v9, %v4854_v5  ;;  %v1767_v40 = vrot.slane %v1759_v35, %v4854_v5  ;;  %v802_v9 = vsel %vm766_vm0, %v7093_v18, %v4871_v42 }
 0x1bb   : > { %2129 = vrot.lane.b32.xlu0 %v1370_v27, %s4515_s12  ;;  %2003 = vrot.lane.b32.xlu1 %v1642_v13, %s6947_s23  ;;  %s4516_s23 = smov 56   ;;  %v1751_v27 = vrot.slane %v1743_v60, %v4854_v5  ;;  %v7078_v13 = vld [vmem:[#allocation6_spill] sm:$0xff] }
 0x1bc   : > { %v5371_v0 = vrot.slane %v5362_v59, %v7078_v13 }
 0x1bd   : > { %v1775_v28 = vcombine.low %v1719_v1, %v1751_v27  ;;  %v1776_v31 = vcombine.high %v1719_v1, %v1751_v27  ;;  %v7092_v27 = vld [vmem:[#allocation40_spill] sm:$0xff] }
 0x1be   : > { %v818_v52 = vsel %vm766_vm0, %v7092_v27, %v4966_v46  ;;  %v7095_v46 = vld [vmem:[#allocation9_spill] sm:$0xff] }
 0x1bf   : > { %2137 = vrot.lane.b32.xlu0 %v1371_v26, %s4516_s23  ;;  %2011 = vrot.lane.b32.xlu1 %v1643_v57, %s6951_s24  ;;  %s4518_s24 = smov 60   ;;  %v1712_v26 = vcombine.high %v1655_v34, %v1671_v51  ;;  %v1648_v57 = vcombine.high %v801_v7, %v5334_v2  ;;  %v826_v51 = vsel %vm766_vm0, %v7088_v29, %v5107_v47 }
 0x1c0   : > { %v1760_v34 = vcombine.high %v1694_v49, %v1710_v10  ;;  %v1815_v1 = vcombine.low %v818_v52, %v826_v51  ;;  %v5445_v56 = vrot.slane %v5362_v59, %v7095_v46 }
 0x1c1   : > { %v1726_v33 = vrot.slane %v1712_v26, %v4854_v5  ;;  %v1662_v22 = vrot.slane %v1648_v57, %v4838_v12 }
 0x1c2   : > { %v1774_v45 = vrot.slane %v1760_v34, %v4854_v5  ;;  %v1823_v42 = vrot.slane %v1815_v1, %v4838_v12 }
 0x1c3   : > { %2145 = vrot.lane.b32.xlu0 %v1372_v38, %s4517_s22  ;;  %2019 = vrot.lane.b32.xlu1 %v1644_v58, %s6953_s25  ;;  %s4519_s25 = smov 62   ;;  %v1777_v61 = vcombine.low %v1726_v33, %v1758_v48  ;;  %v1727_v4 = vcombine.low %v1662_v22, %v1678_v62  ;;  %v1778_v7 = vcombine.high %v1726_v33, %v1758_v48  ;;  %v7084_v38 = vld [vmem:[#allocation52_spill] sm:$0xff] }
 0x1c4   : > { %v830_v63 = vsel %vm766_vm0, %v7084_v38, %v765_v24 }
 0x1c5   : > { %v5358_v23 = vpop.permute.xlu0 %1921  ;;  %v1735_v58 = vrot.slane %v1727_v4, %v4854_v5  ;;  %v7098_v4 = vld [vmem:[#allocation10_spill] sm:$0xff]  ;;  %v1832_v38 = vcombine.high %v822_v6, %v830_v63 }
 0x1c6   : > { %7076 = vst [vmem:[#allocation43_spill] sm:$0xff] %v5358_v23  ;;  %v5462_v24 = vrot.slane %v5362_v59, %v7098_v4 }
 0x1c7   : > { %2153 = vrot.lane.b32.xlu0 %v1373_v41, %s4518_s24  ;;  %2027 = vrot.lane.b32.xlu1 %v1645_v17, %s4502_s26  ;;  %v1831_v41 = vcombine.low %v822_v6, %v830_v63  ;;  %v1779_v60 = vcombine.low %v1735_v58, %v1767_v40  ;;  %v7090_v17 = vld [vmem:[#allocation30_spill] sm:$0xff]  ;;  %v1780_v26 = vcombine.high %v1735_v58, %v1767_v40  ;;  %v7101_v63 = vld [vmem:[#allocation11_spill] sm:$0xff] }
 0x1c8   : > { %v806_v44 = vsel %vm766_vm0, %v7090_v17, %v4888_v21  ;;  %v1846_v17 = vrot.slane %v1832_v38, %v4838_v12  ;;  %v5477_v6 = vrot.slane %v5362_v59, %v7101_v63  ;;  %v7109_v38 = vld [vmem:[#allocation14_spill] sm:$0xff] }
 0x1c9   : > { %v5365_v11 = vpop.permute.xlu0 %1929  ;;  %v1799_v47 = vcombine.low %v806_v44, %v814_v55  ;;  %v1800_v30 = vcombine.high %v806_v44, %v814_v55 }
 0x1ca   : > { %7077 = vst [vmem:[#allocation51_spill] sm:$0xff] %v5365_v11 }
 0x1cb   : > { %2161 = vrot.lane.b32.xlu0 %v1374_v50, %s4519_s25  ;;  %2035 = vrot.lane.b32.xlu1 %v1646_v37, %s4503_s27  ;;  %v7091_v50 = vld [vmem:[#allocation33_spill] sm:$0xff]  ;;  %v1728_v37 = vcombine.high %v1662_v22, %v1678_v62  ;;  %v1807_v57 = vrot.slane %v1799_v47, %v4838_v12  ;;  %v1814_v55 = vrot.slane %v1800_v30, %v4838_v12 }
 0x1cc   : > { %v810_v8 = vsel %vm766_vm0, %v7091_v50, %v4924_v16  ;;  %v1839_v16 = vrot.slane %v1831_v41, %v4838_v12  ;;  %v1816_v41 = vcombine.high %v818_v52, %v826_v51 }
 0x1cd   : > { %v5375_v53 = vpop.permute.xlu0 %1937  ;;  %v1742_v10 = vrot.slane %v1728_v37, %v4854_v5 }
 0x1ce   : > { %7079 = vst [vmem:[#allocation57_spill] sm:$0xff] %v5375_v53  ;;  %v1879_v62 = vcombine.low %v1823_v42, %v1839_v16  ;;  %v1880_v58 = vcombine.high %v1823_v42, %v1839_v16  ;;  %v1830_v44 = vrot.slane %v1816_v41, %v4838_v12  ;;  %v7104_v16 = vld [vmem:[#allocation12_spill] sm:$0xff] }
 0x1cf   : > { %2265 = vbcast.lane.b32.xlu0 %v5371_v0, 256  ;;  %2043 = vrot.lane.b32.xlu1 %v1775_v28, %s4504_s28  ;;  %v1783_v28 = vcombine.low %v802_v9, %v810_v8  ;;  %v1781_v33 = vcombine.low %v1742_v10, %v1774_v45 }
 0x1d0   : > { %v1887_v35 = vrot.slane %v1879_v62, %v4854_v5  ;;  %v1894_v50 = vrot.slane %v1880_v58, %v4854_v5  ;;  %v1895_v47 = vcombine.low %v1830_v44, %v1846_v17 }
 0x1d1   : > { %v5382_v19 = vpop.permute.xlu0 %1945 }
 0x1d2   : > { %7080 = vst [vmem:[#allocation21_spill] sm:$0xff] %v5382_v19 }
 0x1d3   : > { %2273 = vbcast.lane.b32.xlu0 %v5371_v0, 272  ;;  %2051 = vrot.lane.b32.xlu1 %v1776_v31, %s4505_s29  ;;  %v1791_v31 = vrot.slane %v1783_v28, %v4838_v12 }
 0x1d5   : > { %v5396_v2 = vpop.permute.xlu0 %1953  ;;  %v1847_v49 = vcombine.low %v1791_v31, %v1807_v57  ;;  %v1848_v29 = vcombine.high %v1791_v31, %v1807_v57 }
 0x1d6   : > { %7082 = vst [vmem:[#allocation54_spill] sm:$0xff] %v5396_v2 }
 0x1d7   : > { %2284 = vbcast.lane.b32.xlu0 %v5390_v54, 256  ;;  %2059 = vrot.lane.b32.xlu1 %v1777_v61, %s4506_s30  ;;  %v1782_v61 = vcombine.high %v1742_v10, %v1774_v45  ;;  %v1855_v40 = vrot.slane %v1847_v49, %v4854_v5  ;;  %v1862_v51 = vrot.slane %v1848_v29, %v4854_v5 }
 0x1d8   : > { %v5494_v45 = vrot.slane %v5362_v59, %v7104_v16  ;;  %v1896_v10 = vcombine.high %v1830_v44, %v1846_v17 }
 0x1d9   : > { %v5401_v36 = vpop.permute.xlu0 %1961  ;;  %v1911_v15 = vcombine.low %v1855_v40, %v1887_v35  ;;  %v1912_v27 = vcombine.high %v1855_v40, %v1887_v35  ;;  %v1913_v37 = vcombine.low %v1862_v51, %v1894_v50  ;;  %v1914_v28 = vcombine.high %v1862_v51, %v1894_v50  ;;  %v7107_v35 = vld [vmem:[#allocation13_spill] sm:$0xff]  ;;  %v7108_v40 = vld [vmem:[#allocation15_spill] sm:$0xff] }
 0x1da   : > { %7083 = vst [vmem:[#allocation18_spill] sm:$0xff] %v5401_v36  ;;  %v151_v58 = vsub.f32 %v7109_v38, %v7108_v40 }
 0x1db   : > { %2292 = vbcast.lane.b32.xlu0 %v5390_v54, 272  ;;  %2067 = vrot.lane.b32.xlu1 %v1778_v7, %s4507_s2 }
 0x1dd   : > { %v5422_v20 = vpop.permute.xlu0 %1969 }
 0x1de   : > { %7089 = vst [vmem:[#allocation55_spill] sm:$0xff] %v5422_v20 }
 0x1df   : > { %2303 = vbcast.lane.b32.xlu0 %v5409_v32, 256  ;;  %2075 = vrot.lane.b32.xlu1 %v1779_v60, %s4508_s3  ;;  %v1784_v60 = vcombine.high %v802_v9, %v810_v8  ;;  %v1903_v9 = vrot.slane %v1895_v47, %v4854_v5 }
 0x1e1   : > { %v5438_v21 = vpop.permute.xlu0 %1977  ;;  %v1798_v52 = vrot.slane %v1784_v60, %v4838_v12  ;;  %v5519_v60 = vmul.f32 0.5, %v151_v58 }
 0x1e2   : > { %7094 = vst [vmem:[#allocation19_spill] sm:$0xff] %v5438_v21 }
 0x1e3   : > { %2311 = vbcast.lane.b32.xlu0 %v5409_v32, 272  ;;  %2083 = vrot.lane.b32.xlu1 %v1780_v26, %s4509_s4  ;;  %v1863_v1 = vcombine.low %v1798_v52, %v1814_v55  ;;  %v1864_v31 = vcombine.high %v1798_v52, %v1814_v55  ;;  %v5545_v47 = vrot.slane %v5519_v60, %v7081_v3 }
 0x1e4   : > { %v5593_v58 = vrot.slane %v5519_v60, %v7098_v4  ;;  %v5609_v25 = vrot.slane %v5519_v60, %v7101_v63 }
 0x1e5   : > { %v5451_v48 = vpop.permute.xlu0 %1985  ;;  %v1871_v26 = vrot.slane %v1863_v1, %v4854_v5 }
 0x1e6   : > { %7096 = vst [vmem:[#allocation56_spill] sm:$0xff] %v5451_v48 }
 0x1e7   : > { %2322 = vbcast.lane.b32.xlu0 %v5445_v56, 256  ;;  %2091 = vrot.lane.b32.xlu1 %v1781_v33, %s4510_s5  ;;  %v1915_v42 = vcombine.low %v1871_v26, %v1903_v9  ;;  %v1910_v33 = vrot.slane %v1896_v10, %v4854_v5  ;;  %v1916_v49 = vcombine.high %v1871_v26, %v1903_v9 }
 0x1e8   : > { %v5561_v26 = vrot.slane %v5519_v60, %v7085_v14 }
 0x1e9   : > { %v5456_v22 = vpop.permute.xlu0 %1993 }
 0x1ea   : > { %7097 = vst [vmem:[#allocation20_spill] sm:$0xff] %v5456_v22 }
 0x1eb   : > { %2330 = vbcast.lane.b32.xlu0 %v5445_v56, 272  ;;  %2099 = vrot.lane.b32.xlu1 %v1782_v61, %s4511_s7  ;;  %v5508_v61 = vrot.slane %v5362_v59, %v7107_v35 }
 0x1ed   : > { %v5466_v7 = vpop.permute.xlu0 %2001 }
 0x1ee   : > { %7099 = vst [vmem:[#allocation61_spill] sm:$0xff] %v5466_v7 }
 0x1ef   : > { %2341 = vbcast.lane.b32.xlu0 %v5462_v24, 256  ;;  %2107 = vrot.lane.b32.xlu1 %v1911_v15, %s4512_s9  ;;  %v1878_v15 = vrot.slane %v1864_v31, %v4854_v5 }
 0x1f1   : > { %v5470_v34 = vpop.permute.xlu0 %2009  ;;  %v1917_v41 = vcombine.low %v1878_v15, %v1910_v33  ;;  %v1918_v50 = vcombine.high %v1878_v15, %v1910_v33  ;;  %v5577_v33 = vrot.slane %v5519_v60, %v7095_v46 }
 0x1f2   : > { %7100 = vst [vmem:[#allocation25_spill] sm:$0xff] %v5470_v34 }
 0x1f3   : > { %2349 = vbcast.lane.b32.xlu0 %v5462_v24, 272  ;;  %2115 = vrot.lane.b32.xlu1 %v1912_v27, %s4513_s10  ;;  %v5529_v27 = vrot.slane %v5519_v60, %v7078_v13 }
 0x1f5   : > { %v5483_v8 = vpop.permute.xlu0 %2017 }
 0x1f6   : > { %7102 = vst [vmem:[#allocation58_spill] sm:$0xff] %v5483_v8 }
 0x1f7   : > { %2360 = vbcast.lane.b32.xlu0 %v5477_v6, 256  ;;  %2123 = vrot.lane.b32.xlu1 %v1913_v37, %s4514_s11 }
 0x1f9   : > { %v5488_v18 = vpop.permute.xlu0 %2025 }
 0x1fa   : > { %7103 = vst [vmem:[#allocation22_spill] sm:$0xff] %v5488_v18 }
 0x1fb   : > { %2368 = vbcast.lane.b32.xlu0 %v5477_v6, 272  ;;  %2131 = vrot.lane.b32.xlu1 %v1914_v28, %s4515_s12 }
 0x1fd   : > { %v5498_v57 = vpop.permute.xlu0 %2033 }
 0x1fe   : > { %7105 = vst [vmem:[#allocation59_spill] sm:$0xff] %v5498_v57 }
 0x1ff   : > { %2379 = vbcast.lane.b32.xlu0 %v5494_v45, 256  ;;  %2139 = vrot.lane.b32.xlu1 %v1915_v42, %s4516_s23 }
 0x201   : > { %v5502_v62 = vpop.permute.xlu0 %2041 }
 0x202   : > { %7106 = vst [vmem:[#allocation23_spill] sm:$0xff] %v5502_v62 }
 0x203   : > { %2387 = vbcast.lane.b32.xlu0 %v5494_v45, 272  ;;  %2147 = vrot.lane.b32.xlu1 %v1916_v49, %s4517_s22 }
 0x205   : > { %v5514_v30 = vpop.permute.xlu1 %1923  ;;  %v5516_v29 = vpop.permute.xlu0 %2049 }
 0x206   : > { %7110 = vst [vmem:[#allocation60_spill] sm:$0xff] %v5514_v30  ;;  %7111 = vst [vmem:[#allocation24_spill] sm:$0xff] %v5516_v29 }
 0x207   : > { %2398 = vbcast.lane.b32.xlu0 %v5508_v61, 256  ;;  %2155 = vrot.lane.b32.xlu1 %v1917_v41, %s4518_s24 }
 0x209   : > { %v5522_v59 = vpop.permute.xlu0 %2057  ;;  %v5524_v17 = vpop.permute.xlu1 %1931 }
 0x20a   : > { %7112 = vst [vmem:[#allocation50_spill] sm:$0xff] %v5522_v59  ;;  %7113 = vst [vmem:[#allocation35_spill] sm:$0xff] %v5524_v17 }
 0x20b   : > { %2406 = vbcast.lane.b32.xlu0 %v5508_v61, 272  ;;  %2163 = vrot.lane.b32.xlu1 %v1918_v50, %s4519_s25 }
 0x20d   : > { %v5532_v55 = vpop.permute.xlu0 %2065  ;;  %v5534_v51 = vpop.permute.xlu1 %1939 }
 0x20e   : > { %7114 = vst [vmem:[#allocation42_spill] sm:$0xff] %v5532_v55  ;;  %7115 = vst [vmem:[#allocation46_spill] sm:$0xff] %v5534_v51 }
 0x20f   : > { %2417 = vbcast.lane.b32.xlu0 %v5529_v27, 256  ;;  %2269 = vbcast.lane.b32.xlu1 %v5371_v0, 264 }
 0x211   : > { %v5538_v44 = vpop.permute.xlu0 %2073  ;;  %v5540_v52 = vpop.permute.xlu1 %1947 }
 0x212   : > { %7116 = vst [vmem:[#allocation29_spill] sm:$0xff] %v5538_v44  ;;  %7117 = vst [vmem:[#allocation32_spill] sm:$0xff] %v5540_v52 }
 0x213   : > { %2425 = vbcast.lane.b32.xlu0 %v5529_v27, 272  ;;  %2277 = vbcast.lane.b32.xlu1 %v5371_v0, 280 }
 0x215   : > { %v5548_v37 = vpop.permute.xlu0 %2081  ;;  %v5550_v1 = vpop.permute.xlu1 %1955 }
 0x216   : > { %7118 = vst [vmem:[#allocation38_spill] sm:$0xff] %v5548_v37  ;;  %7119 = vst [vmem:[#allocation26_spill] sm:$0xff] %v5550_v1  ;;  %v7161_v1 = vld [vmem:[#allocation17_spill] sm:$0xff] }
 0x217   : > { %2436 = vbcast.lane.b32.xlu0 %v5545_v47, 256  ;;  %2288 = vbcast.lane.b32.xlu1 %v5390_v54, 264 }
 0x219   : > { %v5554_v9 = vpop.permute.xlu0 %2089  ;;  %v5556_v28 = vpop.permute.xlu1 %1963 }
 0x21a   : > { %7120 = vst [vmem:[#allocation53_spill] sm:$0xff] %v5554_v9  ;;  %7121 = vst [vmem:[#allocation37_spill] sm:$0xff] %v5556_v28 }
 0x21b   : > { %2444 = vbcast.lane.b32.xlu0 %v5545_v47, 272  ;;  %2296 = vbcast.lane.b32.xlu1 %v5390_v54, 280 }
 0x21d   : > { %v5564_v0 = vpop.permute.xlu0 %2097  ;;  %v5566_v10 = vpop.permute.xlu1 %1971 }
 0x21e   : > { %7122 = vst [vmem:[#allocation45_spill] sm:$0xff] %v5564_v0  ;;  %7123 = vst [vmem:[#allocation49_spill] sm:$0xff] %v5566_v10 }
 0x21f   : > { %2455 = vbcast.lane.b32.xlu0 %v5561_v26, 256  ;;  %2307 = vbcast.lane.b32.xlu1 %v5409_v32, 264 }
 0x221   : > { %v5570_v42 = vpop.permute.xlu0 %2105  ;;  %v5572_v31 = vpop.permute.xlu1 %1979 }
 0x222   : > { %7124 = vst [vmem:[#allocation31_spill] sm:$0xff] %v5570_v42  ;;  %7125 = vst [vmem:[#allocation34_spill] sm:$0xff] %v5572_v31 }
 0x223   : > { %2463 = vbcast.lane.b32.xlu0 %v5561_v26, 272  ;;  %2315 = vbcast.lane.b32.xlu1 %v5409_v32, 280 }
 0x225   : > { %v5580_v54 = vpop.permute.xlu0 %2113  ;;  %v5582_v49 = vpop.permute.xlu1 %1987 }
 0x226   : > { %7126 = vst [vmem:[#allocation41_spill] sm:$0xff] %v5580_v54  ;;  %7127 = vst [vmem:[#allocation28_spill] sm:$0xff] %v5582_v49 }
 0x227   : > { %2474 = vbcast.lane.b32.xlu0 %v5577_v33, 256  ;;  %2326 = vbcast.lane.b32.xlu1 %v5445_v56, 264 }
 0x229   : > { %v5586_v40 = vpop.permute.xlu0 %2121  ;;  %v5588_v38 = vpop.permute.xlu1 %1995 }
 0x22a   : > { %7128 = vst [vmem:[#allocation3_spill] sm:$0xff] %v5586_v40  ;;  %7129 = vst [vmem:[#allocation2_spill] sm:$0xff] %v5588_v38  ;;  %v7141_v40 = vld [vmem:[#allocation5_spill] sm:$0xff] }
 0x22b   : > { %2482 = vbcast.lane.b32.xlu0 %v5577_v33, 272  ;;  %2334 = vbcast.lane.b32.xlu1 %v5445_v56, 280 }
 0x22d   : > { %v5596_v32 = vpop.permute.xlu0 %2129  ;;  %v5598_v15 = vpop.permute.xlu1 %2003 }
 0x22e   : > { %7130 = vst [vmem:[#allocation6_spill] sm:$0xff] %v5596_v32  ;;  %7131 = vst [vmem:[#allocation7_spill] sm:$0xff] %v5598_v15 }
 0x22f   : > { %2493 = vbcast.lane.b32.xlu0 %v5593_v58, 256  ;;  %2345 = vbcast.lane.b32.xlu1 %v5462_v24, 264 }
 0x231   : > { %v5602_v41 = vpop.permute.xlu0 %2137  ;;  %v5604_v50 = vpop.permute.xlu1 %2011 }
 0x232   : > { %7132 = vst [vmem:[#allocation52_spill] sm:$0xff] %v5602_v41  ;;  %7133 = vst [vmem:[#allocation8_spill] sm:$0xff] %v5604_v50  ;;  %v5625_v50 = vrot.slane %v5519_v60, %v7104_v16 }
 0x233   : > { %2501 = vbcast.lane.b32.xlu0 %v5593_v58, 272  ;;  %2353 = vbcast.lane.b32.xlu1 %v5462_v24, 280 }
 0x235   : > { %v5612_v56 = vpop.permute.xlu0 %2145  ;;  %v5614_v32 = vpop.permute.xlu1 %2019 }
 0x236   : > { %7134 = vst [vmem:[#allocation36_spill] sm:$0xff] %v5612_v56  ;;  %7135 = vst [vmem:[#allocation44_spill] sm:$0xff] %v5614_v32 }
 0x237   : > { %2512 = vbcast.lane.b32.xlu0 %v5609_v25, 256  ;;  %2364 = vbcast.lane.b32.xlu1 %v5477_v6, 264 }
 0x239   : > { %v5618_v15 = vpop.permute.xlu0 %2153  ;;  %v5620_v41 = vpop.permute.xlu1 %2027 }
 0x23a   : > { %7136 = vst [vmem:[#allocation48_spill] sm:$0xff] %v5618_v15  ;;  %7137 = vst [vmem:[#allocation30_spill] sm:$0xff] %v5620_v41  ;;  %v5641_v41 = vrot.slane %v5519_v60, %v7107_v35 }
 0x23b   : > { %2520 = vbcast.lane.b32.xlu0 %v5609_v25, 272  ;;  %2372 = vbcast.lane.b32.xlu1 %v5477_v6, 280  ;;  %v7142_v6 = vld [vmem:[#allocation4_spill] sm:$0xff] }
 0x23c   : > { %v154_v38 = vsub.f32 %v7142_v6, %v7141_v40 }
 0x23d   : > { %v5628_v24 = vpop.permute.xlu0 %2161  ;;  %v5630_v56 = vpop.permute.xlu1 %2035 }
 0x23e   : > { %7138 = vst [vmem:[#allocation33_spill] sm:$0xff] %v5628_v24  ;;  %7139 = vst [vmem:[#allocation40_spill] sm:$0xff] %v5630_v56  ;;  %v5651_v54 = vmul.f32 0.5, %v154_v38 }
 0x23f   : > { %2531 = vbcast.lane.b32.xlu0 %v5625_v50, 256  ;;  %2383 = vbcast.lane.b32.xlu1 %v5494_v45, 264 }
 0x240   : > { %v5661_v60 = vrot.slane %v5651_v54, %v7078_v13  ;;  %v5839_v8 = vrot.slane %v5651_v54, %v7107_v35 }
 0x241   : > { %v5634_v32 = vpop.permute.xlu0 %2265  ;;  %v5636_v15 = vpop.permute.xlu1 %2043 }
 0x242   : > { %7140 = vst [vmem:[#allocation27_spill] sm:$0xff] %v5636_v15 }
 0x243   : > { %2539 = vbcast.lane.b32.xlu0 %v5625_v50, 272  ;;  %2391 = vbcast.lane.b32.xlu1 %v5494_v45, 280 }
 0x245   : > { %v5646_v24 = vpop.permute.xlu0 %2273  ;;  %v5648_v56 = vpop.permute.xlu1 %2051 }
 0x246   : > { %7143 = vst [vmem:[#allocation9_spill] sm:$0xff] %v5646_v24  ;;  %7144 = vst [vmem:[#allocation10_spill] sm:$0xff] %v5648_v56 }
 0x247   : > { %2550 = vbcast.lane.b32.xlu0 %v5641_v41, 256  ;;  %2402 = vbcast.lane.b32.xlu1 %v5508_v61, 264 }
 0x249   : > { %v5654_v15 = vpop.permute.xlu0 %2284  ;;  %v5656_v49 = vpop.permute.xlu1 %2059 }
 0x24a   : > { %7145 = vst [vmem:[#allocation11_spill] sm:$0xff] %v5656_v49  ;;  %v5677_v49 = vrot.slane %v5651_v54, %v7081_v3 }
 0x24b   : > { %2558 = vbcast.lane.b32.xlu0 %v5641_v41, 272  ;;  %2410 = vbcast.lane.b32.xlu1 %v5508_v61, 280 }
 0x24d   : > { %v5664_v45 = vpop.permute.xlu0 %2292  ;;  %v5666_v40 = vpop.permute.xlu1 %2067 }
 0x24e   : > { %7146 = vst [vmem:[#allocation12_spill] sm:$0xff] %v5664_v45  ;;  %7147 = vst [vmem:[#allocation13_spill] sm:$0xff] %v5666_v40 }
 0x24f   : > { %2569 = vbcast.lane.b32.xlu0 %v5661_v60, 256  ;;  %2421 = vbcast.lane.b32.xlu1 %v5529_v27, 264 }
 0x251   : > { %v5670_v38 = vpop.permute.xlu0 %2303  ;;  %v5672_v6 = vpop.permute.xlu1 %2075 }
 0x252   : > { %7148 = vst [vmem:[#allocation15_spill] sm:$0xff] %v5672_v6  ;;  %v5693_v6 = vrot.slane %v5651_v54, %v7085_v14 }
 0x253   : > { %2577 = vbcast.lane.b32.xlu0 %v5661_v60, 272  ;;  %2429 = vbcast.lane.b32.xlu1 %v5529_v27, 280 }
 0x255   : > { %v5680_v61 = vpop.permute.xlu0 %2311  ;;  %v5682_v56 = vpop.permute.xlu1 %2083 }
 0x256   : > { %7149 = vst [vmem:[#allocation14_spill] sm:$0xff] %v5680_v61  ;;  %7150 = vst [vmem:[#allocation5_spill] sm:$0xff] %v5682_v56 }
 0x257   : > { %2588 = vbcast.lane.b32.xlu0 %v5677_v49, 256  ;;  %2440 = vbcast.lane.b32.xlu1 %v5545_v47, 264 }
 0x259   : > { %v5686_v40 = vpop.permute.xlu0 %2322  ;;  %v5688_v42 = vpop.permute.xlu1 %2091 }
 0x25a   : > { %7151 = vst [vmem:[#allocation4_spill] sm:$0xff] %v5688_v42  ;;  %v5709_v42 = vrot.slane %v5651_v54, %v7095_v46 }
 0x25b   : > { %2596 = vbcast.lane.b32.xlu0 %v5677_v49, 272  ;;  %2448 = vbcast.lane.b32.xlu1 %v5545_v47, 280 }
 0x25d   : > { %v5696_v27 = vpop.permute.xlu0 %2330  ;;  %v5698_v31 = vpop.permute.xlu1 %2099 }
 0x25e   : > { %7152 = vst [vmem:[#allocation64_spill] sm:$0xff] %v5696_v27  ;;  %7153 = vst [vmem:[#allocation65_spill] sm:$0xff] %v5698_v31 }
 0x25f   : > { %2607 = vbcast.lane.b32.xlu0 %v5693_v6, 256  ;;  %2459 = vbcast.lane.b32.xlu1 %v5561_v26, 264 }
 0x261   : > { %v5702_v56 = vpop.permute.xlu0 %2341  ;;  %v5704_v0 = vpop.permute.xlu1 %2107 }
 0x262   : > { %7154 = vst [vmem:[#allocation66_spill] sm:$0xff] %v5704_v0  ;;  %v5725_v0 = vrot.slane %v5651_v54, %v7098_v4 }
 0x263   : > { %2615 = vbcast.lane.b32.xlu0 %v5693_v6, 272  ;;  %2467 = vbcast.lane.b32.xlu1 %v5561_v26, 280 }
 0x265   : > { %v5712_v47 = vpop.permute.xlu0 %2349  ;;  %v5714_v10 = vpop.permute.xlu1 %2115 }
 0x266   : > { %7155 = vst [vmem:[#allocation67_spill] sm:$0xff] %v5712_v47  ;;  %7156 = vst [vmem:[#allocation68_spill] sm:$0xff] %v5714_v10 }
 0x267   : > { %2626 = vbcast.lane.b32.xlu0 %v5709_v42, 256  ;;  %2478 = vbcast.lane.b32.xlu1 %v5577_v33, 264 }
 0x269   : > { %v5718_v31 = vpop.permute.xlu0 %2360  ;;  %v5720_v9 = vpop.permute.xlu1 %2123 }
 0x26a   : > { %7157 = vst [vmem:[#allocation69_spill] sm:$0xff] %v5720_v9  ;;  %v5741_v9 = vrot.slane %v5651_v54, %v7101_v63 }
 0x26b   : > { %2634 = vbcast.lane.b32.xlu0 %v5709_v42, 272  ;;  %2486 = vbcast.lane.b32.xlu1 %v5577_v33, 280  ;;  %v7162_v33 = vld [vmem:[#allocation16_spill] sm:$0xff] }
 0x26c   : > { %v155_v44 = vsub.f32 %v7162_v33, %v7161_v1 }
 0x26d   : > { %v5728_v26 = vpop.permute.xlu0 %2368  ;;  %v5730_v28 = vpop.permute.xlu1 %2131 }
 0x26e   : > { %7158 = vst [vmem:[#allocation70_spill] sm:$0xff] %v5728_v26  ;;  %7159 = vst [vmem:[#allocation71_spill] sm:$0xff] %v5730_v28  ;;  %v5755_v55 = vmul.f32 0.5, %v155_v44 }
 0x26f   : > { %2645 = vbcast.lane.b32.xlu0 %v5725_v0, 256  ;;  %2497 = vbcast.lane.b32.xlu1 %v5593_v58, 264 }
 0x270   : > { %v5765_v1 = vrot.slane %v5755_v55, %v7078_v13  ;;  %v5775_v44 = vrot.slane %v5755_v55, %v7085_v14  ;;  %v5795_v14 = vrot.slane %v5755_v55, %v7104_v16  ;;  %v5849_v7 = vrot.slane %v5755_v55, %v7081_v3 }
 0x271   : > { %v5734_v10 = vpop.permute.xlu0 %2379  ;;  %v5736_v37 = vpop.permute.xlu1 %2139  ;;  %v5867_v3 = vrot.slane %v5755_v55, %v7101_v63 }
 0x272   : > { %7160 = vst [vmem:[#allocation72_spill] sm:$0xff] %v5736_v37  ;;  %v5753_v37 = vrot.slane %v5651_v54, %v7104_v16  ;;  %v5859_v54 = vrot.slane %v5755_v55, %v7095_v46  ;;  %v5877_v46 = vrot.slane %v5755_v55, %v7107_v35 }
 0x273   : > { %2653 = vbcast.lane.b32.xlu0 %v5725_v0, 272  ;;  %2505 = vbcast.lane.b32.xlu1 %v5593_v58, 280 }
 0x275   : > { %v5746_v28 = vpop.permute.xlu0 %2387  ;;  %v5748_v52 = vpop.permute.xlu1 %2147 }
 0x276   : > { %7163 = vst [vmem:[#allocation17_spill] sm:$0xff] %v5746_v28  ;;  %7164 = vst [vmem:[#allocation16_spill] sm:$0xff] %v5748_v52 }
 0x277   : > { %2664 = vbcast.lane.b32.xlu0 %v5741_v9, 256  ;;  %2516 = vbcast.lane.b32.xlu1 %v5609_v25, 264 }
 0x279   : > { %v5758_v51 = vpop.permute.xlu0 %2398  ;;  %v5760_v59 = vpop.permute.xlu1 %2155 }
 0x27a   : > { %7165 = vst [vmem:[#allocation73_spill] sm:$0xff] %v5760_v59 }
 0x27b   : > { %2683 = vbcast.lane.b32.xlu0 %v5753_v37, 256  ;;  %2524 = vbcast.lane.b32.xlu1 %v5609_v25, 280  ;;  %v5785_v25 = vrot.slane %v5755_v55, %v7098_v4 }
 0x27d   : > { %v5768_v58 = vpop.permute.xlu0 %2406  ;;  %v5770_v33 = vpop.permute.xlu1 %2163 }
 0x27e   : > { %7166 = vst [vmem:[#allocation74_spill] sm:$0xff] %v5768_v58  ;;  %7167 = vst [vmem:[#allocation75_spill] sm:$0xff] %v5770_v33 }
 0x27f   : > { %2721 = vbcast.lane.b32.xlu0 %v5765_v1, 256  ;;  %2535 = vbcast.lane.b32.xlu1 %v5625_v50, 264 }
 0x281   : > { %v5778_v59 = vpop.permute.xlu0 %2417  ;;  %v5780_v52 = vpop.permute.xlu1 %2269 }
 0x283   : > { %2759 = vbcast.lane.b32.xlu0 %v5775_v44, 256  ;;  %2543 = vbcast.lane.b32.xlu1 %v5625_v50, 280 }
 0x285   : > { %v5788_v13 = vpop.permute.xlu0 %2425  ;;  %v5790_v33 = vpop.permute.xlu1 %2277 }
 0x286   : > { %7168 = vst [vmem:[#allocation76_spill] sm:$0xff] %v5788_v13  ;;  %7169 = vst [vmem:[#allocation77_spill] sm:$0xff] %v5790_v33 }
 0x287   : > { %2797 = vbcast.lane.b32.xlu0 %v5785_v25, 256  ;;  %2554 = vbcast.lane.b32.xlu1 %v5641_v41, 264 }
 0x289   : > { %v5798_v17 = vpop.permute.xlu0 %2436  ;;  %v5800_v29 = vpop.permute.xlu1 %2288 }
 0x28b   : > { %2835 = vbcast.lane.b32.xlu0 %v5795_v14, 256  ;;  %2562 = vbcast.lane.b32.xlu1 %v5641_v41, 280 }
 0x28d   : > { %v5804_v4 = vpop.permute.xlu0 %2444  ;;  %v5806_v50 = vpop.permute.xlu1 %2296 }
 0x28e   : > { %7170 = vst [vmem:[#allocation78_spill] sm:$0xff] %v5804_v4  ;;  %7171 = vst [vmem:[#allocation79_spill] sm:$0xff] %v5806_v50 }
 0x28f   : > { %2687 = vbcast.lane.b32.xlu0 %v5753_v37, 264  ;;  %2573 = vbcast.lane.b32.xlu1 %v5661_v60, 264 }
 0x291   : > { %v5810_v16 = vpop.permute.xlu0 %2455  ;;  %v5812_v39 = vpop.permute.xlu1 %2307 }
 0x293   : > { %2725 = vbcast.lane.b32.xlu0 %v5765_v1, 264  ;;  %2581 = vbcast.lane.b32.xlu1 %v5661_v60, 280 }
 0x295   : > { %v5816_v43 = vpop.permute.xlu0 %2463  ;;  %v5818_v30 = vpop.permute.xlu1 %2315 }
 0x296   : > { %7172 = vst [vmem:[#allocation80_spill] sm:$0xff] %v5816_v43  ;;  %7173 = vst [vmem:[#allocation81_spill] sm:$0xff] %v5818_v30 }
 0x297   : > { %2763 = vbcast.lane.b32.xlu0 %v5775_v44, 264  ;;  %2592 = vbcast.lane.b32.xlu1 %v5677_v49, 264 }
 0x299   : > { %v5822_v41 = vpop.permute.xlu0 %2474  ;;  %v5824_v62 = vpop.permute.xlu1 %2326 }
 0x29b   : > { %2801 = vbcast.lane.b32.xlu0 %v5785_v25, 264  ;;  %2600 = vbcast.lane.b32.xlu1 %v5677_v49, 280 }
 0x29d   : > { %v5828_v57 = vpop.permute.xlu1 %2334  ;;  %v5830_v18 = vpop.permute.xlu0 %2482 }
 0x29e   : > { %7174 = vst [vmem:[#allocation82_spill] sm:$0xff] %v5828_v57  ;;  %7175 = vst [vmem:[#allocation83_spill] sm:$0xff] %v5830_v18 }
 0x29f   : > { %2839 = vbcast.lane.b32.xlu0 %v5795_v14, 264  ;;  %2611 = vbcast.lane.b32.xlu1 %v5693_v6, 264 }
 0x2a1   : > { %v5834_v60 = vpop.permute.xlu1 %2345  ;;  %v5841_v34 = vpop.permute.xlu0 %2493 }
 0x2a3   : > { %2672 = vbcast.lane.b32.xlu0 %v5741_v9, 272  ;;  %2619 = vbcast.lane.b32.xlu1 %v5693_v6, 280 }
 0x2a5   : > { %v5844_v49 = vpop.permute.xlu1 %2353  ;;  %v5852_v22 = vpop.permute.xlu0 %2501 }
 0x2a6   : > { %7176 = vst [vmem:[#allocation84_spill] sm:$0xff] %v5844_v49  ;;  %7177 = vst [vmem:[#allocation85_spill] sm:$0xff] %v5852_v22 }
 0x2a7   : > { %2710 = vbcast.lane.b32.xlu0 %v5839_v8, 272  ;;  %2630 = vbcast.lane.b32.xlu1 %v5709_v42, 264 }
 0x2a9   : > { %v5854_v48 = vpop.permute.xlu1 %2364  ;;  %v5869_v21 = vpop.permute.xlu0 %2512 }
 0x2ab   : > { %2748 = vbcast.lane.b32.xlu0 %v5849_v7, 272  ;;  %2638 = vbcast.lane.b32.xlu1 %v5709_v42, 280 }
 0x2ad   : > { %v5862_v6 = vpop.permute.xlu1 %2372  ;;  %v5880_v42 = vpop.permute.xlu0 %2520 }
 0x2ae   : > { %7178 = vst [vmem:[#allocation86_spill] sm:$0xff] %v5862_v6  ;;  %7179 = vst [vmem:[#allocation87_spill] sm:$0xff] %v5880_v42 }
 0x2af   : > { %2786 = vbcast.lane.b32.xlu0 %v5859_v54, 272  ;;  %2649 = vbcast.lane.b32.xlu1 %v5725_v0, 264 }
 0x2b1   : > { %v5872_v20 = vpop.permute.xlu1 %2383  ;;  %v5889_v2 = vpop.permute.xlu0 %2531 }
 0x2b3   : > { %2824 = vbcast.lane.b32.xlu0 %v5867_v3, 272  ;;  %2657 = vbcast.lane.b32.xlu1 %v5725_v0, 280 }
 0x2b5   : > { %v5882_v36 = vpop.permute.xlu1 %2391  ;;  %v5896_v55 = vpop.permute.xlu0 %2539 }
 0x2b6   : > { %7180 = vst [vmem:[#allocation88_spill] sm:$0xff] %v5882_v36  ;;  %7182 = vst [vmem:[#allocation90_spill] sm:$0xff] %v5896_v55 }
 0x2b7   : > { %2862 = vbcast.lane.b32.xlu0 %v5877_v46, 272  ;;  %2668 = vbcast.lane.b32.xlu1 %v5741_v9, 264 }
 0x2b9   : > { %v5886_v63 = vpop.permute.xlu1 %2402  ;;  %v5905_v53 = vpop.permute.xlu0 %2550 }
 0x2bb   : > { %2695 = vbcast.lane.b32.xlu0 %v5753_v37, 280  ;;  %2702 = vbcast.lane.b32.xlu1 %v5839_v8, 256 }
 0x2bd   : > { %v5892_v35 = vpop.permute.xlu1 %2410  ;;  %v5912_v23 = vpop.permute.xlu0 %2558 }
 0x2be   : > { %7181 = vst [vmem:[#allocation89_spill] sm:$0xff] %v5892_v35  ;;  %7184 = vst [vmem:[#allocation92_spill] sm:$0xff] %v5912_v23 }
 0x2bf   : > { %2733 = vbcast.lane.b32.xlu0 %v5765_v1, 280  ;;  %2740 = vbcast.lane.b32.xlu1 %v5849_v7, 256 }
 0x2c1   : > { %v5898_v0 = vpop.permute.xlu1 %2421 }
 0x2c3   : > { %2771 = vbcast.lane.b32.xlu0 %v5775_v44, 280  ;;  %2778 = vbcast.lane.b32.xlu1 %v5859_v54, 256 }
 0x2c5   : > { %v5902_v19 = vpop.permute.xlu1 %2429 }
 0x2c6   : > { %7183 = vst [vmem:[#allocation91_spill] sm:$0xff] %v5902_v19  ;;  %v2570_v19 = vpop.permute.xlu0 %2569 }
 0x2c7   : > { %2809 = vbcast.lane.b32.xlu0 %v5785_v25, 280  ;;  %2816 = vbcast.lane.b32.xlu1 %v5867_v3, 256 }
 0x2c9   : > { %v5908_v11 = vpop.permute.xlu1 %2440 }
 0x2ca   : > { %v5923_v30 = vpop.permute.xlu0 %2577 }
 0x2cb   : > { %2847 = vbcast.lane.b32.xlu0 %v5795_v14, 280  ;;  %2854 = vbcast.lane.b32.xlu1 %v5877_v46, 256 }
 0x2cd   : > { %v5914_v49 = vpop.permute.xlu1 %2448 }
 0x2ce   : > { %7185 = vst [vmem:[#allocation93_spill] sm:$0xff] %v5914_v49  ;;  %v2589_v49 = vpop.permute.xlu0 %2588 }
 0x2cf   : > { %2706 = vbcast.lane.b32.xlu1 %v5839_v8, 264  ;;  %v2872_v47 = vsel %vm766_vm0, %v5654_v15, %v2589_v49 }
 0x2d1   : > { %v5917_v6 = vpop.permute.xlu1 %2459 }
 0x2d2   : > { %v5934_v57 = vpop.permute.xlu0 %2596 }
 0x2d3   : > { %2744 = vbcast.lane.b32.xlu1 %v5849_v7, 264  ;;  %7188 = vst [vmem:[#allocation96_spill] sm:$0xff] %v5934_v57 }
 0x2d5   : > { %v5920_v36 = vpop.permute.xlu1 %2467 }
 0x2d6   : > { %7186 = vst [vmem:[#allocation94_spill] sm:$0xff] %v5920_v36  ;;  %v2608_v13 = vpop.permute.xlu0 %2607 }
 0x2d7   : > { %2782 = vbcast.lane.b32.xlu1 %v5859_v54, 264 }
 0x2d9   : > { %v5925_v50 = vpop.permute.xlu1 %2478 }
 0x2db   : > { %2820 = vbcast.lane.b32.xlu1 %v5867_v3, 264 }
 0x2dd   : > { %v5928_v33 = vpop.permute.xlu1 %2486 }
 0x2de   : > { %7187 = vst [vmem:[#allocation95_spill] sm:$0xff] %v5928_v33  ;;  %v5945_v33 = vpop.permute.xlu0 %2615 }
 0x2df   : > { %2858 = vbcast.lane.b32.xlu1 %v5877_v46, 264  ;;  %7191 = vst [vmem:[#allocation99_spill] sm:$0xff] %v5945_v33  ;;  %v2868_v33 = vsel %vm766_vm0, %v5634_v32, %v2570_v19 }
 0x2e1   : > { %v5931_v35 = vpop.permute.xlu1 %2497 }
 0x2e3   : > { %2691 = vbcast.lane.b32.xlu1 %v5753_v37, 272 }
 0x2e5   : > { %v5936_v36 = vpop.permute.xlu1 %2505 }
 0x2e6   : > { %7189 = vst [vmem:[#allocation97_spill] sm:$0xff] %v5936_v36  ;;  %v2627_v36 = vpop.permute.xlu0 %2626 }
 0x2e7   : > { %2729 = vbcast.lane.b32.xlu1 %v5765_v1, 272 }
 0x2e9   : > { %v5939_v4 = vpop.permute.xlu1 %2516 }
 0x2eb   : > { %2767 = vbcast.lane.b32.xlu1 %v5775_v44, 272  ;;  %v5956_v44 = vpop.permute.xlu0 %2634 }
 0x2ec   : > { %7193 = vst [vmem:[#allocation101_spill] sm:$0xff] %v5956_v44 }
 0x2ed   : > { %v5942_v42 = vpop.permute.xlu1 %2524 }
 0x2ee   : > { %7190 = vst [vmem:[#allocation98_spill] sm:$0xff] %v5942_v42 }
 0x2ef   : > { %2805 = vbcast.lane.b32.xlu1 %v5785_v25, 272  ;;  %v2646_v43 = vpop.permute.xlu0 %2645 }
 0x2f1   : > { %v5947_v22 = vpop.permute.xlu1 %2535 }
 0x2f3   : > { %2843 = vbcast.lane.b32.xlu1 %v5795_v14, 272 }
 0x2f5   : > { %v5950_v37 = vpop.permute.xlu1 %2543 }
 0x2f6   : > { %7192 = vst [vmem:[#allocation100_spill] sm:$0xff] %v5950_v37 }
 0x2f7   : > { %2676 = vbcast.lane.b32.xlu1 %v5741_v9, 280  ;;  %v5967_v9 = vpop.permute.xlu0 %2653 }
 0x2f8   : > { %7196 = vst [vmem:[#allocation104_spill] sm:$0xff] %v5967_v9 }
 0x2f9   : > { %v5953_v1 = vpop.permute.xlu1 %2554 }
 0x2fb   : > { %2714 = vbcast.lane.b32.xlu1 %v5839_v8, 280 }
 0x2fd   : > { %v5958_v42 = vpop.permute.xlu1 %2562 }
 0x2fe   : > { %7194 = vst [vmem:[#allocation102_spill] sm:$0xff] %v5958_v42  ;;  %v2665_v42 = vpop.permute.xlu0 %2664 }
 0x2ff   : > { %2752 = vbcast.lane.b32.xlu1 %v5849_v7, 280 }
 0x301   : > { %v5961_v25 = vpop.permute.xlu1 %2573 }
 0x302   : > { %v2684_v7 = vpop.permute.xlu0 %2683 }
 0x303   : > { %2790 = vbcast.lane.b32.xlu1 %v5859_v54, 280 }
 0x305   : > { %v5964_v14 = vpop.permute.xlu1 %2581 }
 0x306   : > { %7195 = vst [vmem:[#allocation103_spill] sm:$0xff] %v5964_v14  ;;  %v2722_v54 = vpop.permute.xlu0 %2721 }
 0x307   : > { %2828 = vbcast.lane.b32.xlu1 %v5867_v3, 280 }
 0x309   : > { %v5969_v37 = vpop.permute.xlu1 %2592 }
 0x30a   : > { %v2760_v3 = vpop.permute.xlu0 %2759 }
 0x30b   : > { %2866 = vbcast.lane.b32.xlu1 %v5877_v46, 280  ;;  %v2880_v46 = vsel %vm766_vm0, %v5686_v40, %v2627_v36  ;;  %v2884_v36 = vsel %vm766_vm0, %v5702_v56, %v2646_v43 }
 0x30c   : > { %v2948_v61 = vcombine.low %v2872_v47, %v2880_v46  ;;  %v2949_v56 = vcombine.high %v2872_v47, %v2880_v46  ;;  %v6023_v46 = vsel %vm766_vm0, %v5810_v16, %v2760_v3 }
 0x30d   : > { %v5972_v8 = vpop.permute.xlu1 %2600 }
 0x30e   : > { %7197 = vst [vmem:[#allocation105_spill] sm:$0xff] %v5972_v8  ;;  %v2798_v8 = vpop.permute.xlu0 %2797  ;;  %v2956_v15 = vrot.slane %v2948_v61, %v4838_v12  ;;  %v6019_v47 = vrot.slane %v2949_v56, %v4838_v12 }
 0x311   : > { %v5974_v23 = vpop.permute.xlu1 %2611 }
 0x312   : > { %v2836_v45 = vpop.permute.xlu0 %2835 }
 0x315   : > { %v5976_v18 = vpop.permute.xlu1 %2619 }
 0x316   : > { %7198 = vst [vmem:[#allocation106_spill] sm:$0xff] %v5976_v18  ;;  %v2876_v18 = vsel %vm766_vm0, %v5670_v38, %v2608_v13  ;;  %v2888_v38 = vsel %vm766_vm0, %v5718_v31, %v2665_v42  ;;  %v2688_v28 = vpop.permute.xlu0 %2687 }
 0x317   : > { %v2933_v24 = vcombine.high %v2868_v33, %v2876_v18 }
 0x319   : > { %v5978_v55 = vpop.permute.xlu1 %2630 }
 0x31d   : > { %v5980_v14 = vpop.permute.xlu1 %2638 }
 0x31e   : > { %7199 = vst [vmem:[#allocation107_spill] sm:$0xff] %v5980_v14  ;;  %v2892_v14 = vsel %vm766_vm0, %v5734_v10, %v2684_v7 }
 0x31f   : > { %v2964_v40 = vcombine.low %v2884_v36, %v2892_v14 }
 0x321   : > { %v5982_v26 = vpop.permute.xlu1 %2649  ;;  %v2972_v19 = vrot.slane %v2964_v40, %v4838_v12 }
 0x325   : > { %v5984_v58 = vpop.permute.xlu1 %2657 }
 0x326   : > { %7200 = vst [vmem:[#allocation108_spill] sm:$0xff] %v5984_v58  ;;  %v2932_v58 = vcombine.low %v2868_v33, %v2876_v18 }
 0x328   : > { %v2940_v10 = vrot.slane %v2932_v58, %v4838_v12  ;;  %v2965_v58 = vcombine.high %v2884_v36, %v2892_v14  ;;  %v6036_v14 = vrot.slane %v2933_v24, %v4838_v12  ;;  %v6038_v36 = vpop.permute.xlu0 %2725 }
 0x329   : > { %v5992_v9 = vpop.permute.xlu1 %2668 }
 0x32a   : > { %v2996_v43 = vcombine.low %v2940_v10, %v2956_v15  ;;  %v3012_v24 = vcombine.low %v6036_v14, %v6019_v47 }
 0x32c   : > { %v3020_v56 = vrot.slane %v3012_v24, %v4854_v5 }
 0x32d   : > { %v2703_v57 = vpop.permute.xlu1 %2702 }
 0x32e   : > { %v2896_v13 = vsel %vm766_vm0, %v5758_v51, %v2703_v57  ;;  %v2997_v57 = vcombine.high %v2940_v10, %v2956_v15  ;;  %v6012_v51 = vrot.slane %v2996_v43, %v4854_v5  ;;  %v2979_v15 = vrot.slane %v2965_v58, %v4838_v12 }
 0x32f   : > { %v2980_v49 = vcombine.low %v2888_v38, %v2896_v13  ;;  %v2981_v44 = vcombine.high %v2888_v38, %v2896_v13  ;;  %v2924_v38 = vsel %vm766_vm0, %v5889_v2, %v2836_v45 }
 0x331   : > { %v2988_v32 = vrot.slane %v2980_v49, %v4838_v12  ;;  %v2741_v7 = vpop.permute.xlu1 %2740  ;;  %v6026_v18 = vrot.slane %v2981_v44, %v4838_v12  ;;  %v3011_v44 = vrot.slane %v2997_v57, %v4854_v5  ;;  %v2916_v49 = vsel %vm766_vm0, %v5841_v34, %v2798_v8  ;;  %v6067_v8 = vpop.permute.xlu0 %2763 }
 0x332   : > { %v6031_v33 = vsel %vm766_vm0, %v5798_v17, %v2741_v7  ;;  %v6046_v17 = vsel %vm766_vm0, %v5778_v59, %v2722_v54  ;;  %v3508_v54 = vcombine.low %v2916_v49, %v2924_v38 }
 0x333   : > { %v3028_v27 = vcombine.low %v2972_v19, %v2988_v32  ;;  %v3029_v61 = vcombine.high %v2972_v19, %v2988_v32  ;;  %v3476_v13 = vcombine.low %v6046_v17, %v6023_v46  ;;  %v3044_v10 = vcombine.low %v2979_v15, %v6026_v18 }
 0x334   : > { %v3516_v58 = vrot.slane %v3508_v54, %v4838_v12 }
 0x335   : > { %v6009_v31 = vrot.slane %v3028_v27, %v4854_v5  ;;  %v2779_v42 = vpop.permute.xlu1 %2778  ;;  %v3043_v27 = vrot.slane %v3029_v61, %v4854_v5  ;;  %v3484_v34 = vrot.slane %v3476_v13, %v4838_v12  ;;  %v3509_v61 = vcombine.high %v2916_v49, %v2924_v38 }
 0x336   : > { %v6016_v40 = vsel %vm766_vm0, %v5822_v41, %v2779_v42  ;;  %v3052_v42 = vrot.slane %v3044_v10, %v4854_v5  ;;  %v6085_v38 = vsel %vm766_vm0, %v5824_v62, %v5978_v55  ;;  %v6105_v55 = vsel %vm766_vm0, %v5812_v39, %v5974_v23 }
 0x337   : > { %v3061_v41 = vcombine.high %v6012_v51, %v6009_v31  ;;  %v3492_v16 = vcombine.low %v6031_v33, %v6016_v40  ;;  %v3062_v19 = vcombine.low %v3011_v44, %v3043_v27  ;;  %v3060_v59 = vcombine.low %v6012_v51, %v6009_v31 }
 0x338   : > { %v3063_v57 = vcombine.high %v3011_v44, %v3043_v27  ;;  %v6090_v27 = vsel %vm766_vm0, %v5834_v60, %v5982_v26  ;;  %v3045_v26 = vcombine.high %v2979_v15, %v6026_v18  ;;  %v2802_v44 = vpop.permute.xlu0 %2801  ;;  %v3493_v24 = vcombine.high %v6031_v33, %v6016_v40 }
 0x339   : > { %v2817_v3 = vpop.permute.xlu1 %2816  ;;  %4022 = vrot.lane.b32.xlu0 %v3061_v41, %s4489_s13  ;;  %v3500_v2 = vrot.slane %v3492_v16, %v4838_v12  ;;  %v3013_v39 = vcombine.high %v6036_v14, %v6019_v47  ;;  %v3477_v23 = vcombine.high %v6046_v17, %v6023_v46  ;;  %v6130_v33 = vsel %vm766_vm0, %v5780_v52, %v5961_v25 }
 0x33a   : > { %v2920_v32 = vsel %vm766_vm0, %v5869_v21, %v2817_v3  ;;  %v6074_v21 = vsel %vm766_vm0, %v5872_v20, %v2688_v28  ;;  %v6080_v3 = vsel %vm766_vm0, %v5800_v29, %v5969_v37  ;;  %v6100_v29 = vsel %vm766_vm0, %v5854_v48, %v5992_v9 }
 0x33b   : > { %v3541_v48 = vcombine.high %v3484_v34, %v3500_v2  ;;  %v3084_v18 = vcombine.low %v6080_v3, %v6085_v38  ;;  %v3100_v40 = vcombine.low %v6090_v27, %v6074_v21  ;;  %v3068_v14 = vcombine.low %v6130_v33, %v6105_v55 }
 0x33c   : > { %v3059_v17 = vrot.slane %v3045_v26, %v4854_v5  ;;  %v3523_v52 = vrot.slane %v3509_v61, %v4838_v12  ;;  %v6146_v25 = vrot.slane %v3493_v24, %v4838_v12  ;;  %v6175_v24 = vsel %vm766_vm0, %v5931_v35, %v2802_v44 }
 0x33d   : > { %v2855_v45 = vpop.permute.xlu1 %2854  ;;  %4030 = vrot.lane.b32.xlu0 %v3062_v19, %s4490_s14  ;;  %v3065_v19 = vcombine.high %v3020_v56, %v3052_v42  ;;  %v3555_v54 = vrot.slane %v3541_v48, %v4854_v5 }
 0x33e   : > { %v2928_v7 = vsel %vm766_vm0, %v5905_v53, %v2855_v45  ;;  %v3540_v53 = vcombine.low %v3484_v34, %v3500_v2  ;;  %v3108_v34 = vrot.slane %v3100_v40, %v4838_v12 }
 0x33f   : > { %v3524_v43 = vcombine.low %v2920_v32, %v2928_v7  ;;  %v3525_v28 = vcombine.high %v2920_v32, %v2928_v7  ;;  %v3027_v32 = vrot.slane %v3013_v39, %v4854_v5  ;;  %v6154_v7 = vrot.slane %v3084_v18, %v4838_v12 }
 0x340   : > { %v6113_v9 = vrot.slane %v3540_v53, %v4854_v5 }
 0x341   : > { %v3532_v41 = vrot.slane %v3524_v43, %v4838_v12  ;;  %v2707_v16 = vpop.permute.xlu1 %2706  ;;  %4038 = vrot.lane.b32.xlu0 %v3063_v57, %s4491_s15  ;;  %v6133_v15 = vrot.slane %v3525_v28, %v4838_v12  ;;  %v3491_v43 = vrot.slane %v3477_v23, %v4838_v12  ;;  %v3076_v57 = vrot.slane %v3068_v14, %v4838_v12 }
 0x342   : > { %v6094_v20 = vsel %vm766_vm0, %v5886_v63, %v2707_v16  ;;  %v3064_v63 = vcombine.low %v3020_v56, %v3052_v42  ;;  %v2840_v56 = vpop.permute.xlu0 %2839  ;;  %v3066_v53 = vcombine.low %v3027_v32, %v3059_v17 }
 0x343   : > { %v3572_v37 = vcombine.low %v3516_v58, %v3532_v41  ;;  %v3573_v62 = vcombine.high %v3516_v58, %v3532_v41  ;;  %v3116_v60 = vcombine.low %v6100_v29, %v6094_v20  ;;  %v3588_v61 = vcombine.low %v3523_v52, %v6133_v15 }
 0x344   : > { %v3556_v41 = vcombine.low %v3491_v43, %v6146_v25  ;;  %v3132_v28 = vcombine.low %v3076_v57, %v6154_v7  ;;  %v6183_v18 = vsel %vm766_vm0, %v5947_v22, %v2840_v56  ;;  %v3117_v35 = vcombine.high %v6100_v29, %v6094_v20 }
 0x345   : > { %v6116_v13 = vrot.slane %v3572_v37, %v4854_v5  ;;  %v2745_v49 = vpop.permute.xlu1 %2744  ;;  %4046 = vrot.lane.b32.xlu0 %v3064_v63, %s4492_s16  ;;  %v3587_v47 = vrot.slane %v3573_v62, %v4854_v5  ;;  %v6142_v10 = vrot.slane %v3116_v60, %v4838_v12  ;;  %v3596_v37 = vrot.slane %v3588_v61, %v4854_v5 }
 0x346   : > { %v3067_v60 = vcombine.high %v3027_v32, %v3059_v17  ;;  %v6171_v63 = vsel %vm766_vm0, %v5917_v6, %v6067_v8  ;;  %v6177_v48 = vpop.permute.xlu0 %2672  ;;  %v3564_v39 = vrot.slane %v3556_v41, %v4854_v5  ;;  %v3140_v40 = vrot.slane %v3132_v28, %v4854_v5 }
 0x347   : > { %v3605_v46 = vcombine.high %v6113_v9, %v6116_v13  ;;  %v3604_v45 = vcombine.low %v6113_v9, %v6116_v13  ;;  %v3606_v42 = vcombine.low %v3555_v54, %v3587_v47  ;;  %v3164_v58 = vcombine.low %v3108_v34, %v6142_v10 }
 0x348   : > { %v3607_v62 = vcombine.high %v3555_v54, %v3587_v47  ;;  %v3589_v6 = vcombine.high %v3523_v52, %v6133_v15  ;;  %v3608_v47 = vcombine.low %v3564_v39, %v3596_v37  ;;  %v3165_v15 = vcombine.high %v3108_v34, %v6142_v10 }
 0x349   : > { %v2783_v2 = vpop.permute.xlu1 %2782  ;;  %4024 = vrot.lane.b32.xlu1 %v3605_v46, %s4489_s13  ;;  %4054 = vrot.lane.b32.xlu0 %v3065_v19, %s4493_s17  ;;  %v3172_v26 = vrot.slane %v3164_v58, %v4854_v5  ;;  %v3644_v20 = vcombine.low %v6175_v24, %v6183_v18  ;;  %v3133_v17 = vcombine.high %v3076_v57, %v6154_v7  ;;  %s7201_s13 = smov 20  }
 0x34a   : > { %v6189_v8 = vsel %vm766_vm0, %v5925_v50, %v2783_v2  ;;  %v6205_v50 = vsel %vm766_vm0, %v5908_v11, %v2745_v49  ;;  %v6218_v11 = vsel %vm766_vm0, %v5898_v0, %v6038_v36  ;;  %v3085_v49 = vcombine.high %v6080_v3, %v6085_v38  ;;  %v2711_v52 = vpop.permute.xlu0 %2710 }
 0x34b   : > { %v3196_v14 = vcombine.low %v3140_v40, %v3172_v26  ;;  %v3101_v10 = vcombine.high %v6090_v27, %v6074_v21  ;;  %v3612_v19 = vcombine.low %v6218_v11, %v6171_v63  ;;  %v3609_v0 = vcombine.high %v3564_v39, %v3596_v37  ;;  %v7202_v39 = vld [vmem:[#allocation9_spill] sm:$0xff] }
 0x34c   : > { %v3069_v36 = vcombine.high %v6130_v33, %v6105_v55  ;;  %v3131_v3 = vrot.slane %v3117_v35, %v4838_v12  ;;  %v3179_v38 = vrot.slane %v3165_v15, %v4854_v5  ;;  %v3197_v21 = vcombine.high %v3140_v40, %v3172_v26  ;;  %v7203_v40 = vld [vmem:[#allocation101_spill] sm:$0xff] }
 0x34d   : > { %v2821_v16 = vpop.permute.xlu1 %2820  ;;  %4032 = vrot.lane.b32.xlu1 %v3606_v42, %s4490_s14  ;;  %4062 = vrot.lane.b32.xlu0 %v3066_v53, %s4494_s18  ;;  %v3652_v27 = vrot.slane %v3644_v20, %v4838_v12  ;;  %v6245_v34 = vrot.slane %v3085_v49, %v4838_v12  ;;  %v3147_v55 = vrot.slane %v3133_v17, %v4854_v5  ;;  %v7205_v15 = vld [vmem:[#allocation17_spill] sm:$0xff]  ;;  %v7207_v20 = vld [vmem:[#allocation12_spill] sm:$0xff]  ;;  %s7212_s14 = smov 22  }
 0x34e   : > { %v6196_v44 = vsel %vm766_vm0, %v5939_v4, %v2821_v16  ;;  %v3557_v4 = vcombine.high %v3491_v43, %v6146_v25  ;;  %v3603_v25 = vrot.slane %v3589_v6, %v4854_v5  ;;  %v3115_v33 = vrot.slane %v3101_v10, %v4838_v12  ;;  %v6253_v53 = vpop.permute.xlu0 %2748  ;;  %v7204_v6 = vld [vmem:[#allocation64_spill] sm:$0xff]  ;;  %v7211_v10 = vld [vmem:[#allocation67_spill] sm:$0xff] }
 0x34f   : > { %v3620_v43 = vrot.slane %v3612_v19, %v4838_v12  ;;  %v3083_v42 = vrot.slane %v3069_v36, %v4838_v12  ;;  %v3198_v58 = vcombine.low %v3147_v55, %v3179_v38  ;;  %v6271_v35 = vsel %vm766_vm0, %v7204_v6, %v7203_v40  ;;  %v7210_v17 = vld [vmem:[#allocation104_spill] sm:$0xff] }
 0x350   : > { %v3571_v2 = vrot.slane %v3557_v4, %v4854_v5  ;;  %v3180_v57 = vcombine.low %v3115_v33, %v3131_v3  ;;  %v6292_v19 = vsel %vm766_vm0, %v7211_v10, %v7210_v17 }
 0x351   : > { %v2859_v23 = vpop.permute.xlu1 %2858  ;;  %4040 = vrot.lane.b32.xlu1 %v3607_v62, %s4491_s15  ;;  %4070 = vrot.lane.b32.xlu0 %v3067_v60, %s4495_s19  ;;  %v3148_v28 = vcombine.low %v3083_v42, %v6245_v34  ;;  %v3199_v60 = vcombine.high %v3147_v55, %v3179_v38  ;;  %s7215_s15 = smov 24  }
 0x352   : > { %v6200_v22 = vsel %vm766_vm0, %v5953_v1, %v2859_v23  ;;  %v3628_v1 = vcombine.low %v6205_v50, %v6189_v8  ;;  %v3610_v61 = vcombine.low %v3571_v2, %v3603_v25  ;;  %v3611_v62 = vcombine.high %v3571_v2, %v3603_v25  ;;  %v7213_v25 = vld [vmem:[#allocation74_spill] sm:$0xff]  ;;  %v2787_v36 = vpop.permute.xlu0 %2786 }
 0x353   : > { %v3660_v46 = vcombine.low %v6196_v44, %v6200_v22  ;;  %v3188_v26 = vrot.slane %v3180_v57, %v4854_v5  ;;  %v6266_v23 = vsel %vm766_vm0, %v7202_v39, %v5923_v30  ;;  %v7208_v30 = vld [vmem:[#allocation99_spill] sm:$0xff]  ;;  %v3661_v38 = vcombine.high %v6196_v44, %v6200_v22 }
 0x354   : > { %v6239_v32 = vrot.slane %v3628_v1, %v4838_v12  ;;  %v7209_v1 = vld [vmem:[#allocation14_spill] sm:$0xff]  ;;  %v3629_v44 = vcombine.high %v6205_v50, %v6189_v8 }
 0x355   : > { %v2692_v29 = vpop.permute.xlu1 %2691  ;;  %4048 = vrot.lane.b32.xlu1 %v3608_v47, %s4492_s16  ;;  %4078 = vrot.lane.b32.xlu0 %v3196_v14, %s4496_s20  ;;  %v6230_v54 = vrot.slane %v3660_v46, %v4838_v12  ;;  %v7206_v14 = vld [vmem:[#allocation96_spill] sm:$0xff]  ;;  %v6287_v49 = vsel %vm766_vm0, %v7209_v1, %v7208_v30  ;;  %s7216_s16 = smov 26  }
 0x356   : > { %v3676_v41 = vcombine.low %v3620_v43, %v6239_v32  ;;  %v6276_v46 = vsel %vm766_vm0, %v7205_v15, %v2692_v29  ;;  %v6282_v4 = vsel %vm766_vm0, %v7207_v20, %v7206_v14  ;;  %v3156_v29 = vrot.slane %v3148_v28, %v4854_v5 }
 0x357   : > { %v3708_v56 = vcombine.low %v3652_v27, %v6230_v54  ;;  %v3236_v57 = vcombine.low %v6292_v19, %v6276_v46  ;;  %v3677_v22 = vcombine.high %v3620_v43, %v6239_v32 }
 0x358   : > { %v3684_v47 = vrot.slane %v3676_v41, %v4854_v5  ;;  %v7214_v41 = vld [vmem:[#allocation70_spill] sm:$0xff] }
 0x359   : > { %v6241_v7 = vpop.permute.xlu1 %2729  ;;  %4056 = vrot.lane.b32.xlu1 %v3609_v0, %s4493_s17  ;;  %4086 = vrot.lane.b32.xlu0 %v3197_v21, %s4497_s21  ;;  %v3716_v37 = vrot.slane %v3708_v56, %v4854_v5  ;;  %v6298_v0 = vsel %vm766_vm0, %v7213_v25, %v2711_v52  ;;  %v3709_v21 = vcombine.high %v3652_v27, %v6230_v54  ;;  %v7217_v25 = vld [vmem:[#allocation90_spill] sm:$0xff]  ;;  %s4520_s17 = smov 64  }
 0x35a   : > { %v3220_v56 = vcombine.low %v6282_v4, %v6271_v35  ;;  %v3645_v52 = vcombine.high %v6175_v24, %v6183_v18  ;;  %v6312_v28 = vsel %vm766_vm0, %v7214_v41, %v6177_v48  ;;  %v3204_v54 = vcombine.low %v6266_v23, %v6287_v49  ;;  %v7220_v41 = vld [vmem:[#allocation80_spill] sm:$0xff] }
 0x35b   : > { %v3740_v55 = vcombine.low %v3684_v47, %v3716_v37  ;;  %v3252_v24 = vcombine.low %v6312_v28, %v6298_v0  ;;  %v3613_v48 = vcombine.high %v6218_v11, %v6171_v63  ;;  %v6327_v18 = vrot.slane %v3661_v38, %v4838_v12 }
 0x35c   : > { %v3723_v8 = vrot.slane %v3709_v21, %v4854_v5  ;;  %v3741_v50 = vcombine.high %v3684_v47, %v3716_v37  ;;  %v6332_v32 = vrot.slane %v3236_v57, %v4838_v12  ;;  %v3659_v43 = vrot.slane %v3645_v52, %v4838_v12 }
 0x35d   : > { %v6256_v16 = vpop.permute.xlu1 %2767  ;;  %4064 = vrot.lane.b32.xlu1 %v3610_v61, %s4494_s18  ;;  %4094 = vrot.lane.b32.xlu0 %v3198_v58, %s7201_s13  ;;  %v3181_v61 = vcombine.high %v3115_v33, %v3131_v3  ;;  %v3200_v58 = vcombine.low %v3156_v29, %v3188_v26  ;;  %v3149_v3 = vcombine.high %v3083_v42, %v6245_v34  ;;  %v2825_v42 = vpop.permute.xlu0 %2824  ;;  %s4427_s18 = sshll.u32 %s7343_s8, 3 }
 0x35e   : > { %v3201_v34 = vcombine.high %v3156_v29, %v3188_v26  ;;  %v6335_v33 = vrot.slane %v3220_v56, %v4838_v12  ;;  %v3643_v63 = vrot.slane %v3629_v44, %v4838_v12  ;;  %v3691_v11 = vrot.slane %v3677_v22, %v4854_v5  ;;  %v7221_v22 = vld [vmem:[#allocation85_spill] sm:$0xff] }
 0x35f   : > { %v3195_v27 = vrot.slane %v3181_v61, %v4854_v5  ;;  %v3163_v37 = vrot.slane %v3149_v3, %v4854_v5  ;;  %v3212_v26 = vrot.slane %v3204_v54, %v4838_v12  ;;  %v3627_v39 = vrot.slane %v3613_v48, %v4838_v12  ;;  %v7218_v61 = vld [vmem:[#allocation83_spill] sm:$0xff] }
 0x360   : > { %v3724_v40 = vcombine.low %v3659_v43, %v6327_v18  ;;  %v3742_v6 = vcombine.low %v3691_v11, %v3723_v8  ;;  %v3743_v10 = vcombine.high %v3691_v11, %v3723_v8  ;;  %v6364_v57 = vsel %vm766_vm0, %v7218_v61, %v2787_v36  ;;  %v7222_v3 = vld [vmem:[#allocation87_spill] sm:$0xff] }
 0x361   : > { %4072 = vrot.lane.b32.xlu1 %v3611_v62, %s4495_s19  ;;  %4102 = vrot.lane.b32.xlu0 %v3199_v60, %s7212_s14  ;;  %v2806_v2 = vpop.permute.xlu1 %2805  ;;  %v3260_v60 = vrot.slane %v3252_v24, %v4838_v12  ;;  %v3202_v15 = vcombine.low %v3163_v37, %v3195_v27  ;;  %v3268_v14 = vcombine.low %v3212_v26, %v6335_v33  ;;  %v2863_v30 = vpop.permute.xlu0 %2862 }
 0x362   : > { %v3692_v20 = vcombine.low %v3627_v39, %v3643_v63  ;;  %v3732_v1 = vrot.slane %v3724_v40, %v4854_v5  ;;  %v3203_v21 = vcombine.high %v3163_v37, %v3195_v27  ;;  %v6373_v44 = vsel %vm766_vm0, %v7220_v41, %v6256_v16 }
 0x363   : > { %v3300_v47 = vcombine.low %v6332_v32, %v3260_v60  ;;  %v6377_v54 = vsel %vm766_vm0, %v7221_v22, %v2806_v2  ;;  %v6382_v24 = vsel %vm766_vm0, %v7222_v3, %v2825_v42  ;;  %v3725_v36 = vcombine.high %v3659_v43, %v6327_v18  ;;  %v7223_v2 = vld [vmem:[#allocation76_spill] sm:$0xff]  ;;  %v7225_v22 = vld [vmem:[#allocation107_spill] sm:$0xff]  ;;  %v7226_v3 = vld [vmem:[#allocation82_spill] sm:$0xff] }
 0x364   : > { %v3700_v56 = vrot.slane %v3692_v20, %v4854_v5  ;;  %v3237_v16 = vcombine.high %v6292_v19, %v6276_v46  ;;  %v6393_v27 = vsel %vm766_vm0, %v7223_v2, %v6241_v7  ;;  %v3221_v42 = vcombine.high %v6282_v4, %v6271_v35  ;;  %v7224_v35 = vld [vmem:[#allocation78_spill] sm:$0xff]  ;;  %v7228_v2 = vld [vmem:[#allocation103_spill] sm:$0xff] }
 0x365   : > { %4080 = vrot.lane.b32.xlu1 %v3740_v55, %s4496_s20  ;;  %4110 = vrot.lane.b32.xlu0 %v3200_v58, %s7215_s15  ;;  %v2844_v62 = vpop.permute.xlu1 %2843  ;;  %v3308_v29 = vrot.slane %v3300_v47, %v4854_v5  ;;  %v3276_v55 = vrot.slane %v3268_v14, %v4854_v5  ;;  %v7219_v58 = vld [vmem:[#allocation92_spill] sm:$0xff]  ;;  %v3693_v43 = vcombine.high %v3627_v39, %v3643_v63  ;;  %v2696_v63 = vpop.permute.xlu0 %2695 }
 0x366   : > { %v6357_v38 = vsel %vm766_vm0, %v7217_v25, %v2844_v62  ;;  %v6368_v52 = vsel %vm766_vm0, %v7219_v58, %v2863_v30  ;;  %v3744_v8 = vcombine.low %v3700_v56, %v3732_v1  ;;  %v3748_v11 = vcombine.low %v6393_v27, %v6373_v44 }
 0x367   : > { %v3780_v48 = vcombine.low %v6377_v54, %v6357_v38  ;;  %v3796_v18 = vcombine.low %v6382_v24, %v6368_v52  ;;  %v3205_v46 = vcombine.high %v6266_v23, %v6287_v49  ;;  %v3269_v7 = vcombine.high %v3212_v26, %v6335_v33 }
 0x368   : > { %v3253_v19 = vcombine.high %v6312_v28, %v6298_v0  ;;  %v6410_v4 = vsel %vm766_vm0, %v7224_v35, %v6253_v53  ;;  %v3739_v37 = vrot.slane %v3725_v36, %v4854_v5  ;;  %v3745_v49 = vcombine.high %v3700_v56, %v3732_v1 }
 0x369   : > { %4088 = vrot.lane.b32.xlu1 %v3741_v50, %s4497_s21  ;;  %4118 = vrot.lane.b32.xlu0 %v3201_v34, %s7216_s16  ;;  %v6352_v17 = vpop.permute.xlu1 %2676  ;;  %v3301_v50 = vcombine.high %v6332_v32, %v3260_v60  ;;  %v3332_v34 = vcombine.low %v3276_v55, %v3308_v29  ;;  %v3764_v32 = vcombine.low %v6410_v4, %v6364_v57  ;;  %v6436_v25 = vpop.permute.xlu0 %2733  ;;  %s121_s21 = scalar_lea.vmem %s6920_s1, %s4427_s18 }
 0x36a   : > { %v3788_v23 = vrot.slane %v3780_v48, %v4838_v12  ;;  %v3251_v33 = vrot.slane %v3237_v16, %v4838_v12  ;;  %v3333_v28 = vcombine.high %v3276_v55, %v3308_v29  ;;  %v6420_v60 = vrot.slane %v3221_v42, %v4838_v12 }
 0x36b   : > { %v3315_v0 = vrot.slane %v3301_v50, %v4854_v5  ;;  %v3804_v53 = vrot.slane %v3796_v18, %v4838_v12  ;;  %v3707_v26 = vrot.slane %v3693_v43, %v4854_v5  ;;  %v6425_v39 = vrot.slane %v3748_v11, %v4838_v12  ;;  %v7230_v18 = vld [vmem:[#allocation105_spill] sm:$0xff]  ;;  %v7231_v43 = vld [vmem:[#allocation79_spill] sm:$0xff] }
 0x36c   : > { %v3283_v40 = vrot.slane %v3269_v7, %v4854_v5  ;;  %v3219_v47 = vrot.slane %v3205_v46, %v4838_v12  ;;  %v6447_v36 = vsel %vm766_vm0, %v7226_v3, %v7225_v22  ;;  %v6465_v11 = vsel %vm766_vm0, %v7231_v43, %v7230_v18  ;;  %v7232_v46 = vld [vmem:[#allocation106_spill] sm:$0xff]  ;;  %v7233_v7 = vld [vmem:[#allocation81_spill] sm:$0xff] }
 0x36d   : > { %4096 = vrot.lane.b32.xlu1 %v3742_v6, %s7201_s13  ;;  %4126 = vrot.lane.b32.xlu0 %v3202_v15, %s4502_s26  ;;  %v2715_v62 = vpop.permute.xlu1 %2714  ;;  %v3267_v6 = vrot.slane %v3253_v19, %v4838_v12  ;;  %v3772_v15 = vrot.slane %v3764_v32, %v4838_v12  ;;  %v3844_v14 = vcombine.low %v3788_v23, %v3804_v53  ;;  %v2772_v32 = vpop.permute.xlu0 %2771 }
 0x36e   : > { %v3746_v30 = vcombine.low %v3707_v26, %v3739_v37  ;;  %v3284_v29 = vcombine.low %v3219_v47, %v6420_v60  ;;  %v3747_v56 = vcombine.high %v3707_v26, %v3739_v37  ;;  %v3335_v58 = vcombine.high %v3283_v40, %v3315_v0 }
 0x36f   : > { %v3316_v1 = vcombine.low %v3251_v33, %v3267_v6  ;;  %v3852_v55 = vrot.slane %v3844_v14, %v4854_v5  ;;  %v6470_v19 = vsel %vm766_vm0, %v7233_v7, %v7232_v46  ;;  %v3781_v37 = vcombine.high %v6377_v54, %v6357_v38 }
 0x370   : > { %v3292_v41 = vrot.slane %v3284_v29, %v4854_v5  ;;  %v3317_v14 = vcombine.high %v3251_v33, %v3267_v6  ;;  %v3797_v38 = vcombine.high %v6382_v24, %v6368_v52  ;;  %v3813_v54 = vcombine.high %v6425_v39, %v3772_v15 }
 0x371   : > { %4104 = vrot.lane.b32.xlu1 %v3743_v10, %s7212_s14  ;;  %4134 = vrot.lane.b32.xlu0 %v3203_v21, %s4503_s27  ;;  %v6433_v20 = vpop.permute.xlu1 %2752  ;;  %v3334_v10 = vcombine.low %v3283_v40, %v3315_v0  ;;  %v3812_v21 = vcombine.low %v6425_v39, %v3772_v15  ;;  %v3324_v61 = vrot.slane %v3316_v1, %v4854_v5  ;;  %v7235_v0 = vld [vmem:[#allocation86_spill] sm:$0xff]  ;;  %v7236_v1 = vld [vmem:[#allocation108_spill] sm:$0xff] }
 0x372   : > { %v3356_v40 = vcombine.low %v6465_v11, %v6447_v36  ;;  %v3765_v52 = vcombine.high %v6410_v4, %v6364_v57  ;;  %v3795_v24 = vrot.slane %v3781_v37, %v4838_v12  ;;  %v3331_v6 = vrot.slane %v3317_v14, %v4854_v5  ;;  %v7238_v37 = vld [vmem:[#allocation102_spill] sm:$0xff] }
 0x373   : > { %v3820_v48 = vrot.slane %v3812_v21, %v4854_v5  ;;  %v3811_v21 = vrot.slane %v3797_v38, %v4838_v12  ;;  %v3827_v57 = vrot.slane %v3813_v54, %v4854_v5  ;;  %v7239_v14 = vld [vmem:[#allocation94_spill] sm:$0xff] }
 0x374   : > { %v6512_v15 = vrot.slane %v3356_v40, %v4838_v12 }
 0x375   : > { %4112 = vrot.lane.b32.xlu1 %v3744_v8, %s7215_s15  ;;  %4142 = vrot.lane.b32.xlu0 %v3332_v34, %s4504_s28  ;;  %v7227_v8 = vld [vmem:[#allocation89_spill] sm:$0xff]  ;;  %v6454_v50 = vpop.permute.xlu1 %2790  ;;  %v3876_v26 = vcombine.low %v3820_v48, %v3852_v55  ;;  %v3877_v39 = vcombine.high %v3820_v48, %v3852_v55  ;;  %v3860_v22 = vcombine.low %v3795_v24, %v3811_v21 }
 0x376   : > { %v6452_v16 = vsel %vm766_vm0, %v7227_v8, %v2715_v62  ;;  %v7229_v34 = vld [vmem:[#allocation77_spill] sm:$0xff]  ;;  %v7234_v62 = vld [vmem:[#allocation88_spill] sm:$0xff] }
 0x377   : > { %v6460_v42 = vsel %vm766_vm0, %v7229_v34, %v7228_v2  ;;  %v6474_v35 = vsel %vm766_vm0, %v7234_v62, %v2696_v63  ;;  %v3868_v46 = vrot.slane %v3860_v22, %v4854_v5 }
 0x378   : > { %v3340_v33 = vcombine.low %v6460_v42, %v6470_v19 }
 0x379   : > { %4120 = vrot.lane.b32.xlu1 %v3745_v49, %s7216_s16  ;;  %4150 = vrot.lane.b32.xlu0 %v3333_v28, %s4505_s29  ;;  %v3845_v49 = vcombine.high %v3788_v23, %v3804_v53  ;;  %v6482_v28 = vsel %vm766_vm0, %v7235_v0, %v6352_v17  ;;  %v3749_v17 = vcombine.high %v6393_v27, %v6373_v44  ;;  %v2829_v27 = vpop.permute.xlu1 %2828 }
 0x37a   : > { %v3388_v63 = vcombine.low %v6482_v28, %v6452_v16  ;;  %v3285_v23 = vcombine.high %v3219_v47, %v6420_v60  ;;  %v3337_v47 = vcombine.high %v3292_v41, %v3324_v61 }
 0x37b   : > { %v3859_v44 = vrot.slane %v3845_v49, %v4854_v5 }
 0x37c   : > { %v3396_v60 = vrot.slane %v3388_v63, %v4838_v12  ;;  %v3299_v4 = vrot.slane %v3285_v23, %v4854_v5  ;;  %v6537_v63 = vsel %vm766_vm0, %v7239_v14, %v2772_v32  ;;  %v7243_v23 = vld [vmem:[#allocation97_spill] sm:$0xff]  ;;  %v3861_v32 = vcombine.high %v3795_v24, %v3811_v21 }
 0x37d   : > { %4128 = vrot.lane.b32.xlu1 %v3746_v30, %s4502_s26  ;;  %4158 = vrot.lane.b32.xlu0 %v3334_v10, %s4506_s30  ;;  %v3336_v30 = vcombine.low %v3292_v41, %v3324_v61  ;;  %v7237_v10 = vld [vmem:[#allocation84_spill] sm:$0xff]  ;;  %v3348_v61 = vrot.slane %v3340_v33, %v4838_v12  ;;  %v3779_v41 = vrot.slane %v3765_v52, %v4838_v12  ;;  %v2867_v18 = vpop.permute.xlu1 %2866 }
 0x37e   : > { %v6491_v29 = vsel %vm766_vm0, %v7237_v10, %v7236_v1  ;;  %v3878_v3 = vcombine.low %v3827_v57, %v3859_v44  ;;  %v3338_v8 = vcombine.low %v3299_v4, %v3331_v6  ;;  %v3879_v7 = vcombine.high %v3827_v57, %v3859_v44  ;;  %v7241_v10 = vld [vmem:[#allocation95_spill] sm:$0xff] }
 0x37f   : > { %v3372_v53 = vcombine.low %v6491_v29, %v6474_v35  ;;  %v3404_v2 = vcombine.low %v3348_v61, %v6512_v15  ;;  %v6530_v49 = vsel %vm766_vm0, %v7238_v37, %v2867_v18  ;;  %v3339_v0 = vcombine.high %v3299_v4, %v3331_v6 }
 0x380   : > { %v6546_v38 = vsel %vm766_vm0, %v7241_v10, %v6454_v50  ;;  %v3389_v44 = vcombine.high %v6482_v28, %v6452_v16  ;;  %v3357_v21 = vcombine.high %v6465_v11, %v6447_v36  ;;  %v3405_v16 = vcombine.high %v3348_v61, %v6512_v15 }
 0x381   : > { %4136 = vrot.lane.b32.xlu1 %v3747_v56, %s4503_s27  ;;  %4166 = vrot.lane.b32.xlu0 %v3335_v58, %s4507_s2  ;;  %v2810_v56 = vpop.permute.xlu0 %2809  ;;  %v3763_v58 = vrot.slane %v3749_v17, %v4838_v12  ;;  %v3380_v55 = vrot.slane %v3372_v53, %v4838_v12  ;;  %v7242_v17 = vld [vmem:[#allocation98_spill] sm:$0xff]  ;;  %v3373_v28 = vcombine.high %v6491_v29, %v6474_v35 }
 0x382   : > { %v6550_v54 = vsel %vm766_vm0, %v7242_v17, %v2829_v27  ;;  %v6555_v33 = vsel %vm766_vm0, %v7243_v23, %v2810_v56  ;;  %v3875_v57 = vrot.slane %v3861_v32, %v4854_v5  ;;  %v3341_v36 = vcombine.high %v6460_v42, %v6470_v19 }
 0x383   : > { %v3436_v48 = vcombine.low %v3380_v55, %v3396_v60  ;;  %v3828_v34 = vcombine.low %v3763_v58, %v3779_v41  ;;  %v3932_v53 = vcombine.low %v6550_v54, %v6530_v49  ;;  %v3437_v50 = vcombine.high %v3380_v55, %v3396_v60 }
 0x384   : > { %v3829_v56 = vcombine.high %v3763_v58, %v3779_v41  ;;  %v3403_v11 = vrot.slane %v3389_v44, %v4838_v12  ;;  %v3371_v41 = vrot.slane %v3357_v21, %v4838_v12  ;;  %v3419_v22 = vrot.slane %v3405_v16, %v4854_v5 }
 0x385   : > { %4144 = vrot.lane.b32.xlu1 %v3876_v26, %s4504_s28  ;;  %4174 = vrot.lane.b32.xlu0 %v3336_v30, %s4508_s3  ;;  %v2848_v43 = vpop.permute.xlu0 %2847  ;;  %v3444_v62 = vrot.slane %v3436_v48, %v4854_v5  ;;  %v3412_v26 = vrot.slane %v3404_v2, %v4854_v5  ;;  %v3836_v40 = vrot.slane %v3828_v34, %v4854_v5  ;;  %v7240_v30 = vld [vmem:[#allocation100_spill] sm:$0xff] }
 0x386   : > { %v6541_v1 = vsel %vm766_vm0, %v7240_v30, %v2848_v43  ;;  %v3940_v4 = vrot.slane %v3932_v53, %v4838_v12  ;;  %v3451_v35 = vrot.slane %v3437_v50, %v4854_v5 }
 0x387   : > { %v3880_v52 = vcombine.low %v3836_v40, %v3868_v46  ;;  %v3468_v6 = vcombine.low %v3412_v26, %v3444_v62  ;;  %v3881_v55 = vcombine.high %v3836_v40, %v3868_v46  ;;  %v3469_v29 = vcombine.high %v3412_v26, %v3444_v62 }
 0x388   : > { %v3470_v34 = vcombine.low %v3419_v22, %v3451_v35  ;;  %v3471_v37 = vcombine.high %v3419_v22, %v3451_v35  ;;  %v3933_v40 = vcombine.high %v6550_v54, %v6530_v49  ;;  %v3917_v23 = vcombine.high %v6555_v33, %v6541_v1 }
 0x389   : > { %4152 = vrot.lane.b32.xlu1 %v3877_v39, %s4505_s29  ;;  %4182 = vrot.lane.b32.xlu0 %v3337_v47, %s4509_s4  ;;  %v7244_v39 = vld [vmem:[#allocation93_spill] sm:$0xff]  ;;  %v3916_v47 = vcombine.low %v6555_v33, %v6541_v1 }
 0x38a   : > { %v6564_v27 = vsel %vm766_vm0, %v7244_v39, %v6433_v20  ;;  %v7245_v20 = vld [vmem:[#allocation91_spill] sm:$0xff]  ;;  %v3947_v49 = vrot.slane %v3933_v40, %v4838_v12  ;;  %v3931_v1 = vrot.slane %v3917_v23, %v4838_v12 }
 0x38b   : > { %v3900_v24 = vcombine.low %v6564_v27, %v6546_v38  ;;  %v2903_v60 = vsel %vm766_vm0, %v7245_v20, %v6436_v25  ;;  %v3924_v15 = vrot.slane %v3916_v47, %v4838_v12  ;;  %v3843_v25 = vrot.slane %v3829_v56, %v4854_v5 }
 0x38c   : > { %v3884_v58 = vcombine.low %v2903_v60, %v6537_v63  ;;  %v3901_v32 = vcombine.high %v6564_v27, %v6546_v38  ;;  %v3885_v44 = vcombine.high %v2903_v60, %v6537_v63  ;;  %v3996_v47 = vcombine.low %v3931_v1, %v3947_v49 }
 0x38d   : > { %4160 = vrot.lane.b32.xlu1 %v3878_v3, %s4506_s30  ;;  %4190 = vrot.lane.b32.xlu0 %v3338_v8, %s4510_s5  ;;  %v3908_v61 = vrot.slane %v3900_v24, %v4838_v12  ;;  %v3387_v3 = vrot.slane %v3373_v28, %v4838_v12  ;;  %v3980_v19 = vcombine.low %v3924_v15, %v3940_v4  ;;  %vm6969_vm0 = vcmask 261120  }
 0x38e   : > { %v3892_v42 = vrot.slane %v3884_v58, %v4838_v12  ;;  %v3882_v48 = vcombine.low %v3843_v25, %v3875_v57  ;;  %v3355_v8 = vrot.slane %v3341_v36, %v4838_v12  ;;  %v3981_v14 = vcombine.high %v3924_v15, %v3940_v4 }
 0x38f   : > { %v3452_v2 = vcombine.low %v3387_v3, %v3403_v11  ;;  %v3988_v46 = vrot.slane %v3980_v19, %v4854_v5  ;;  %v3453_v10 = vcombine.high %v3387_v3, %v3403_v11  ;;  %v3915_v38 = vrot.slane %v3901_v32, %v4838_v12 }
 0x390   : > { %v3948_v18 = vcombine.low %v3892_v42, %v3908_v61  ;;  %v3420_v43 = vcombine.low %v3355_v8, %v3371_v41  ;;  %v3949_v53 = vcombine.high %v3892_v42, %v3908_v61  ;;  %v3995_v54 = vrot.slane %v3981_v14, %v4854_v5 }
 0x391   : > { %4168 = vrot.lane.b32.xlu1 %v3879_v7, %s4507_s2  ;;  %4198 = vrot.lane.b32.xlu0 %v3339_v0, %s4511_s7  ;;  %v3883_v7 = vcombine.high %v3843_v25, %v3875_v57  ;;  %v3460_v62 = vrot.slane %v3452_v2, %v4854_v5  ;;  %v3467_v39 = vrot.slane %v3453_v10, %v4854_v5 }
 0x392   : > { %v3956_v0 = vrot.slane %v3948_v18, %v4854_v5  ;;  %v3428_v26 = vrot.slane %v3420_v43, %v4854_v5  ;;  %v3963_v33 = vrot.slane %v3949_v53, %v4854_v5  ;;  %v3899_v63 = vrot.slane %v3885_v44, %v4838_v12 }
 0x393   : > { %v4004_v20 = vrot.slane %v3996_v47, %v4854_v5  ;;  %v3997_v31 = vcombine.high %v3931_v1, %v3947_v49 }
 0x394   : > { %v4012_v30 = vcombine.low %v3956_v0, %v3988_v46  ;;  %v3472_v17 = vcombine.low %v3428_v26, %v3460_v62  ;;  %v4013_v50 = vcombine.high %v3956_v0, %v3988_v46  ;;  %v4014_v56 = vcombine.low %v3963_v33, %v3995_v54 }
 0x395   : > { %4176 = vrot.lane.b32.xlu1 %v3880_v52, %s4508_s3  ;;  %4206 = vrot.lane.b32.xlu0 %v3468_v6, %s4512_s9  ;;  %v3421_v52 = vcombine.high %v3355_v8, %v3371_v41  ;;  %v3473_v6 = vcombine.high %v3428_v26, %v3460_v62  ;;  %v3964_v16 = vcombine.low %v3899_v63, %v3915_v38 }
 0x396   : > { %v4015_v60 = vcombine.high %v3963_v33, %v3995_v54  ;;  %v4011_v11 = vrot.slane %v3997_v31, %v4854_v5 }
 0x397   : > { %v3435_v27 = vrot.slane %v3421_v52, %v4854_v5  ;;  %v3972_v57 = vrot.slane %v3964_v16, %v4854_v5 }
 0x399   : > { %4184 = vrot.lane.b32.xlu1 %v3881_v55, %s4509_s4  ;;  %4214 = vrot.lane.b32.xlu0 %v3469_v29, %s4513_s10  ;;  %v3474_v21 = vcombine.low %v3435_v27, %v3467_v39  ;;  %v3475_v58 = vcombine.high %v3435_v27, %v3467_v39  ;;  %v4016_v51 = vcombine.low %v3972_v57, %v4004_v20 }
 0x39a   : > { %v3965_v55 = vcombine.high %v3899_v63, %v3915_v38  ;;  %v4017_v35 = vcombine.high %v3972_v57, %v4004_v20 }
 0x39c   : > { %v3979_v15 = vrot.slane %v3965_v55, %v4854_v5  ;;  %v7247_v55 = vld [vmem:[#allocation62_spill] sm:$0xff] }
 0x39d   : > { %4192 = vrot.lane.b32.xlu1 %v3882_v48, %s4510_s5  ;;  %4222 = vrot.lane.b32.xlu0 %v3470_v34, %s4514_s11 }
 0x39e   : > { %v4018_v41 = vcombine.low %v3979_v15, %v4011_v11  ;;  %v4019_v48 = vcombine.high %v3979_v15, %v4011_v11  ;;  %v7250_v15 = vld [vmem:[#allocation51_spill] sm:$0xff] }
 0x3a1   : > { %4200 = vrot.lane.b32.xlu1 %v3883_v7, %s4511_s7  ;;  %4230 = vrot.lane.b32.xlu0 %v3471_v37, %s4515_s12 }
 0x3a5   : > { %4208 = vrot.lane.b32.xlu1 %v4012_v30, %s4512_s9  ;;  %4238 = vrot.lane.b32.xlu0 %v3472_v17, %s4516_s23 }
 0x3a9   : > { %4216 = vrot.lane.b32.xlu1 %v4013_v50, %s4513_s10  ;;  %4246 = vrot.lane.b32.xlu0 %v3473_v6, %s4517_s22 }
 0x3ab   : > { %v4023_v24 = vpop.permute.xlu0 %4022 }
 0x3ac   : > { %v4268_v28 = vsel %vm2167_vm1, %v3060_v59, %v4023_v24 }
 0x3ad   : > { %4224 = vrot.lane.b32.xlu1 %v4014_v56, %s4514_s11  ;;  %4254 = vrot.lane.b32.xlu0 %v3474_v21, %s4518_s24 }
 0x3af   : > { %v4031_v12 = vpop.permute.xlu0 %4030 }
 0x3b0   : > { %v4270_v4 = vsel %vm2170_vm2, %v4268_v28, %v4031_v12 }
 0x3b1   : > { %4232 = vrot.lane.b32.xlu1 %v4015_v60, %s4515_s12  ;;  %4262 = vrot.lane.b32.xlu0 %v3475_v58, %s4519_s25 }
 0x3b3   : > { %v4039_v59 = vpop.permute.xlu0 %4038 }
 0x3b4   : > { %v4272_v36 = vsel %vm6966_vm3, %v4270_v4, %v4039_v59  ;;  %v7246_v59 = vld [vmem:[#allocation43_spill] sm:$0xff] }
 0x3b5   : > { %4240 = vrot.lane.b32.xlu1 %v4016_v51, %s4516_s23 }
 0x3b7   : > { %v4047_v29 = vpop.permute.xlu0 %4046 }
 0x3b8   : > { %v4274_v25 = vsel %vm6964_vm4, %v4272_v36, %v4047_v29  ;;  %v7248_v36 = vld [vmem:[#allocation63_spill] sm:$0xff] }
 0x3b9   : > { %4248 = vrot.lane.b32.xlu1 %v4017_v35, %s4517_s22  ;;  %v7249_v11 = vcombine.low %v7247_v55, %v7248_v36  ;;  %v7262_v36 = vld [vmem:[#allocation22_spill] sm:$0xff] }
 0x3bb   : > { %v4025_v61 = vpop.permute.xlu1 %4024  ;;  %v4055_v3 = vpop.permute.xlu0 %4054  ;;  %v2168_v35 = vsel %vm2167_vm1, %v7249_v11, %v7246_v59 }
 0x3bc   : > { %v4269_v22 = vsel %vm2167_vm1, %v3604_v45, %v4025_v61  ;;  %v4276_v42 = vsel %vm6962_vm5, %v4274_v25, %v4055_v3  ;;  %v2171_v25 = vsel %vm2170_vm2, %v2168_v35, %v7250_v15  ;;  %v7252_v3 = vld [vmem:[#allocation21_spill] sm:$0xff]  ;;  %v7263_v15 = vld [vmem:[#allocation59_spill] sm:$0xff] }
 0x3bd   : > { %4256 = vrot.lane.b32.xlu1 %v4018_v41, %s4518_s24  ;;  %v7251_v41 = vld [vmem:[#allocation57_spill] sm:$0xff] }
 0x3bf   : > { %v4033_v19 = vpop.permute.xlu1 %4032  ;;  %v4063_v8 = vpop.permute.xlu0 %4062 }
 0x3c0   : > { %v4271_v5 = vsel %vm2170_vm2, %v4269_v22, %v4033_v19  ;;  %v4278_v2 = vsel %vm6960_vm6, %v4276_v42, %v4063_v8  ;;  %v2174_v22 = vsel %vm6966_vm3, %v2171_v25, %v7251_v41  ;;  %v7253_v19 = vld [vmem:[#allocation54_spill] sm:$0xff]  ;;  %v7264_v41 = vld [vmem:[#allocation23_spill] sm:$0xff] }
 0x3c1   : > { %4264 = vrot.lane.b32.xlu1 %v4019_v48, %s4519_s25  ;;  %v2177_v42 = vsel %vm6964_vm4, %v2174_v22, %v7252_v3  ;;  %v7254_v8 = vld [vmem:[#allocation18_spill] sm:$0xff]  ;;  %v7265_v22 = vld [vmem:[#allocation60_spill] sm:$0xff]  ;;  %v7266_v3 = vld [vmem:[#allocation47_spill] sm:$0xff] }
 0x3c2   : > { %v2180_v48 = vsel %vm6962_vm5, %v2177_v42, %v7253_v19  ;;  %v7267_v42 = vld [vmem:[#allocation39_spill] sm:$0xff] }
 0x3c3   : > { %v4041_v34 = vpop.permute.xlu1 %4040  ;;  %v4071_v13 = vpop.permute.xlu0 %4070  ;;  %v7268_v19 = vcombine.low %v7266_v3, %v7267_v42  ;;  %v7292_v3 = vld [vmem:[#allocation31_spill] sm:$0xff] }
 0x3c4   : > { %v4273_v9 = vsel %vm6966_vm3, %v4271_v5, %v4041_v34  ;;  %v4280_v45 = vsel %vm6958_vm7, %v4278_v2, %v4071_v13  ;;  %v2183_v2 = vsel %vm6960_vm6, %v2180_v48, %v7254_v8  ;;  %v7255_v13 = vld [vmem:[#allocation55_spill] sm:$0xff]  ;;  %vm2242_vm3 = vcmask 424960   ;;  %v7269_v8 = vld [vmem:[#allocation24_spill] sm:$0xff] }
 0x3c5   : > { %v2169_v48 = vsel %vm2167_vm1, %v7268_v19, %v7265_v22  ;;  %vm7273_vm1 = vcmask 48128   ;;  %v7293_v19 = vld [vmem:[#allocation28_spill] sm:$0xff] }
 0x3c7   : > { %v4049_v18 = vpop.permute.xlu1 %4048  ;;  %v4079_v46 = vpop.permute.xlu0 %4078 }
 0x3c8   : > { %v4275_v43 = vsel %vm6964_vm4, %v4273_v9, %v4049_v18  ;;  %v4282_v7 = vsel %vm6957_vm8, %v4280_v45, %v4079_v46  ;;  %v2186_v45 = vsel %vm6958_vm7, %v2183_v2, %v7255_v13  ;;  %vm2236_vm4 = vcmask 392192  }
 0x3cb   : > { %v4057_v62 = vpop.permute.xlu1 %4056  ;;  %v4087_v0 = vpop.permute.xlu0 %4086 }
 0x3cc   : > { %v4277_v37 = vsel %vm6962_vm5, %v4275_v43, %v4057_v62  ;;  %v4284_v26 = vsel %vm6959_vm9, %v4282_v7, %v4087_v0  ;;  %v7256_v43 = vld [vmem:[#allocation19_spill] sm:$0xff]  ;;  %v7257_v62 = vld [vmem:[#allocation56_spill] sm:$0xff]  ;;  %vm2230_vm5 = vcmask 359424  }
 0x3cd   : > { %v2189_v46 = vsel %vm6957_vm8, %v2186_v45, %v7256_v43 }
 0x3cf   : > { %v4065_v40 = vpop.permute.xlu1 %4064  ;;  %v4095_v30 = vpop.permute.xlu0 %4094 }
 0x3d0   : > { %v4279_v14 = vsel %vm6960_vm6, %v4277_v37, %v4065_v40  ;;  %v4286_v34 = vsel %vm6961_vm10, %v4284_v26, %v4095_v30  ;;  %v2192_v37 = vsel %vm6959_vm9, %v2189_v46, %v7257_v62  ;;  %v7258_v40 = vld [vmem:[#allocation20_spill] sm:$0xff]  ;;  %vm6973_vm6 = vcmask 326656   ;;  %v7272_v46 = vld [vmem:[#allocation46_spill] sm:$0xff] }
 0x3d3   : > { %v4073_v10 = vpop.permute.xlu1 %4072  ;;  %v4103_v23 = vpop.permute.xlu0 %4102 }
 0x3d4   : > { %v4281_v17 = vsel %vm6958_vm7, %v4279_v14, %v4073_v10  ;;  %v4288_v18 = vsel %vm6963_vm11, %v4286_v34, %v4103_v23  ;;  %v2195_v14 = vsel %vm6961_vm10, %v2192_v37, %v7258_v40  ;;  %vm6971_vm7 = vcmask 293888   ;;  %v7270_v34 = vld [vmem:[#allocation35_spill] sm:$0xff]  ;;  %v7274_v37 = vld [vmem:[#allocation42_spill] sm:$0xff]  ;;  %v7275_v40 = vld [vmem:[#allocation32_spill] sm:$0xff] }
 0x3d5   : > { %vm2227_vm10 = vcmask 343040   ;;  %v2172_v13 = vsel %vm2170_vm2, %v2169_v48, %v7270_v34  ;;  %vm7276_vm2 = vcmask 64512  }
 0x3d7   : > { %v4081_v32 = vpop.permute.xlu1 %4080  ;;  %v4111_v52 = vpop.permute.xlu0 %4110 }
 0x3d8   : > { %v4283_v53 = vsel %vm6957_vm8, %v4281_v17, %v4081_v32  ;;  %v4290_v7 = vsel %vm6965_vm12, %v4288_v18, %v4111_v52  ;;  %v7259_v17 = vld [vmem:[#allocation61_spill] sm:$0xff]  ;;  %vm6970_vm8 = vcmask 277504   ;;  %v7271_v18 = vld [vmem:[#allocation50_spill] sm:$0xff] }
 0x3d9   : > { %v2198_v23 = vsel %vm6963_vm11, %v2195_v14, %v7259_v17  ;;  %vm2233_vm11 = vcmask 375808  }
 0x3db   : > { %v4089_v44 = vpop.permute.xlu1 %4088  ;;  %v4119_v54 = vpop.permute.xlu0 %4118 }
 0x3dc   : > { %v6660_v49 = vsel %vm6959_vm9, %v4283_v53, %v4089_v44  ;;  %v4292_v0 = vsel %vm2203_vm13, %v4290_v7, %v4119_v54  ;;  %v7260_v53 = vld [vmem:[#allocation25_spill] sm:$0xff]  ;;  %vm6972_vm9 = vcmask 310272   ;;  %v7261_v54 = vld [vmem:[#allocation58_spill] sm:$0xff]  ;;  %v2175_v7 = vsel %vm7273_vm1, %v2172_v13, %v7272_v46 }
 0x3dd   : > { %v2201_v52 = vsel %vm6965_vm12, %v2198_v23, %v7260_v53  ;;  %vm2239_vm12 = vcmask 408576   ;;  %v2178_v14 = vsel %vm7276_vm2, %v2175_v7, %v7275_v40  ;;  %v7278_v23 = vld [vmem:[#allocation26_spill] sm:$0xff]  ;;  %vm7279_vm1 = vcmask 80896  }
 0x3de   : > { %v2204_v59 = vsel %vm2203_vm13, %v2201_v52, %v7261_v54  ;;  %v7280_v53 = vld [vmem:[#allocation38_spill] sm:$0xff]  ;;  %vm7283_vm2 = vcmask 162816  }
 0x3df   : > { %v6662_v50 = vpop.permute.xlu1 %4096  ;;  %v4127_v39 = vpop.permute.xlu0 %4126  ;;  %v2207_v11 = vsel %vm6967_vm14, %v2204_v59, %v7262_v36  ;;  %v7284_v36 = vld [vmem:[#allocation53_spill] sm:$0xff] }
 0x3e0   : > { %v4294_v30 = vsel %vm6967_vm14, %v4292_v0, %v4127_v39  ;;  %vm2245_vm14 = vcmask 441344  }
 0x3e3   : > { %v6664_v6 = vpop.permute.xlu1 %4104  ;;  %v4135_v1 = vpop.permute.xlu0 %4134 }
 0x3e4   : > { %v4296_v32 = vsel %vm6968_vm15, %v4294_v30, %v4135_v1  ;;  %v7277_v30 = vld [vmem:[#allocation29_spill] sm:$0xff] }
 0x3e7   : > { %v6666_v38 = vpop.permute.xlu1 %4112  ;;  %v4143_v33 = vpop.permute.xlu0 %4142 }
 0x3e8   : > { %v4298_v44 = vsel %vm6969_vm0, %v4296_v32, %v4143_v33  ;;  %v2210_v33 = vsel %vm6968_vm15, %v2207_v11, %v7263_v15  ;;  %vm2248_vm15 = vcmask 457728   ;;  %v2181_v32 = vsel %vm7279_vm1, %v2178_v14, %v7278_v23  ;;  %v7307_v14 = vld [vmem:[#allocation52_spill] sm:$0xff] }
 0x3e9   : > { %vm7286_vm1 = vcmask 113664   ;;  %v7310_v23 = vld [vmem:[#allocation36_spill] sm:$0xff] }
 0x3eb   : > { %v6668_v27 = vpop.permute.xlu1 %4120  ;;  %v4151_v63 = vpop.permute.xlu0 %4150 }
 0x3ec   : > { %v4300_v39 = vsel %vm6970_vm8, %v4298_v44, %v4151_v63  ;;  %v2213_v63 = vsel %vm6969_vm0, %v2210_v33, %v7264_v41  ;;  %vm2251_vm0 = vcmask 474112   ;;  %v7281_v44 = vld [vmem:[#allocation37_spill] sm:$0xff] }
 0x3ed   : > { %v2216_v2 = vsel %vm6970_vm8, %v2213_v63, %v7269_v8  ;;  %vm2254_vm8 = vcmask 490496   ;;  %v7288_v41 = vld [vmem:[#allocation45_spill] sm:$0xff] }
 0x3ee   : > { %v2219_v43 = vsel %vm6971_vm7, %v2216_v2, %v7271_v18  ;;  %v7296_v2 = vld [vmem:[#allocation2_spill] sm:$0xff] }
 0x3ef   : > { %v6670_v47 = vpop.permute.xlu1 %4128  ;;  %v4159_v56 = vpop.permute.xlu0 %4158  ;;  %v2222_v0 = vsel %vm6972_vm9, %v2219_v43, %v7274_v37  ;;  %v7300_v43 = vld [vmem:[#allocation7_spill] sm:$0xff] }
 0x3f0   : > { %v4302_v1 = vsel %vm6971_vm7, %v4300_v39, %v4159_v56  ;;  %v2225_v17 = vsel %vm6973_vm6, %v2222_v0, %v7277_v30  ;;  %vm2257_vm7 = vcmask 506880   ;;  %v7304_v0 = vld [vmem:[#allocation8_spill] sm:$0xff] }
 0x3f1   : > { %v2228_v52 = vsel %vm2227_vm10, %v2225_v17, %v7280_v53  ;;  %v7308_v30 = vld [vmem:[#allocation44_spill] sm:$0xff] }
 0x3f2   : > { %v2231_v11 = vsel %vm2230_vm5, %v2228_v52, %v7284_v36  ;;  %v7318_v36 = vld [vmem:[#allocation33_spill] sm:$0xff] }
 0x3f3   : > { %v6672_v24 = vpop.permute.xlu1 %4136  ;;  %v4167_v21 = vpop.permute.xlu0 %4166 }
 0x3f4   : > { %v4304_v25 = vsel %vm6972_vm9, %v4302_v1, %v4167_v21  ;;  %vm7282_vm9 = vcmask 97280   ;;  %v7285_v1 = vld [vmem:[#allocation49_spill] sm:$0xff] }
 0x3f5   : > { %v2184_v54 = vsel %vm7282_vm9, %v2181_v32, %v7281_v44  ;;  %vm7290_vm9 = vcmask 130048   ;;  %v7314_v44 = vld [vmem:[#allocation48_spill] sm:$0xff] }
 0x3f7   : > { %v6674_v16 = vpop.permute.xlu1 %4144  ;;  %v6676_v28 = vpop.permute.xlu0 %4174 }
 0x3f8   : > { %v4306_v56 = vsel %vm6973_vm6, %v4304_v25, %v6676_v28  ;;  %vm7287_vm6 = vcmask 179200  }
 0x3fb   : > { %v6678_v20 = vpop.permute.xlu1 %4152  ;;  %v6680_v60 = vpop.permute.xlu0 %4182 }
 0x3fc   : > { %v4308_v21 = vsel %vm2227_vm10, %v4306_v56, %v6680_v60  ;;  %v7295_v56 = vld [vmem:[#allocation41_spill] sm:$0xff] }
 0x3ff   : > { %v6682_v12 = vpop.permute.xlu1 %4160  ;;  %v6684_v58 = vpop.permute.xlu0 %4190 }
 0x400   : > { %v4310_v28 = vsel %vm2230_vm5, %v4308_v21, %v6684_v58  ;;  %v7299_v21 = vld [vmem:[#allocation3_spill] sm:$0xff] }
 0x403   : > { %v6686_v57 = vpop.permute.xlu1 %4168  ;;  %v6688_v4 = vpop.permute.xlu0 %4198 }
 0x404   : > { %v4312_v60 = vsel %vm2233_vm11, %v4310_v28, %v6688_v4  ;;  %v4287_v4 = vsel %vm7283_vm2, %v6660_v49, %v6662_v50  ;;  %v2234_v49 = vsel %vm2233_vm11, %v2231_v11, %v7288_v41  ;;  %v7289_v50 = vld [vmem:[#allocation34_spill] sm:$0xff]  ;;  %vm7291_vm2 = vcmask 195584   ;;  %v7324_v41 = vld [vmem:[#allocation11_spill] sm:$0xff] }
 0x405   : > { %v4289_v15 = vsel %vm7287_vm6, %v4287_v4, %v6664_v6  ;;  %v2237_v42 = vsel %vm2236_vm4, %v2234_v49, %v7292_v3  ;;  %vm7294_vm6 = vcmask 146432   ;;  %v7303_v28 = vld [vmem:[#allocation6_spill] sm:$0xff]  ;;  %v7315_v4 = vld [vmem:[#allocation40_spill] sm:$0xff] }
 0x406   : > { %v4291_v63 = vsel %vm7291_vm2, %v4289_v15, %v6666_v38  ;;  %v2240_v8 = vsel %vm2239_vm12, %v2237_v42, %v7295_v56  ;;  %vm7301_vm2 = vcmask 179200   ;;  %v7329_v42 = vld [vmem:[#allocation5_spill] sm:$0xff] }
 0x407   : > { %v6690_v31 = vpop.permute.xlu1 %4176  ;;  %v6692_v51 = vpop.permute.xlu0 %4206  ;;  %v2243_v18 = vsel %vm2242_vm3, %v2240_v8, %v7299_v21  ;;  %v7331_v56 = vld [vmem:[#allocation65_spill] sm:$0xff] }
 0x408   : > { %v4314_v58 = vsel %vm2236_vm4, %v4312_v60, %v6692_v51  ;;  %v2187_v51 = vsel %vm7286_vm1, %v2184_v54, %v7285_v1  ;;  %vm7297_vm1 = vcmask 162816   ;;  %v2246_v37 = vsel %vm2245_vm14, %v2243_v18, %v7303_v28  ;;  %v7319_v1 = vld [vmem:[#allocation27_spill] sm:$0xff]  ;;  %v7334_v18 = vld [vmem:[#allocation69_spill] sm:$0xff] }
 0x409   : > { %v2249_v60 = vsel %vm2248_vm15, %v2246_v37, %v7307_v14  ;;  %v7337_v37 = vld [vmem:[#allocation16_spill] sm:$0xff] }
 0x40a   : > { %v2252_v32 = vsel %vm2251_vm0, %v2249_v60, %v7310_v23 }
 0x40b   : > { %v6699_v29 = vpop.permute.xlu1 %4184  ;;  %v6703_v61 = vpop.permute.xlu0 %4214  ;;  %v2255_v54 = vsel %vm2254_vm8, %v2252_v32, %v7314_v44 }
 0x40c   : > { %v4316_v59 = vsel %vm2239_vm12, %v4314_v58, %v6703_v61  ;;  %v2190_v61 = vsel %vm7290_vm9, %v2187_v51, %v7289_v50  ;;  %vm7298_vm9 = vcmask 228352   ;;  %v7311_v58 = vld [vmem:[#allocation30_spill] sm:$0xff]  ;;  %v2258_v11 = vsel %vm2257_vm7, %v2255_v54, %v7318_v36 }
 0x40d   : > { %v2193_v6 = vsel %vm7294_vm6, %v2190_v61, %v7293_v19  ;;  %vm7302_vm6 = vcmask 244736   ;;  %v7326_v61 = vld [vmem:[#allocation13_spill] sm:$0xff] }
 0x40e   : > { %v2196_v34 = vsel %vm7297_vm1, %v2193_v6, %v7296_v2  ;;  %vm7305_vm1 = vcmask 195584  }
 0x40f   : > { %v6711_v5 = vpop.permute.xlu1 %4192  ;;  %v6716_v9 = vpop.permute.xlu0 %4222 }
 0x410   : > { %v4318_v33 = vsel %vm2242_vm3, %v4316_v59, %v6716_v9  ;;  %v4293_v9 = vsel %vm2203_vm13, %v4291_v63, %v6668_v27  ;;  %v2199_v27 = vsel %vm7301_vm2, %v2196_v34, %v7300_v43  ;;  %vm7309_vm2 = vcmask 277504  }
 0x411   : > { %v4295_v38 = vsel %vm7298_vm9, %v4293_v9, %v6670_v47  ;;  %v2202_v47 = vsel %vm7305_vm1, %v2199_v27, %v7304_v0  ;;  %vm7306_vm9 = vcmask 261120   ;;  %vm7313_vm1 = vcmask 293888  }
 0x413   : > { %v6727_v26 = vpop.permute.xlu1 %4200  ;;  %v4231_v10 = vpop.permute.xlu0 %4230 }
 0x414   : > { %v4320_v22 = vsel %vm2245_vm14, %v4318_v33, %v4231_v10 }
 0x417   : > { %v6741_v55 = vpop.permute.xlu1 %4208  ;;  %v4239_v35 = vpop.permute.xlu0 %4238 }
 0x418   : > { %v4322_v48 = vsel %vm2248_vm15, %v4320_v22, %v4239_v35  ;;  %v4297_v35 = vsel %vm7302_vm6, %v4295_v38, %v6672_v24  ;;  %v2205_v24 = vsel %vm2203_vm13, %v2202_v47, %v7308_v30  ;;  %vm7312_vm6 = vcmask 228352   ;;  %v7327_v22 = vld [vmem:[#allocation15_spill] sm:$0xff]  ;;  %v7338_v47 = vld [vmem:[#allocation73_spill] sm:$0xff] }
 0x419   : > { %v2208_v53 = vsel %vm7312_vm6, %v2205_v24, %v7311_v58  ;;  %vm7316_vm13 = vcmask 244736   ;;  %vm7321_vm6 = vcmask 326656  }
 0x41a   : > { %v2211_v59 = vsel %vm7316_vm13, %v2208_v53, %v7315_v4  ;;  %vm7325_vm13 = vcmask 293888  }
 0x41b   : > { %v6764_v45 = vpop.permute.xlu1 %4216  ;;  %v4247_v62 = vpop.permute.xlu0 %4246 }
 0x41c   : > { %v4324_v10 = vsel %vm2251_vm0, %v4322_v48, %v4247_v62  ;;  %v4299_v62 = vsel %vm7306_vm9, %v4297_v35, %v6674_v16  ;;  %vm7317_vm9 = vcmask 310272   ;;  %v7335_v35 = vld [vmem:[#allocation71_spill] sm:$0xff] }
 0x41d   : > { %v4301_v17 = vsel %vm7309_vm2, %v4299_v62, %v6678_v20  ;;  %vm7320_vm2 = vcmask 261120  }
 0x41e   : > { %v4303_v16 = vsel %vm7313_vm1, %v4301_v17, %v6682_v12  ;;  %v2214_v51 = vsel %vm7320_vm2, %v2211_v59, %v7319_v1  ;;  %v7322_v12 = vld [vmem:[#allocation10_spill] sm:$0xff]  ;;  %vm7323_vm1 = vcmask 277504   ;;  %vm7328_vm2 = vmmov %vm7321_vm6 }
 0x41f   : > { %v4225_v39 = vpop.permute.xlu1 %4224  ;;  %v4255_v25 = vpop.permute.xlu0 %4254  ;;  %v4305_v20 = vsel %vm7317_vm9, %v4303_v16, %v6686_v57  ;;  %v2217_v33 = vsel %vm7323_vm1, %v2214_v51, %v7322_v12 }
 0x420   : > { %v4326_v46 = vsel %vm2254_vm8, %v4324_v10, %v4255_v25  ;;  %v4307_v15 = vsel %vm7321_vm6, %v4305_v20, %v6690_v31  ;;  %v2220_v57 = vsel %vm7325_vm13, %v2217_v33, %v7324_v41  ;;  %v7333_v10 = vld [vmem:[#allocation68_spill] sm:$0xff] }
 0x421   : > { %v4309_v25 = vsel %vm2227_vm10, %v4307_v15, %v6699_v29  ;;  %v2223_v63 = vsel %vm7317_vm9, %v2220_v57, %v7326_v61 }
 0x422   : > { %v4311_v49 = vsel %vm2230_vm5, %v4309_v25, %v6711_v5  ;;  %v2226_v3 = vsel %vm7328_vm2, %v2223_v63, %v7327_v22  ;;  %v7330_v5 = vld [vmem:[#allocation4_spill] sm:$0xff] }
 0x423   : > { %v4233_v13 = vpop.permute.xlu1 %4232  ;;  %v4263_v7 = vpop.permute.xlu0 %4262  ;;  %v4313_v31 = vsel %vm2233_vm11, %v4311_v49, %v6727_v26  ;;  %v2229_v19 = vsel %vm2227_vm10, %v2226_v3, %v7329_v42 }
 0x424   : > { %v4328_v40 = vsel %vm2257_vm7, %v4326_v46, %v4263_v7  ;;  %v4315_v29 = vsel %vm2236_vm4, %v4313_v31, %v6741_v55  ;;  %v2232_v9 = vsel %vm2230_vm5, %v2229_v19, %v7330_v5  ;;  %v7332_v55 = vld [vmem:[#allocation66_spill] sm:$0xff]  ;;  %v7336_v7 = vld [vmem:[#allocation72_spill] sm:$0xff]  ;;  %vm7340_vm5 = vcmask 261120  }
 0x425   : > { %4332 = vrot.lane.b32.xlu0 %v4328_v40, %s4504_s28  ;;  %v4317_v6 = vsel %vm2239_vm12, %v4315_v29, %v6764_v45  ;;  %v2235_v8 = vsel %vm2233_vm11, %v2232_v9, %v7331_v56 }
 0x426   : > { %v4319_v48 = vsel %vm2242_vm3, %v4317_v6, %v4225_v39  ;;  %v2238_v34 = vsel %vm2236_vm4, %v2235_v8, %v7332_v55  ;;  %vm4357_vm4 = vcmask 785408  }
 0x427   : > { %v4241_v52 = vpop.permute.xlu1 %4240  ;;  %v4321_v2 = vsel %vm2245_vm14, %v4319_v48, %v4233_v13  ;;  %v2241_v45 = vsel %vm2239_vm12, %v2238_v34, %v7333_v10 }
 0x428   : > { %v4323_v38 = vsel %vm2248_vm15, %v4321_v2, %v4241_v52  ;;  %v2244_v39 = vsel %vm2242_vm3, %v2241_v45, %v7334_v18  ;;  %vm4354_vm3 = vcmask 523264  }
 0x429   : > { %4340 = vrot.lane.b32.xlu0 %v2258_v11, %s4504_s28  ;;  %v2247_v13 = vsel %vm2245_vm14, %v2244_v39, %v7335_v35 }
 0x42a   : > { %v2250_v28 = vsel %vm2248_vm15, %v2247_v13, %v7336_v7 }
 0x42b   : > { %v4249_v50 = vpop.permute.xlu1 %4248  ;;  %v2253_v0 = vsel %vm2251_vm0, %v2250_v28, %v7337_v37 }
 0x42c   : > { %v4325_v21 = vsel %vm2251_vm0, %v4323_v38, %v4249_v50  ;;  %v2256_v62 = vsel %vm2254_vm8, %v2253_v0, %v7338_v47 }
 0x42d   : > { %4346 = vrot.lane.b32.xlu0 %v4328_v40, %s4520_s17  ;;  %v7339_v40 = vld [vmem:[#allocation75_spill] sm:$0xff] }
 0x42e   : > { %v2259_v14 = vsel %vm2257_vm7, %v2256_v62, %v7339_v40 }
 0x42f   : > { %v4257_v26 = vpop.permute.xlu1 %4256 }
 0x430   : > { %v4327_v43 = vsel %vm2254_vm8, %v4325_v21, %v4257_v26 }
 0x433   : > { %v4265_v27 = vpop.permute.xlu1 %4264 }
 0x434   : > { %v4329_v46 = vsel %vm2257_vm7, %v4327_v43, %v4265_v27  ;;  %vm7341_vm7 = vmmov %vm7340_vm5 }
 0x435   : > { %4334 = vrot.lane.b32.xlu1 %v4329_v46, %s4504_s28 }
 0x439   : > { %4342 = vrot.lane.b32.xlu1 %v2259_v14, %s4504_s28 }
 0x43d   : > { %4348 = vrot.lane.b32.xlu1 %v4329_v46, %s4520_s17 }
 0x497   : > { %v4333_v60 = vpop.permute.xlu0 %4332 }
 0x498   : > { %v4352_v24 = vsel %vm7340_vm5, %v2258_v11, %v4333_v60 }
 0x49b   : > { %v4341_v30 = vpop.permute.xlu0 %4340 }
 0x49c   : > { %v4355_v17 = vsel %vm4354_vm3, %v4352_v24, %v4341_v30 }
 0x49f   : > { %v4347_v23 = vpop.permute.xlu0 %4346 }
 0x4a0   : > { %v4358_v32 = vsel %vm4357_vm4, %v4355_v17, %v4347_v23 }
 0x4a1   : > { %4360 = vst [vmem:[%s121_s21] sm:$0xff] %v4358_v32 }
 0x4a7   : > { %v4335_v58 = vpop.permute.xlu1 %4334 }
 0x4a8   : > { %v4353_v16 = vsel %vm7341_vm7, %v2259_v14, %v4335_v58 }
 0x4ab   : > { %v4343_v53 = vpop.permute.xlu1 %4342 }
 0x4ac   : > { %v4356_v52 = vsel %vm4354_vm3, %v4353_v16, %v4343_v53 }
 0x4af   : > { %v4349_v44 = vpop.permute.xlu1 %4348 }
 0x4b0   : > { %v4359_v54 = vsel %vm4357_vm4, %v4356_v52, %v4349_v44 }
 0x4b1   : > { %4361 = vst [vmem:[%s121_s21 + $0x8] sm:$0xff] %v4359_v54 }
 0x4b2 PF: > { %s11_s6 = sadd.s32 1, %s4485_s6  }
 0x4b3   : > { %p8_p4 = scmp.ge.s32.totalorder %s11_s6, 4  }
 0x4b5   :  { %10 = sbr.rel (!%p8_p4) target bundleno = 1 (0x1), region = 57 }

</bundles_post_ra>
